<compile_context>
chip_gen: v7x
topology: tpu7x:2x2x1
jax: 0.10.0
libtpu: 0.0.40
codegen_flags: <defaults>
</compile_context>

<pallas_src>
import jax
import jax.numpy as jnp
from jax.experimental import pallas as pl
from jax.experimental.pallas import tpu as pltpu

_SLAB = 128  # lane-dense packed-output width (multiple of 128 lanes)


# --------------------------------------------------------------------------
# fused forward kernel: one grid step == one batch element
# --------------------------------------------------------------------------
def _regression_kernel(
    # scalar prefetch (SMEM)
    len_ref,                                    # (B,) int32
    # per-batch input
    emb_ref,                                    # (1, 3L, Dbert)  stacked [w; v; a] embeddings
    # weights (full blocks, constant across the grid)
    bert_wT_ref, bert_b_ref,                    # (Dbert, H), (1, H)
    cw1s_ref, cw1t_ref, cb1_ref, cw2_ref,       # (2,H,H), (2,H,H), (2,1,H), (2,1,H)  [0]=vw, [1]=aw
    wih_w_ref, wih_v_ref, wih_a_ref,            # (4, H, H3) each  (gate-major, concat-part split)
    whh_ref, lstm_b_ref,                        # (4, H3, H3), (4, 1, H3)
    sa_w1s_ref, sa_w1t_ref, sa_b1_ref, sa_w2_ref,  # (H3,H3), (H3,H3), (1,H3), (1,H3)
    mp_w_ref, mp_b_ref,                         # (H, 1), (1, 1)
    fc1_wT_ref, fc1_b_ref,                      # (5H, H), (1, H)
    fc2_wT_ref, fc2_b_ref,                      # (H, 1), (1, 1)
    # output
    out_ref,                                    # (1, L, _SLAB)
):
    f32 = jnp.float32
    b = pl.program_id(0)
    length = len_ref[b]                         # scalar int32

    L = emb_ref.shape[1] // 3
    H = bert_wT_ref.shape[1]
    H3 = whh_ref.shape[1]

    # ---- fused bert_fc over the stacked [w; v; a] embeddings (one matmul) ----
    hs_all = (jnp.dot(emb_ref[0], bert_wT_ref[...], preferred_element_type=f32)
              + bert_b_ref[...])                                          # (3L, H)
    w_hs = hs_all[0 * L:1 * L]
    v_hs = hs_all[1 * L:2 * L]
    a_hs = hs_all[2 * L:3 * L]

    # ---- length mask over src positions j (multiplicative, torch semantics) ----
    col = jax.lax.broadcasted_iota(jnp.int32, (L, L), 1)
    mask = (col < length).astype(f32)                                     # (L, L)

    def cross_attn(src, tgt, w1s, w1t, b1, w2_row):
        # score[i, j] = w2 . tanh(W1_src @ src[j] + W1_tgt @ tgt[i] + b1)
        sp = jnp.dot(src, w1s, preferred_element_type=f32)                # (L, Hd)
        tp = jnp.dot(tgt, w1t, preferred_element_type=f32)                # (L, Hd)
        h = jnp.tanh(sp[None, :, :] + tp[:, None, :] + b1)                # (L, L, Hd)
        # TODO(synk): at real-model Hd, replace this lane reduce with an MXU matmul
        scores = jnp.sum(h * w2_row, axis=-1)                             # (L, L)
        scores = mask * scores                                            # multiplicative mask
        m = jnp.max(scores, axis=-1, keepdims=True)
        e = jnp.exp(scores - m)
        wts = e / jnp.sum(e, axis=-1, keepdims=True)                      # softmax over j
        out = jnp.dot(wts, src, preferred_element_type=f32)               # (L, E)
        return out, wts

    v_consi, v_wts = cross_attn(v_hs, w_hs, cw1s_ref[0], cw1t_ref[0],
                                cb1_ref[0], cw2_ref[0])
    a_consi, a_wts = cross_attn(a_hs, w_hs, cw1s_ref[1], cw1t_ref[1],
                                cb1_ref[1], cw2_ref[1])

    # ---- single-layer LSTM over time, fully inside the kernel ---------------
    # Input-side gate matmuls are hoisted out of the recurrence; the
    # [w_hs, v_consi, a_consi] lane-concat is folded into 3 partial matmuls.
    x_gates = []
    for k in range(4):                          # torch gate order: i, f, g, o
        xg = (jnp.dot(w_hs, wih_w_ref[k], preferred_element_type=f32)
              + jnp.dot(v_consi, wih_v_ref[k], preferred_element_type=f32)
              + jnp.dot(a_consi, wih_a_ref[k], preferred_element_type=f32)
              + lstm_b_ref[k])                                            # (L, H3)
        x_gates.append(xg)

    h_t = jnp.zeros((1, H3), f32)
    c_t = jnp.zeros((1, H3), f32)
    out_rows = []
    for t in range(L):                          # static unroll, T == L is tiny
        i_g = jax.nn.sigmoid(x_gates[0][t:t + 1]
                             + jnp.dot(h_t, whh_ref[0], preferred_element_type=f32))
        f_g = jax.nn.sigmoid(x_gates[1][t:t + 1]
                             + jnp.dot(h_t, whh_ref[1], preferred_element_type=f32))
        g_g = jnp.tanh(x_gates[2][t:t + 1]
                       + jnp.dot(h_t, whh_ref[2], preferred_element_type=f32))
        o_g = jax.nn.sigmoid(x_gates[3][t:t + 1]
                             + jnp.dot(h_t, whh_ref[3], preferred_element_type=f32))
        c_new = f_g * c_t + i_g * g_g
        h_new = o_g * jnp.tanh(c_new)
        # pack/pad_packed semantics: freeze state and zero outputs past length
        valid = (t < length).astype(f32)        # scalar 0/1
        out_rows.append(valid * h_new)
        h_t = valid * h_new + (1.0 - valid) * h_t
        c_t = valid * c_new + (1.0 - valid) * c_t
    c_hs = jnp.concatenate(out_rows, axis=0)                              # (L, H3)

    # ---- self attention over c_hs ----
    c_attn_out, _ = cross_attn(c_hs, c_hs, sa_w1s_ref[...], sa_w1t_ref[...],
                               sa_b1_ref[...], sa_w2_ref[...])            # (L, H3)

    # ---- gather row (length - 1) via a one-hot matmul ----
    pos = jax.lax.broadcasted_iota(jnp.int32, (1, L), 1)
    onehot = (pos == (length - 1)).astype(f32)                            # (1, L)
    c_out = jnp.dot(onehot, c_attn_out, preferred_element_type=f32)       # (1, H3)

    # ---- shared soft attention over v_hs / a_hs (no mask, torch semantics) ----
    def soft_attn(reps):
        s = (jnp.dot(reps, mp_w_ref[...], preferred_element_type=f32)
             + mp_b_ref[...])                                             # (L, 1)
        m = jnp.max(s, axis=0, keepdims=True)
        e = jnp.exp(s - m)
        wts = e / jnp.sum(e, axis=0, keepdims=True)                       # (L, 1) softmax over L
        out = jnp.sum(reps * wts, axis=0, keepdims=True)                  # (1, H)
        return out, wts

    v_comp, v_soft = soft_attn(v_hs)
    a_comp, a_soft = soft_attn(a_hs)

    # ---- MLP head: fc2(relu(fc1(cat))); the cat is folded into 3 partial matmuls
    hid = jnp.maximum(
        jnp.dot(c_out, fc1_wT_ref[0:H3], preferred_element_type=f32)
        + jnp.dot(v_comp, fc1_wT_ref[H3:H3 + H], preferred_element_type=f32)
        + jnp.dot(a_comp, fc1_wT_ref[H3 + H:H3 + 2 * H], preferred_element_type=f32)
        + fc1_b_ref[...], 0.0)                                            # (1, H)
    y = (jnp.dot(hid, fc2_wT_ref[...], preferred_element_type=f32)
         + fc2_b_ref[...])                                                # (1, 1)

    # ---- pack everything into one lane-dense (L, 128) output block ----------
    slab_w = out_ref.shape[2]
    out_ref[0] = jnp.zeros((L, slab_w), f32)
    out_ref[0, :, 0:L] = v_wts                          # v cross-attn weights (L, L)
    out_ref[0, :, L:2 * L] = a_wts                      # a cross-attn weights (L, L)
    out_ref[0, :, 2 * L:2 * L + 1] = v_soft             # v soft-attn weights (L, 1)
    out_ref[0, :, 2 * L + 1:2 * L + 2] = a_soft         # a soft-attn weights (L, 1)
    out_ref[0, 0:1, 2 * L + 2:2 * L + 3] = y            # regression scalar


# --------------------------------------------------------------------------
# wrapper: embedding lookup, weight re-layout, single pallas_call, unpack
# --------------------------------------------------------------------------
def regression_forward(params, w, v, a, lengths):
    B, L = w.shape
    H = params["bert_fc_w"].shape[0]
    Dbert = params["bert_fc_w"].shape[1]
    H3 = 3 * H
    assert 2 * L + 3 <= _SLAB, "packed-output slab too narrow for this L"

    # synthetic BERT "last_hidden_state": deterministic embedding lookup (glue)
    # TODO(synk): full pretrained BertModel forward is not reproduced here.
    emb = params["bert_emb"]
    w_emb = jnp.take(emb, w, axis=0)
    v_emb = jnp.take(emb, v, axis=0)
    a_emb = jnp.take(emb, a, axis=0)
    emb_stack = jnp.concatenate([w_emb, v_emb, a_emb], axis=1)            # (B, 3L, Dbert)

    # ---- one-time weight re-layout (pure JAX glue, tiny) ----
    bert_wT = params["bert_fc_w"].T                                       # (Dbert, H)
    bert_b = params["bert_fc_b"].reshape(1, H)

    cw1s = jnp.stack([params["vw_w1"][:, :H].T, params["aw_w1"][:, :H].T])   # (2, H, H)
    cw1t = jnp.stack([params["vw_w1"][:, H:].T, params["aw_w1"][:, H:].T])   # (2, H, H)
    cb1 = jnp.stack([params["vw_b1"].reshape(1, H), params["aw_b1"].reshape(1, H)])
    cw2 = jnp.stack([params["vw_w2"].reshape(1, H), params["aw_w2"].reshape(1, H)])

    wih_T = jnp.transpose(params["lstm_w_ih"].reshape(4, H3, H3), (0, 2, 1))  # (4, in, out)
    whh_T = jnp.transpose(params["lstm_w_hh"].reshape(4, H3, H3), (0, 2, 1))  # (4, H3, H3)
    wih_w = wih_T[:, 0:H, :]                                              # (4, H, H3)
    wih_v = wih_T[:, H:2 * H, :]
    wih_a = wih_T[:, 2 * H:3 * H, :]
    lstm_b = (params["lstm_b_ih"] + params["lstm_b_hh"]).reshape(4, 1, H3)

    sa_w1s = params["sa_w1"][:, :H3].T                                    # (H3, H3)
    sa_w1t = params["sa_w1"][:, H3:].T
    sa_b1 = params["sa_b1"].reshape(1, H3)
    sa_w2 = params["sa_w2"].reshape(1, H3)

    mp_w = params["mp_w"].reshape(1, H).T                                 # (H, 1)
    mp_b = params["mp_b"].reshape(1, 1)

    fc1_wT = params["fc1_w"].T                                            # (5H, H)
    fc1_b = params["fc1_b"].reshape(1, H)
    fc2_wT = params["fc2_w"].T                                            # (H, 1)
    fc2_b = params["fc2_b"].reshape(1, 1)

    weights = (bert_wT, bert_b, cw1s, cw1t, cb1, cw2,
               wih_w, wih_v, wih_a, whh_T, lstm_b,
               sa_w1s, sa_w1t, sa_b1, sa_w2,
               mp_w, mp_b, fc1_wT, fc1_b, fc2_wT, fc2_b)

    def full_spec(x):
        nd = x.ndim
        return pl.BlockSpec(x.shape, lambda b, lens, nd=nd: (0,) * nd)

    slab = pl.pallas_call(
        _regression_kernel,
        out_shape=jax.ShapeDtypeStruct((B, L, _SLAB), jnp.float32),
        grid_spec=pltpu.PrefetchScalarGridSpec(
            num_scalar_prefetch=1,
            grid=(B,),
            in_specs=[pl.BlockSpec((1, 3 * L, Dbert), lambda b, lens: (b, 0, 0))]
            + [full_spec(x) for x in weights],
            out_specs=pl.BlockSpec((1, L, _SLAB), lambda b, lens: (b, 0, 0)),
        ),
        compiler_params=pltpu.CompilerParams(
            # batch axis is parallel -> shards across the two TensorCores on v7x
            dimension_semantics=("parallel",)),
    )(lengths.astype(jnp.int32), emb_stack, *weights)

    # ---- unpack the lane-dense slab ----
    v_attn_weights = slab[:, :, 0:L]                                      # (B, L, L)
    a_attn_weights = slab[:, :, L:2 * L]                                  # (B, L, L)
    v_soft_attn_weights = slab[:, :, 2 * L:2 * L + 1]                     # (B, L, 1)
    a_soft_attn_weights = slab[:, :, 2 * L + 1:2 * L + 2]                 # (B, L, 1)
    out = slab[:, 0, 2 * L + 2]                                           # (B,)

    return out, [v_attn_weights, v_soft_attn_weights,
                 a_attn_weights, a_soft_attn_weights]


# --------------------------------------------------------------------------
# deterministic parameter init (torch layouts)
# --------------------------------------------------------------------------
def init_params(key, vocab=100, bert_hidden=32, hidden=16):
    ks = jax.random.split(key, 22)

    def n(k, shape, scale=0.05):
        return jax.random.normal(k, shape, jnp.float32) * scale

    H, H3 = hidden, 3 * hidden
    return {
        "bert_emb": n(ks[0], (vocab, bert_hidden), 0.1),
        "bert_fc_w": n(ks[1], (H, bert_hidden)), "bert_fc_b": n(ks[2], (H,)),
        "vw_w1": n(ks[3], (H, 2 * H)), "vw_b1": n(ks[4], (H,)), "vw_w2": n(ks[5], (1, H)),
        "aw_w1": n(ks[6], (H, 2 * H)), "aw_b1": n(ks[7], (H,)), "aw_w2": n(ks[8], (1, H)),
        "lstm_w_ih": n(ks[9], (4 * H3, H3)), "lstm_w_hh": n(ks[10], (4 * H3, H3)),
        "lstm_b_ih": n(ks[11], (4 * H3,)), "lstm_b_hh": n(ks[12], (4 * H3,)),
        "sa_w1": n(ks[13], (H3, 2 * H3)), "sa_b1": n(ks[14], (H3,)), "sa_w2": n(ks[15], (1, H3)),
        "mp_w": n(ks[16], (1, H)), "mp_b": n(ks[17], (1,)),
        "fc1_w": n(ks[18], (H, 5 * H)), "fc1_b": n(ks[19], (H,)),
        "fc2_w": n(ks[20], (1, H)), "fc2_b": n(ks[21], (1,)),
    }


if __name__ == "__main__":
    key = jax.random.PRNGKey(0)
    pk, wk, vk, ak = jax.random.split(key, 4)

    B, L, VOCAB = 2, 8, 100
    params = init_params(pk, vocab=VOCAB, bert_hidden=32, hidden=16)

    w = jax.random.randint(wk, (B, L), 0, VOCAB, dtype=jnp.int32)
    v = jax.random.randint(vk, (B, L), 0, VOCAB, dtype=jnp.int32)
    a = jax.random.randint(ak, (B, L), 0, VOCAB, dtype=jnp.int32)
    lengths = jnp.array([8, 5], dtype=jnp.int32)   # sorted descending (pack_padded requirement)

    fwd = jax.jit(regression_forward)
    out, attn_list = fwd(params, w, v, a, lengths)
    jax.block_until_ready(out)
    for t in attn_list:
        jax.block_until_ready(t)

    assert out.shape == (B,)
    assert attn_list[0].shape == (B, L, L)
    assert attn_list[1].shape == (B, L, 1)
    assert attn_list[2].shape == (B, L, L)
    assert attn_list[3].shape == (B, L, 1)
    print("KERNEL_OK")
</pallas_src>

<mosaic_0001>
module attributes {stable_mosaic.version = 11 : i64} {
  func.func @_regression_kernel(%arg0: i32, %arg1: memref<2xi32, #tpu.memory_space<smem>>, %arg2: memref<1x24x32xf32, #tpu.memory_space<vmem>>, %arg3: memref<32x16xf32, #tpu.memory_space<vmem>>, %arg4: memref<1x16xf32, #tpu.memory_space<vmem>>, %arg5: memref<2x16x16xf32, #tpu.memory_space<vmem>>, %arg6: memref<2x16x16xf32, #tpu.memory_space<vmem>>, %arg7: memref<2x1x16xf32, #tpu.memory_space<vmem>>, %arg8: memref<2x1x16xf32, #tpu.memory_space<vmem>>, %arg9: memref<4x16x48xf32, #tpu.memory_space<vmem>>, %arg10: memref<4x16x48xf32, #tpu.memory_space<vmem>>, %arg11: memref<4x16x48xf32, #tpu.memory_space<vmem>>, %arg12: memref<4x48x48xf32, #tpu.memory_space<vmem>>, %arg13: memref<4x1x48xf32, #tpu.memory_space<vmem>>, %arg14: memref<48x48xf32, #tpu.memory_space<vmem>>, %arg15: memref<48x48xf32, #tpu.memory_space<vmem>>, %arg16: memref<1x48xf32, #tpu.memory_space<vmem>>, %arg17: memref<1x48xf32, #tpu.memory_space<vmem>>, %arg18: memref<16x1xf32, #tpu.memory_space<vmem>>, %arg19: memref<1x1xf32, #tpu.memory_space<vmem>>, %arg20: memref<80x16xf32, #tpu.memory_space<vmem>>, %arg21: memref<1x16xf32, #tpu.memory_space<vmem>>, %arg22: memref<16x1xf32, #tpu.memory_space<vmem>>, %arg23: memref<1x1xf32, #tpu.memory_space<vmem>>, %arg24: memref<1x8x128xf32, #tpu.memory_space<vmem>>) attributes {dimension_semantics = [#tpu.dimension_semantics<parallel>], iteration_bounds = array<i64: 2>, scalar_prefetch = 1 : i64, scratch_operands = 0 : i64, tpu.core_type = #tpu.core_type<tc>, window_params = [{transform_indices = @transform_0, window_bounds = array<i64: 1, 24, 32>}, {pipeline_mode = #tpu.pipeline_mode<synchronous>, transform_indices = @transform_1, window_bounds = array<i64: 32, 16>}, {pipeline_mode = #tpu.pipeline_mode<synchronous>, transform_indices = @transform_2, window_bounds = array<i64: 1, 16>}, {pipeline_mode = #tpu.pipeline_mode<synchronous>, transform_indices = @transform_3, window_bounds = array<i64: 2, 16, 16>}, {pipeline_mode = #tpu.pipeline_mode<synchronous>, transform_indices = @transform_4, window_bounds = array<i64: 2, 16, 16>}, {pipeline_mode = #tpu.pipeline_mode<synchronous>, transform_indices = @transform_5, window_bounds = array<i64: 2, 1, 16>}, {pipeline_mode = #tpu.pipeline_mode<synchronous>, transform_indices = @transform_6, window_bounds = array<i64: 2, 1, 16>}, {pipeline_mode = #tpu.pipeline_mode<synchronous>, transform_indices = @transform_7, window_bounds = array<i64: 4, 16, 48>}, {pipeline_mode = #tpu.pipeline_mode<synchronous>, transform_indices = @transform_8, window_bounds = array<i64: 4, 16, 48>}, {pipeline_mode = #tpu.pipeline_mode<synchronous>, transform_indices = @transform_9, window_bounds = array<i64: 4, 16, 48>}, {pipeline_mode = #tpu.pipeline_mode<synchronous>, transform_indices = @transform_10, window_bounds = array<i64: 4, 48, 48>}, {pipeline_mode = #tpu.pipeline_mode<synchronous>, transform_indices = @transform_11, window_bounds = array<i64: 4, 1, 48>}, {pipeline_mode = #tpu.pipeline_mode<synchronous>, transform_indices = @transform_12, window_bounds = array<i64: 48, 48>}, {pipeline_mode = #tpu.pipeline_mode<synchronous>, transform_indices = @transform_13, window_bounds = array<i64: 48, 48>}, {pipeline_mode = #tpu.pipeline_mode<synchronous>, transform_indices = @transform_14, window_bounds = array<i64: 1, 48>}, {pipeline_mode = #tpu.pipeline_mode<synchronous>, transform_indices = @transform_15, window_bounds = array<i64: 1, 48>}, {pipeline_mode = #tpu.pipeline_mode<synchronous>, transform_indices = @transform_16, window_bounds = array<i64: 16, 1>}, {pipeline_mode = #tpu.pipeline_mode<synchronous>, transform_indices = @transform_17, window_bounds = array<i64: 1, 1>}, {pipeline_mode = #tpu.pipeline_mode<synchronous>, transform_indices = @transform_18, window_bounds = array<i64: 80, 16>}, {pipeline_mode = #tpu.pipeline_mode<synchronous>, transform_indices = @transform_19, window_bounds = array<i64: 1, 16>}, {pipeline_mode = #tpu.pipeline_mode<synchronous>, transform_indices = @transform_20, window_bounds = array<i64: 16, 1>}, {pipeline_mode = #tpu.pipeline_mode<synchronous>, transform_indices = @transform_21, window_bounds = array<i64: 1, 1>}, {transform_indices = @transform_22, window_bounds = array<i64: 1, 8, 128>}]} {
    %0 = arith.index_cast %arg0 : i32 to index
    %1 = memref.load %arg1[%0] : memref<2xi32, #tpu.memory_space<smem>>
    %c0 = arith.constant 0 : index
    %c0_0 = arith.constant 0 : index
    %c0_1 = arith.constant 0 : index
    %2 = vector.load %arg2[%c0, %c0_0, %c0_1] : memref<1x24x32xf32, #tpu.memory_space<vmem>>, vector<1x24x32xf32>
    %3 = vector.shape_cast %2 : vector<1x24x32xf32> to vector<24x32xf32>
    %c0_2 = arith.constant 0 : index
    %c0_3 = arith.constant 0 : index
    %4 = vector.load %arg3[%c0_2, %c0_3] : memref<32x16xf32, #tpu.memory_space<vmem>>, vector<32x16xf32>
    %cst = arith.constant dense<0.000000e+00> : vector<24x16xf32>
    %5 = tpu.matmul %3, %4, %cst {dimension_numbers = #tpu.dot_dimension_numbers<[1], [0], [0], [1], [0, 0, 1, 1], [], []>} : vector<24x32xf32>, vector<32x16xf32>, vector<24x16xf32> -> vector<24x16xf32>
    %c0_4 = arith.constant 0 : index
    %c0_5 = arith.constant 0 : index
    %6 = vector.load %arg4[%c0_4, %c0_5] : memref<1x16xf32, #tpu.memory_space<vmem>>, vector<1x16xf32>
    %7 = vector.broadcast %6 : vector<1x16xf32> to vector<24x16xf32>
    %8 = arith.addf %5, %7 : vector<24x16xf32>
    %9 = vector.extract_strided_slice %8 {offsets = [0, 0], sizes = [8, 16], strides = [1, 1]} : vector<24x16xf32> to vector<8x16xf32>
    %10 = vector.extract_strided_slice %8 {offsets = [8, 0], sizes = [8, 16], strides = [1, 1]} : vector<24x16xf32> to vector<8x16xf32>
    %11 = vector.extract_strided_slice %8 {offsets = [16, 0], sizes = [8, 16], strides = [1, 1]} : vector<24x16xf32> to vector<8x16xf32>
    %12 = tpu.iota {dimensions = array<i32: 1>} : vector<8x8xi32>
    %13 = vector.broadcast %1 : i32 to vector<8x8xi32>
    %14 = arith.cmpi slt, %12, %13 : vector<8x8xi32>
    %15 = arith.extui %14 : vector<8x8xi1> to vector<8x8xi32>
    %16 = arith.sitofp %15 : vector<8x8xi32> to vector<8x8xf32>
    %c0_6 = arith.constant 0 : index
    %c0_7 = arith.constant 0 : index
    %c0_8 = arith.constant 0 : index
    %17 = vector.load %arg5[%c0_6, %c0_7, %c0_8] : memref<2x16x16xf32, #tpu.memory_space<vmem>>, vector<1x16x16xf32>
    %18 = vector.shape_cast %17 : vector<1x16x16xf32> to vector<16x16xf32>
    %c0_9 = arith.constant 0 : index
    %c0_10 = arith.constant 0 : index
    %c0_11 = arith.constant 0 : index
    %19 = vector.load %arg6[%c0_9, %c0_10, %c0_11] : memref<2x16x16xf32, #tpu.memory_space<vmem>>, vector<1x16x16xf32>
    %20 = vector.shape_cast %19 : vector<1x16x16xf32> to vector<16x16xf32>
    %c0_12 = arith.constant 0 : index
    %c0_13 = arith.constant 0 : index
    %c0_14 = arith.constant 0 : index
    %21 = vector.load %arg7[%c0_12, %c0_13, %c0_14] : memref<2x1x16xf32, #tpu.memory_space<vmem>>, vector<1x1x16xf32>
    %22 = vector.shape_cast %21 : vector<1x1x16xf32> to vector<1x16xf32>
    %c0_15 = arith.constant 0 : index
    %c0_16 = arith.constant 0 : index
    %c0_17 = arith.constant 0 : index
    %23 = vector.load %arg8[%c0_15, %c0_16, %c0_17] : memref<2x1x16xf32, #tpu.memory_space<vmem>>, vector<1x1x16xf32>
    %24 = vector.shape_cast %23 : vector<1x1x16xf32> to vector<1x16xf32>
    %cst_18 = arith.constant dense<0.000000e+00> : vector<8x16xf32>
    %25 = tpu.matmul %10, %18, %cst_18 {dimension_numbers = #tpu.dot_dimension_numbers<[1], [0], [0], [1], [0, 0, 1, 1], [], []>} : vector<8x16xf32>, vector<16x16xf32>, vector<8x16xf32> -> vector<8x16xf32>
    %cst_19 = arith.constant dense<0.000000e+00> : vector<8x16xf32>
    %26 = tpu.matmul %9, %20, %cst_19 {dimension_numbers = #tpu.dot_dimension_numbers<[1], [0], [0], [1], [0, 0, 1, 1], [], []>} : vector<8x16xf32>, vector<16x16xf32>, vector<8x16xf32> -> vector<8x16xf32>
    %27 = vector.shape_cast %25 : vector<8x16xf32> to vector<1x8x16xf32>
    %28 = vector.shape_cast %26 : vector<8x16xf32> to vector<8x1x16xf32>
    %29 = vector.broadcast %27 : vector<1x8x16xf32> to vector<8x8x16xf32>
    %30 = vector.broadcast %28 : vector<8x1x16xf32> to vector<8x8x16xf32>
    %31 = arith.addf %29, %30 : vector<8x8x16xf32>
    %32 = vector.shape_cast %22 : vector<1x16xf32> to vector<1x1x16xf32>
    %33 = vector.broadcast %32 : vector<1x1x16xf32> to vector<8x8x16xf32>
    %34 = arith.addf %31, %33 : vector<8x8x16xf32>
    %35 = math.tanh %34 : vector<8x8x16xf32>
    %36 = vector.shape_cast %24 : vector<1x16xf32> to vector<1x1x16xf32>
    %37 = vector.broadcast %36 : vector<1x1x16xf32> to vector<8x8x16xf32>
    %38 = arith.mulf %35, %37 : vector<8x8x16xf32>
    %cst_20 = arith.constant dense<0.000000e+00> : vector<8x8xf32>
    %39 = vector.multi_reduction <add>, %38, %cst_20 [2] : vector<8x8x16xf32> to vector<8x8xf32>
    %40 = arith.mulf %16, %39 : vector<8x8xf32>
    %cst_21 = arith.constant dense<0xFF800000> : vector<8xf32>
    %41 = vector.multi_reduction <maximumf>, %40, %cst_21 [1] : vector<8x8xf32> to vector<8xf32>
    %42 = vector.shape_cast %41 : vector<8xf32> to vector<8x1xf32>
    %43 = vector.broadcast %42 : vector<8x1xf32> to vector<8x8xf32>
    %44 = arith.subf %40, %43 : vector<8x8xf32>
    %45 = math.exp %44 : vector<8x8xf32>
    %cst_22 = arith.constant dense<0.000000e+00> : vector<8xf32>
    %46 = vector.multi_reduction <add>, %45, %cst_22 [1] : vector<8x8xf32> to vector<8xf32>
    %47 = vector.shape_cast %46 : vector<8xf32> to vector<8x1xf32>
    %48 = vector.broadcast %47 : vector<8x1xf32> to vector<8x8xf32>
    %49 = arith.divf %45, %48 : vector<8x8xf32>
    %cst_23 = arith.constant dense<0.000000e+00> : vector<8x16xf32>
    %50 = tpu.matmul %49, %10, %cst_23 {dimension_numbers = #tpu.dot_dimension_numbers<[1], [0], [0], [1], [0, 0, 1, 1], [], []>} : vector<8x8xf32>, vector<8x16xf32>, vector<8x16xf32> -> vector<8x16xf32>
    %c1 = arith.constant 1 : index
    %c0_24 = arith.constant 0 : index
    %c0_25 = arith.constant 0 : index
    %51 = vector.load %arg5[%c1, %c0_24, %c0_25] : memref<2x16x16xf32, #tpu.memory_space<vmem>>, vector<1x16x16xf32>
    %52 = vector.shape_cast %51 : vector<1x16x16xf32> to vector<16x16xf32>
    %c1_26 = arith.constant 1 : index
    %c0_27 = arith.constant 0 : index
    %c0_28 = arith.constant 0 : index
    %53 = vector.load %arg6[%c1_26, %c0_27, %c0_28] : memref<2x16x16xf32, #tpu.memory_space<vmem>>, vector<1x16x16xf32>
    %54 = vector.shape_cast %53 : vector<1x16x16xf32> to vector<16x16xf32>
    %c1_29 = arith.constant 1 : index
    %c0_30 = arith.constant 0 : index
    %c0_31 = arith.constant 0 : index
    %55 = vector.load %arg7[%c1_29, %c0_30, %c0_31] : memref<2x1x16xf32, #tpu.memory_space<vmem>>, vector<1x1x16xf32>
    %56 = vector.shape_cast %55 : vector<1x1x16xf32> to vector<1x16xf32>
    %c1_32 = arith.constant 1 : index
    %c0_33 = arith.constant 0 : index
    %c0_34 = arith.constant 0 : index
    %57 = vector.load %arg8[%c1_32, %c0_33, %c0_34] : memref<2x1x16xf32, #tpu.memory_space<vmem>>, vector<1x1x16xf32>
    %58 = vector.shape_cast %57 : vector<1x1x16xf32> to vector<1x16xf32>
    %cst_35 = arith.constant dense<0.000000e+00> : vector<8x16xf32>
    %59 = tpu.matmul %11, %52, %cst_35 {dimension_numbers = #tpu.dot_dimension_numbers<[1], [0], [0], [1], [0, 0, 1, 1], [], []>} : vector<8x16xf32>, vector<16x16xf32>, vector<8x16xf32> -> vector<8x16xf32>
    %cst_36 = arith.constant dense<0.000000e+00> : vector<8x16xf32>
    %60 = tpu.matmul %9, %54, %cst_36 {dimension_numbers = #tpu.dot_dimension_numbers<[1], [0], [0], [1], [0, 0, 1, 1], [], []>} : vector<8x16xf32>, vector<16x16xf32>, vector<8x16xf32> -> vector<8x16xf32>
    %61 = vector.shape_cast %59 : vector<8x16xf32> to vector<1x8x16xf32>
    %62 = vector.shape_cast %60 : vector<8x16xf32> to vector<8x1x16xf32>
    %63 = vector.broadcast %61 : vector<1x8x16xf32> to vector<8x8x16xf32>
    %64 = vector.broadcast %62 : vector<8x1x16xf32> to vector<8x8x16xf32>
    %65 = arith.addf %63, %64 : vector<8x8x16xf32>
    %66 = vector.shape_cast %56 : vector<1x16xf32> to vector<1x1x16xf32>
    %67 = vector.broadcast %66 : vector<1x1x16xf32> to vector<8x8x16xf32>
    %68 = arith.addf %65, %67 : vector<8x8x16xf32>
    %69 = math.tanh %68 : vector<8x8x16xf32>
    %70 = vector.shape_cast %58 : vector<1x16xf32> to vector<1x1x16xf32>
    %71 = vector.broadcast %70 : vector<1x1x16xf32> to vector<8x8x16xf32>
    %72 = arith.mulf %69, %71 : vector<8x8x16xf32>
    %cst_37 = arith.constant dense<0.000000e+00> : vector<8x8xf32>
    %73 = vector.multi_reduction <add>, %72, %cst_37 [2] : vector<8x8x16xf32> to vector<8x8xf32>
    %74 = arith.mulf %16, %73 : vector<8x8xf32>
    %cst_38 = arith.constant dense<0xFF800000> : vector<8xf32>
    %75 = vector.multi_reduction <maximumf>, %74, %cst_38 [1] : vector<8x8xf32> to vector<8xf32>
    %76 = vector.shape_cast %75 : vector<8xf32> to vector<8x1xf32>
    %77 = vector.broadcast %76 : vector<8x1xf32> to vector<8x8xf32>
    %78 = arith.subf %74, %77 : vector<8x8xf32>
    %79 = math.exp %78 : vector<8x8xf32>
    %cst_39 = arith.constant dense<0.000000e+00> : vector<8xf32>
    %80 = vector.multi_reduction <add>, %79, %cst_39 [1] : vector<8x8xf32> to vector<8xf32>
    %81 = vector.shape_cast %80 : vector<8xf32> to vector<8x1xf32>
    %82 = vector.broadcast %81 : vector<8x1xf32> to vector<8x8xf32>
    %83 = arith.divf %79, %82 : vector<8x8xf32>
    %cst_40 = arith.constant dense<0.000000e+00> : vector<8x16xf32>
    %84 = tpu.matmul %83, %11, %cst_40 {dimension_numbers = #tpu.dot_dimension_numbers<[1], [0], [0], [1], [0, 0, 1, 1], [], []>} : vector<8x8xf32>, vector<8x16xf32>, vector<8x16xf32> -> vector<8x16xf32>
    %c0_41 = arith.constant 0 : index
    %c0_42 = arith.constant 0 : index
    %c0_43 = arith.constant 0 : index
    %85 = vector.load %arg9[%c0_41, %c0_42, %c0_43] : memref<4x16x48xf32, #tpu.memory_space<vmem>>, vector<1x16x48xf32>
    %86 = vector.shape_cast %85 : vector<1x16x48xf32> to vector<16x48xf32>
    %cst_44 = arith.constant dense<0.000000e+00> : vector<8x48xf32>
    %87 = tpu.matmul %9, %86, %cst_44 {dimension_numbers = #tpu.dot_dimension_numbers<[1], [0], [0], [1], [0, 0, 1, 1], [], []>} : vector<8x16xf32>, vector<16x48xf32>, vector<8x48xf32> -> vector<8x48xf32>
    %c0_45 = arith.constant 0 : index
    %c0_46 = arith.constant 0 : index
    %c0_47 = arith.constant 0 : index
    %88 = vector.load %arg10[%c0_45, %c0_46, %c0_47] : memref<4x16x48xf32, #tpu.memory_space<vmem>>, vector<1x16x48xf32>
    %89 = vector.shape_cast %88 : vector<1x16x48xf32> to vector<16x48xf32>
    %cst_48 = arith.constant dense<0.000000e+00> : vector<8x48xf32>
    %90 = tpu.matmul %50, %89, %cst_48 {dimension_numbers = #tpu.dot_dimension_numbers<[1], [0], [0], [1], [0, 0, 1, 1], [], []>} : vector<8x16xf32>, vector<16x48xf32>, vector<8x48xf32> -> vector<8x48xf32>
    %91 = arith.addf %87, %90 : vector<8x48xf32>
    %c0_49 = arith.constant 0 : index
    %c0_50 = arith.constant 0 : index
    %c0_51 = arith.constant 0 : index
    %92 = vector.load %arg11[%c0_49, %c0_50, %c0_51] : memref<4x16x48xf32, #tpu.memory_space<vmem>>, vector<1x16x48xf32>
    %93 = vector.shape_cast %92 : vector<1x16x48xf32> to vector<16x48xf32>
    %cst_52 = arith.constant dense<0.000000e+00> : vector<8x48xf32>
    %94 = tpu.matmul %84, %93, %cst_52 {dimension_numbers = #tpu.dot_dimension_numbers<[1], [0], [0], [1], [0, 0, 1, 1], [], []>} : vector<8x16xf32>, vector<16x48xf32>, vector<8x48xf32> -> vector<8x48xf32>
    %95 = arith.addf %91, %94 : vector<8x48xf32>
    %c0_53 = arith.constant 0 : index
    %c0_54 = arith.constant 0 : index
    %c0_55 = arith.constant 0 : index
    %96 = vector.load %arg13[%c0_53, %c0_54, %c0_55] : memref<4x1x48xf32, #tpu.memory_space<vmem>>, vector<1x1x48xf32>
    %97 = vector.shape_cast %96 : vector<1x1x48xf32> to vector<1x48xf32>
    %98 = vector.broadcast %97 : vector<1x48xf32> to vector<8x48xf32>
    %99 = arith.addf %95, %98 : vector<8x48xf32>
    %c1_56 = arith.constant 1 : index
    %c0_57 = arith.constant 0 : index
    %c0_58 = arith.constant 0 : index
    %100 = vector.load %arg9[%c1_56, %c0_57, %c0_58] : memref<4x16x48xf32, #tpu.memory_space<vmem>>, vector<1x16x48xf32>
    %101 = vector.shape_cast %100 : vector<1x16x48xf32> to vector<16x48xf32>
    %cst_59 = arith.constant dense<0.000000e+00> : vector<8x48xf32>
    %102 = tpu.matmul %9, %101, %cst_59 {dimension_numbers = #tpu.dot_dimension_numbers<[1], [0], [0], [1], [0, 0, 1, 1], [], []>} : vector<8x16xf32>, vector<16x48xf32>, vector<8x48xf32> -> vector<8x48xf32>
    %c1_60 = arith.constant 1 : index
    %c0_61 = arith.constant 0 : index
    %c0_62 = arith.constant 0 : index
    %103 = vector.load %arg10[%c1_60, %c0_61, %c0_62] : memref<4x16x48xf32, #tpu.memory_space<vmem>>, vector<1x16x48xf32>
    %104 = vector.shape_cast %103 : vector<1x16x48xf32> to vector<16x48xf32>
    %cst_63 = arith.constant dense<0.000000e+00> : vector<8x48xf32>
    %105 = tpu.matmul %50, %104, %cst_63 {dimension_numbers = #tpu.dot_dimension_numbers<[1], [0], [0], [1], [0, 0, 1, 1], [], []>} : vector<8x16xf32>, vector<16x48xf32>, vector<8x48xf32> -> vector<8x48xf32>
    %106 = arith.addf %102, %105 : vector<8x48xf32>
    %c1_64 = arith.constant 1 : index
    %c0_65 = arith.constant 0 : index
    %c0_66 = arith.constant 0 : index
    %107 = vector.load %arg11[%c1_64, %c0_65, %c0_66] : memref<4x16x48xf32, #tpu.memory_space<vmem>>, vector<1x16x48xf32>
    %108 = vector.shape_cast %107 : vector<1x16x48xf32> to vector<16x48xf32>
    %cst_67 = arith.constant dense<0.000000e+00> : vector<8x48xf32>
    %109 = tpu.matmul %84, %108, %cst_67 {dimension_numbers = #tpu.dot_dimension_numbers<[1], [0], [0], [1], [0, 0, 1, 1], [], []>} : vector<8x16xf32>, vector<16x48xf32>, vector<8x48xf32> -> vector<8x48xf32>
    %110 = arith.addf %106, %109 : vector<8x48xf32>
    %c1_68 = arith.constant 1 : index
    %c0_69 = arith.constant 0 : index
    %c0_70 = arith.constant 0 : index
    %111 = vector.load %arg13[%c1_68, %c0_69, %c0_70] : memref<4x1x48xf32, #tpu.memory_space<vmem>>, vector<1x1x48xf32>
    %112 = vector.shape_cast %111 : vector<1x1x48xf32> to vector<1x48xf32>
    %113 = vector.broadcast %112 : vector<1x48xf32> to vector<8x48xf32>
    %114 = arith.addf %110, %113 : vector<8x48xf32>
    %c2 = arith.constant 2 : index
    %c0_71 = arith.constant 0 : index
    %c0_72 = arith.constant 0 : index
    %115 = vector.load %arg9[%c2, %c0_71, %c0_72] : memref<4x16x48xf32, #tpu.memory_space<vmem>>, vector<1x16x48xf32>
    %116 = vector.shape_cast %115 : vector<1x16x48xf32> to vector<16x48xf32>
    %cst_73 = arith.constant dense<0.000000e+00> : vector<8x48xf32>
    %117 = tpu.matmul %9, %116, %cst_73 {dimension_numbers = #tpu.dot_dimension_numbers<[1], [0], [0], [1], [0, 0, 1, 1], [], []>} : vector<8x16xf32>, vector<16x48xf32>, vector<8x48xf32> -> vector<8x48xf32>
    %c2_74 = arith.constant 2 : index
    %c0_75 = arith.constant 0 : index
    %c0_76 = arith.constant 0 : index
    %118 = vector.load %arg10[%c2_74, %c0_75, %c0_76] : memref<4x16x48xf32, #tpu.memory_space<vmem>>, vector<1x16x48xf32>
    %119 = vector.shape_cast %118 : vector<1x16x48xf32> to vector<16x48xf32>
    %cst_77 = arith.constant dense<0.000000e+00> : vector<8x48xf32>
    %120 = tpu.matmul %50, %119, %cst_77 {dimension_numbers = #tpu.dot_dimension_numbers<[1], [0], [0], [1], [0, 0, 1, 1], [], []>} : vector<8x16xf32>, vector<16x48xf32>, vector<8x48xf32> -> vector<8x48xf32>
    %121 = arith.addf %117, %120 : vector<8x48xf32>
    %c2_78 = arith.constant 2 : index
    %c0_79 = arith.constant 0 : index
    %c0_80 = arith.constant 0 : index
    %122 = vector.load %arg11[%c2_78, %c0_79, %c0_80] : memref<4x16x48xf32, #tpu.memory_space<vmem>>, vector<1x16x48xf32>
    %123 = vector.shape_cast %122 : vector<1x16x48xf32> to vector<16x48xf32>
    %cst_81 = arith.constant dense<0.000000e+00> : vector<8x48xf32>
    %124 = tpu.matmul %84, %123, %cst_81 {dimension_numbers = #tpu.dot_dimension_numbers<[1], [0], [0], [1], [0, 0, 1, 1], [], []>} : vector<8x16xf32>, vector<16x48xf32>, vector<8x48xf32> -> vector<8x48xf32>
    %125 = arith.addf %121, %124 : vector<8x48xf32>
    %c2_82 = arith.constant 2 : index
    %c0_83 = arith.constant 0 : index
    %c0_84 = arith.constant 0 : index
    %126 = vector.load %arg13[%c2_82, %c0_83, %c0_84] : memref<4x1x48xf32, #tpu.memory_space<vmem>>, vector<1x1x48xf32>
    %127 = vector.shape_cast %126 : vector<1x1x48xf32> to vector<1x48xf32>
    %128 = vector.broadcast %127 : vector<1x48xf32> to vector<8x48xf32>
    %129 = arith.addf %125, %128 : vector<8x48xf32>
    %c3 = arith.constant 3 : index
    %c0_85 = arith.constant 0 : index
    %c0_86 = arith.constant 0 : index
    %130 = vector.load %arg9[%c3, %c0_85, %c0_86] : memref<4x16x48xf32, #tpu.memory_space<vmem>>, vector<1x16x48xf32>
    %131 = vector.shape_cast %130 : vector<1x16x48xf32> to vector<16x48xf32>
    %cst_87 = arith.constant dense<0.000000e+00> : vector<8x48xf32>
    %132 = tpu.matmul %9, %131, %cst_87 {dimension_numbers = #tpu.dot_dimension_numbers<[1], [0], [0], [1], [0, 0, 1, 1], [], []>} : vector<8x16xf32>, vector<16x48xf32>, vector<8x48xf32> -> vector<8x48xf32>
    %c3_88 = arith.constant 3 : index
    %c0_89 = arith.constant 0 : index
    %c0_90 = arith.constant 0 : index
    %133 = vector.load %arg10[%c3_88, %c0_89, %c0_90] : memref<4x16x48xf32, #tpu.memory_space<vmem>>, vector<1x16x48xf32>
    %134 = vector.shape_cast %133 : vector<1x16x48xf32> to vector<16x48xf32>
    %cst_91 = arith.constant dense<0.000000e+00> : vector<8x48xf32>
    %135 = tpu.matmul %50, %134, %cst_91 {dimension_numbers = #tpu.dot_dimension_numbers<[1], [0], [0], [1], [0, 0, 1, 1], [], []>} : vector<8x16xf32>, vector<16x48xf32>, vector<8x48xf32> -> vector<8x48xf32>
    %136 = arith.addf %132, %135 : vector<8x48xf32>
    %c3_92 = arith.constant 3 : index
    %c0_93 = arith.constant 0 : index
    %c0_94 = arith.constant 0 : index
    %137 = vector.load %arg11[%c3_92, %c0_93, %c0_94] : memref<4x16x48xf32, #tpu.memory_space<vmem>>, vector<1x16x48xf32>
    %138 = vector.shape_cast %137 : vector<1x16x48xf32> to vector<16x48xf32>
    %cst_95 = arith.constant dense<0.000000e+00> : vector<8x48xf32>
    %139 = tpu.matmul %84, %138, %cst_95 {dimension_numbers = #tpu.dot_dimension_numbers<[1], [0], [0], [1], [0, 0, 1, 1], [], []>} : vector<8x16xf32>, vector<16x48xf32>, vector<8x48xf32> -> vector<8x48xf32>
    %140 = arith.addf %136, %139 : vector<8x48xf32>
    %c3_96 = arith.constant 3 : index
    %c0_97 = arith.constant 0 : index
    %c0_98 = arith.constant 0 : index
    %141 = vector.load %arg13[%c3_96, %c0_97, %c0_98] : memref<4x1x48xf32, #tpu.memory_space<vmem>>, vector<1x1x48xf32>
    %142 = vector.shape_cast %141 : vector<1x1x48xf32> to vector<1x48xf32>
    %143 = vector.broadcast %142 : vector<1x48xf32> to vector<8x48xf32>
    %144 = arith.addf %140, %143 : vector<8x48xf32>
    %cst_99 = arith.constant 0.000000e+00 : f32
    %145 = vector.broadcast %cst_99 : f32 to vector<1x48xf32>
    %cst_100 = arith.constant 0.000000e+00 : f32
    %146 = vector.broadcast %cst_100 : f32 to vector<1x48xf32>
    %147 = vector.extract_strided_slice %99 {offsets = [0, 0], sizes = [1, 48], strides = [1, 1]} : vector<8x48xf32> to vector<1x48xf32>
    %c0_101 = arith.constant 0 : index
    %c0_102 = arith.constant 0 : index
    %c0_103 = arith.constant 0 : index
    %148 = vector.load %arg12[%c0_101, %c0_102, %c0_103] : memref<4x48x48xf32, #tpu.memory_space<vmem>>, vector<1x48x48xf32>
    %149 = vector.shape_cast %148 : vector<1x48x48xf32> to vector<48x48xf32>
    %cst_104 = arith.constant dense<0.000000e+00> : vector<1x48xf32>
    %150 = tpu.matmul %145, %149, %cst_104 {dimension_numbers = #tpu.dot_dimension_numbers<[1], [0], [0], [1], [0, 0, 1, 1], [], []>} : vector<1x48xf32>, vector<48x48xf32>, vector<1x48xf32> -> vector<1x48xf32>
    %151 = arith.addf %147, %150 : vector<1x48xf32>
    %152 = arith.negf %151 : vector<1x48xf32>
    %153 = math.exp %152 : vector<1x48xf32>
    %cst_105 = arith.constant 1.000000e+00 : f32
    %154 = vector.broadcast %cst_105 : f32 to vector<1x48xf32>
    %155 = arith.addf %154, %153 : vector<1x48xf32>
    %156 = arith.divf %154, %155 : vector<1x48xf32>
    %157 = vector.extract_strided_slice %114 {offsets = [0, 0], sizes = [1, 48], strides = [1, 1]} : vector<8x48xf32> to vector<1x48xf32>
    %c1_106 = arith.constant 1 : index
    %c0_107 = arith.constant 0 : index
    %c0_108 = arith.constant 0 : index
    %158 = vector.load %arg12[%c1_106, %c0_107, %c0_108] : memref<4x48x48xf32, #tpu.memory_space<vmem>>, vector<1x48x48xf32>
    %159 = vector.shape_cast %158 : vector<1x48x48xf32> to vector<48x48xf32>
    %cst_109 = arith.constant dense<0.000000e+00> : vector<1x48xf32>
    %160 = tpu.matmul %145, %159, %cst_109 {dimension_numbers = #tpu.dot_dimension_numbers<[1], [0], [0], [1], [0, 0, 1, 1], [], []>} : vector<1x48xf32>, vector<48x48xf32>, vector<1x48xf32> -> vector<1x48xf32>
    %161 = arith.addf %157, %160 : vector<1x48xf32>
    %162 = arith.negf %161 : vector<1x48xf32>
    %163 = math.exp %162 : vector<1x48xf32>
    %cst_110 = arith.constant 1.000000e+00 : f32
    %164 = vector.broadcast %cst_110 : f32 to vector<1x48xf32>
    %165 = arith.addf %164, %163 : vector<1x48xf32>
    %166 = arith.divf %164, %165 : vector<1x48xf32>
    %167 = vector.extract_strided_slice %129 {offsets = [0, 0], sizes = [1, 48], strides = [1, 1]} : vector<8x48xf32> to vector<1x48xf32>
    %c2_111 = arith.constant 2 : index
    %c0_112 = arith.constant 0 : index
    %c0_113 = arith.constant 0 : index
    %168 = vector.load %arg12[%c2_111, %c0_112, %c0_113] : memref<4x48x48xf32, #tpu.memory_space<vmem>>, vector<1x48x48xf32>
    %169 = vector.shape_cast %168 : vector<1x48x48xf32> to vector<48x48xf32>
    %cst_114 = arith.constant dense<0.000000e+00> : vector<1x48xf32>
    %170 = tpu.matmul %145, %169, %cst_114 {dimension_numbers = #tpu.dot_dimension_numbers<[1], [0], [0], [1], [0, 0, 1, 1], [], []>} : vector<1x48xf32>, vector<48x48xf32>, vector<1x48xf32> -> vector<1x48xf32>
    %171 = arith.addf %167, %170 : vector<1x48xf32>
    %172 = math.tanh %171 : vector<1x48xf32>
    %173 = vector.extract_strided_slice %144 {offsets = [0, 0], sizes = [1, 48], strides = [1, 1]} : vector<8x48xf32> to vector<1x48xf32>
    %c3_115 = arith.constant 3 : index
    %c0_116 = arith.constant 0 : index
    %c0_117 = arith.constant 0 : index
    %174 = vector.load %arg12[%c3_115, %c0_116, %c0_117] : memref<4x48x48xf32, #tpu.memory_space<vmem>>, vector<1x48x48xf32>
    %175 = vector.shape_cast %174 : vector<1x48x48xf32> to vector<48x48xf32>
    %cst_118 = arith.constant dense<0.000000e+00> : vector<1x48xf32>
    %176 = tpu.matmul %145, %175, %cst_118 {dimension_numbers = #tpu.dot_dimension_numbers<[1], [0], [0], [1], [0, 0, 1, 1], [], []>} : vector<1x48xf32>, vector<48x48xf32>, vector<1x48xf32> -> vector<1x48xf32>
    %177 = arith.addf %173, %176 : vector<1x48xf32>
    %178 = arith.negf %177 : vector<1x48xf32>
    %179 = math.exp %178 : vector<1x48xf32>
    %cst_119 = arith.constant 1.000000e+00 : f32
    %180 = vector.broadcast %cst_119 : f32 to vector<1x48xf32>
    %181 = arith.addf %180, %179 : vector<1x48xf32>
    %182 = arith.divf %180, %181 : vector<1x48xf32>
    %183 = arith.mulf %166, %146 : vector<1x48xf32>
    %184 = arith.mulf %156, %172 : vector<1x48xf32>
    %185 = arith.addf %183, %184 : vector<1x48xf32>
    %186 = math.tanh %185 : vector<1x48xf32>
    %187 = arith.mulf %182, %186 : vector<1x48xf32>
    %c0_i32 = arith.constant 0 : i32
    %188 = arith.cmpi sgt, %1, %c0_i32 : i32
    %189 = arith.extui %188 : i1 to i32
    %190 = arith.sitofp %189 : i32 to f32
    %191 = vector.broadcast %190 : f32 to vector<1x48xf32>
    %192 = arith.mulf %191, %187 : vector<1x48xf32>
    %193 = vector.broadcast %190 : f32 to vector<1x48xf32>
    %194 = arith.mulf %193, %187 : vector<1x48xf32>
    %cst_120 = arith.constant 1.000000e+00 : f32
    %195 = arith.subf %cst_120, %190 : f32
    %196 = vector.broadcast %195 : f32 to vector<1x48xf32>
    %197 = arith.mulf %196, %145 : vector<1x48xf32>
    %198 = arith.addf %194, %197 : vector<1x48xf32>
    %199 = vector.broadcast %190 : f32 to vector<1x48xf32>
    %200 = arith.mulf %199, %185 : vector<1x48xf32>
    %cst_121 = arith.constant 1.000000e+00 : f32
    %201 = arith.subf %cst_121, %190 : f32
    %202 = vector.broadcast %201 : f32 to vector<1x48xf32>
    %203 = arith.mulf %202, %146 : vector<1x48xf32>
    %204 = arith.addf %200, %203 : vector<1x48xf32>
    %205 = vector.extract_strided_slice %99 {offsets = [1, 0], sizes = [1, 48], strides = [1, 1]} : vector<8x48xf32> to vector<1x48xf32>
    %c0_122 = arith.constant 0 : index
    %c0_123 = arith.constant 0 : index
    %c0_124 = arith.constant 0 : index
    %206 = vector.load %arg12[%c0_122, %c0_123, %c0_124] : memref<4x48x48xf32, #tpu.memory_space<vmem>>, vector<1x48x48xf32>
    %207 = vector.shape_cast %206 : vector<1x48x48xf32> to vector<48x48xf32>
    %cst_125 = arith.constant dense<0.000000e+00> : vector<1x48xf32>
    %208 = tpu.matmul %198, %207, %cst_125 {dimension_numbers = #tpu.dot_dimension_numbers<[1], [0], [0], [1], [0, 0, 1, 1], [], []>} : vector<1x48xf32>, vector<48x48xf32>, vector<1x48xf32> -> vector<1x48xf32>
    %209 = arith.addf %205, %208 : vector<1x48xf32>
    %210 = arith.negf %209 : vector<1x48xf32>
    %211 = math.exp %210 : vector<1x48xf32>
    %cst_126 = arith.constant 1.000000e+00 : f32
    %212 = vector.broadcast %cst_126 : f32 to vector<1x48xf32>
    %213 = arith.addf %212, %211 : vector<1x48xf32>
    %214 = arith.divf %212, %213 : vector<1x48xf32>
    %215 = vector.extract_strided_slice %114 {offsets = [1, 0], sizes = [1, 48], strides = [1, 1]} : vector<8x48xf32> to vector<1x48xf32>
    %c1_127 = arith.constant 1 : index
    %c0_128 = arith.constant 0 : index
    %c0_129 = arith.constant 0 : index
    %216 = vector.load %arg12[%c1_127, %c0_128, %c0_129] : memref<4x48x48xf32, #tpu.memory_space<vmem>>, vector<1x48x48xf32>
    %217 = vector.shape_cast %216 : vector<1x48x48xf32> to vector<48x48xf32>
    %cst_130 = arith.constant dense<0.000000e+00> : vector<1x48xf32>
    %218 = tpu.matmul %198, %217, %cst_130 {dimension_numbers = #tpu.dot_dimension_numbers<[1], [0], [0], [1], [0, 0, 1, 1], [], []>} : vector<1x48xf32>, vector<48x48xf32>, vector<1x48xf32> -> vector<1x48xf32>
    %219 = arith.addf %215, %218 : vector<1x48xf32>
    %220 = arith.negf %219 : vector<1x48xf32>
    %221 = math.exp %220 : vector<1x48xf32>
    %cst_131 = arith.constant 1.000000e+00 : f32
    %222 = vector.broadcast %cst_131 : f32 to vector<1x48xf32>
    %223 = arith.addf %222, %221 : vector<1x48xf32>
    %224 = arith.divf %222, %223 : vector<1x48xf32>
    %225 = vector.extract_strided_slice %129 {offsets = [1, 0], sizes = [1, 48], strides = [1, 1]} : vector<8x48xf32> to vector<1x48xf32>
    %c2_132 = arith.constant 2 : index
    %c0_133 = arith.constant 0 : index
    %c0_134 = arith.constant 0 : index
    %226 = vector.load %arg12[%c2_132, %c0_133, %c0_134] : memref<4x48x48xf32, #tpu.memory_space<vmem>>, vector<1x48x48xf32>
    %227 = vector.shape_cast %226 : vector<1x48x48xf32> to vector<48x48xf32>
    %cst_135 = arith.constant dense<0.000000e+00> : vector<1x48xf32>
    %228 = tpu.matmul %198, %227, %cst_135 {dimension_numbers = #tpu.dot_dimension_numbers<[1], [0], [0], [1], [0, 0, 1, 1], [], []>} : vector<1x48xf32>, vector<48x48xf32>, vector<1x48xf32> -> vector<1x48xf32>
    %229 = arith.addf %225, %228 : vector<1x48xf32>
    %230 = math.tanh %229 : vector<1x48xf32>
    %231 = vector.extract_strided_slice %144 {offsets = [1, 0], sizes = [1, 48], strides = [1, 1]} : vector<8x48xf32> to vector<1x48xf32>
    %c3_136 = arith.constant 3 : index
    %c0_137 = arith.constant 0 : index
    %c0_138 = arith.constant 0 : index
    %232 = vector.load %arg12[%c3_136, %c0_137, %c0_138] : memref<4x48x48xf32, #tpu.memory_space<vmem>>, vector<1x48x48xf32>
    %233 = vector.shape_cast %232 : vector<1x48x48xf32> to vector<48x48xf32>
    %cst_139 = arith.constant dense<0.000000e+00> : vector<1x48xf32>
    %234 = tpu.matmul %198, %233, %cst_139 {dimension_numbers = #tpu.dot_dimension_numbers<[1], [0], [0], [1], [0, 0, 1, 1], [], []>} : vector<1x48xf32>, vector<48x48xf32>, vector<1x48xf32> -> vector<1x48xf32>
    %235 = arith.addf %231, %234 : vector<1x48xf32>
    %236 = arith.negf %235 : vector<1x48xf32>
    %237 = math.exp %236 : vector<1x48xf32>
    %cst_140 = arith.constant 1.000000e+00 : f32
    %238 = vector.broadcast %cst_140 : f32 to vector<1x48xf32>
    %239 = arith.addf %238, %237 : vector<1x48xf32>
    %240 = arith.divf %238, %239 : vector<1x48xf32>
    %241 = arith.mulf %224, %204 : vector<1x48xf32>
    %242 = arith.mulf %214, %230 : vector<1x48xf32>
    %243 = arith.addf %241, %242 : vector<1x48xf32>
    %244 = math.tanh %243 : vector<1x48xf32>
    %245 = arith.mulf %240, %244 : vector<1x48xf32>
    %c1_i32 = arith.constant 1 : i32
    %246 = arith.cmpi sgt, %1, %c1_i32 : i32
    %247 = arith.extui %246 : i1 to i32
    %248 = arith.sitofp %247 : i32 to f32
    %249 = vector.broadcast %248 : f32 to vector<1x48xf32>
    %250 = arith.mulf %249, %245 : vector<1x48xf32>
    %251 = vector.broadcast %248 : f32 to vector<1x48xf32>
    %252 = arith.mulf %251, %245 : vector<1x48xf32>
    %cst_141 = arith.constant 1.000000e+00 : f32
    %253 = arith.subf %cst_141, %248 : f32
    %254 = vector.broadcast %253 : f32 to vector<1x48xf32>
    %255 = arith.mulf %254, %198 : vector<1x48xf32>
    %256 = arith.addf %252, %255 : vector<1x48xf32>
    %257 = vector.broadcast %248 : f32 to vector<1x48xf32>
    %258 = arith.mulf %257, %243 : vector<1x48xf32>
    %cst_142 = arith.constant 1.000000e+00 : f32
    %259 = arith.subf %cst_142, %248 : f32
    %260 = vector.broadcast %259 : f32 to vector<1x48xf32>
    %261 = arith.mulf %260, %204 : vector<1x48xf32>
    %262 = arith.addf %258, %261 : vector<1x48xf32>
    %263 = vector.extract_strided_slice %99 {offsets = [2, 0], sizes = [1, 48], strides = [1, 1]} : vector<8x48xf32> to vector<1x48xf32>
    %c0_143 = arith.constant 0 : index
    %c0_144 = arith.constant 0 : index
    %c0_145 = arith.constant 0 : index
    %264 = vector.load %arg12[%c0_143, %c0_144, %c0_145] : memref<4x48x48xf32, #tpu.memory_space<vmem>>, vector<1x48x48xf32>
    %265 = vector.shape_cast %264 : vector<1x48x48xf32> to vector<48x48xf32>
    %cst_146 = arith.constant dense<0.000000e+00> : vector<1x48xf32>
    %266 = tpu.matmul %256, %265, %cst_146 {dimension_numbers = #tpu.dot_dimension_numbers<[1], [0], [0], [1], [0, 0, 1, 1], [], []>} : vector<1x48xf32>, vector<48x48xf32>, vector<1x48xf32> -> vector<1x48xf32>
    %267 = arith.addf %263, %266 : vector<1x48xf32>
    %268 = arith.negf %267 : vector<1x48xf32>
    %269 = math.exp %268 : vector<1x48xf32>
    %cst_147 = arith.constant 1.000000e+00 : f32
    %270 = vector.broadcast %cst_147 : f32 to vector<1x48xf32>
    %271 = arith.addf %270, %269 : vector<1x48xf32>
    %272 = arith.divf %270, %271 : vector<1x48xf32>
    %273 = vector.extract_strided_slice %114 {offsets = [2, 0], sizes = [1, 48], strides = [1, 1]} : vector<8x48xf32> to vector<1x48xf32>
    %c1_148 = arith.constant 1 : index
    %c0_149 = arith.constant 0 : index
    %c0_150 = arith.constant 0 : index
    %274 = vector.load %arg12[%c1_148, %c0_149, %c0_150] : memref<4x48x48xf32, #tpu.memory_space<vmem>>, vector<1x48x48xf32>
    %275 = vector.shape_cast %274 : vector<1x48x48xf32> to vector<48x48xf32>
    %cst_151 = arith.constant dense<0.000000e+00> : vector<1x48xf32>
    %276 = tpu.matmul %256, %275, %cst_151 {dimension_numbers = #tpu.dot_dimension_numbers<[1], [0], [0], [1], [0, 0, 1, 1], [], []>} : vector<1x48xf32>, vector<48x48xf32>, vector<1x48xf32> -> vector<1x48xf32>
    %277 = arith.addf %273, %276 : vector<1x48xf32>
    %278 = arith.negf %277 : vector<1x48xf32>
    %279 = math.exp %278 : vector<1x48xf32>
    %cst_152 = arith.constant 1.000000e+00 : f32
    %280 = vector.broadcast %cst_152 : f32 to vector<1x48xf32>
    %281 = arith.addf %280, %279 : vector<1x48xf32>
    %282 = arith.divf %280, %281 : vector<1x48xf32>
    %283 = vector.extract_strided_slice %129 {offsets = [2, 0], sizes = [1, 48], strides = [1, 1]} : vector<8x48xf32> to vector<1x48xf32>
    %c2_153 = arith.constant 2 : index
    %c0_154 = arith.constant 0 : index
    %c0_155 = arith.constant 0 : index
    %284 = vector.load %arg12[%c2_153, %c0_154, %c0_155] : memref<4x48x48xf32, #tpu.memory_space<vmem>>, vector<1x48x48xf32>
    %285 = vector.shape_cast %284 : vector<1x48x48xf32> to vector<48x48xf32>
    %cst_156 = arith.constant dense<0.000000e+00> : vector<1x48xf32>
    %286 = tpu.matmul %256, %285, %cst_156 {dimension_numbers = #tpu.dot_dimension_numbers<[1], [0], [0], [1], [0, 0, 1, 1], [], []>} : vector<1x48xf32>, vector<48x48xf32>, vector<1x48xf32> -> vector<1x48xf32>
    %287 = arith.addf %283, %286 : vector<1x48xf32>
    %288 = math.tanh %287 : vector<1x48xf32>
    %289 = vector.extract_strided_slice %144 {offsets = [2, 0], sizes = [1, 48], strides = [1, 1]} : vector<8x48xf32> to vector<1x48xf32>
    %c3_157 = arith.constant 3 : index
    %c0_158 = arith.constant 0 : index
    %c0_159 = arith.constant 0 : index
    %290 = vector.load %arg12[%c3_157, %c0_158, %c0_159] : memref<4x48x48xf32, #tpu.memory_space<vmem>>, vector<1x48x48xf32>
    %291 = vector.shape_cast %290 : vector<1x48x48xf32> to vector<48x48xf32>
    %cst_160 = arith.constant dense<0.000000e+00> : vector<1x48xf32>
    %292 = tpu.matmul %256, %291, %cst_160 {dimension_numbers = #tpu.dot_dimension_numbers<[1], [0], [0], [1], [0, 0, 1, 1], [], []>} : vector<1x48xf32>, vector<48x48xf32>, vector<1x48xf32> -> vector<1x48xf32>
    %293 = arith.addf %289, %292 : vector<1x48xf32>
    %294 = arith.negf %293 : vector<1x48xf32>
    %295 = math.exp %294 : vector<1x48xf32>
    %cst_161 = arith.constant 1.000000e+00 : f32
    %296 = vector.broadcast %cst_161 : f32 to vector<1x48xf32>
    %297 = arith.addf %296, %295 : vector<1x48xf32>
    %298 = arith.divf %296, %297 : vector<1x48xf32>
    %299 = arith.mulf %282, %262 : vector<1x48xf32>
    %300 = arith.mulf %272, %288 : vector<1x48xf32>
    %301 = arith.addf %299, %300 : vector<1x48xf32>
    %302 = math.tanh %301 : vector<1x48xf32>
    %303 = arith.mulf %298, %302 : vector<1x48xf32>
    %c2_i32 = arith.constant 2 : i32
    %304 = arith.cmpi sgt, %1, %c2_i32 : i32
    %305 = arith.extui %304 : i1 to i32
    %306 = arith.sitofp %305 : i32 to f32
    %307 = vector.broadcast %306 : f32 to vector<1x48xf32>
    %308 = arith.mulf %307, %303 : vector<1x48xf32>
    %309 = vector.broadcast %306 : f32 to vector<1x48xf32>
    %310 = arith.mulf %309, %303 : vector<1x48xf32>
    %cst_162 = arith.constant 1.000000e+00 : f32
    %311 = arith.subf %cst_162, %306 : f32
    %312 = vector.broadcast %311 : f32 to vector<1x48xf32>
    %313 = arith.mulf %312, %256 : vector<1x48xf32>
    %314 = arith.addf %310, %313 : vector<1x48xf32>
    %315 = vector.broadcast %306 : f32 to vector<1x48xf32>
    %316 = arith.mulf %315, %301 : vector<1x48xf32>
    %cst_163 = arith.constant 1.000000e+00 : f32
    %317 = arith.subf %cst_163, %306 : f32
    %318 = vector.broadcast %317 : f32 to vector<1x48xf32>
    %319 = arith.mulf %318, %262 : vector<1x48xf32>
    %320 = arith.addf %316, %319 : vector<1x48xf32>
    %321 = vector.extract_strided_slice %99 {offsets = [3, 0], sizes = [1, 48], strides = [1, 1]} : vector<8x48xf32> to vector<1x48xf32>
    %c0_164 = arith.constant 0 : index
    %c0_165 = arith.constant 0 : index
    %c0_166 = arith.constant 0 : index
    %322 = vector.load %arg12[%c0_164, %c0_165, %c0_166] : memref<4x48x48xf32, #tpu.memory_space<vmem>>, vector<1x48x48xf32>
    %323 = vector.shape_cast %322 : vector<1x48x48xf32> to vector<48x48xf32>
    %cst_167 = arith.constant dense<0.000000e+00> : vector<1x48xf32>
    %324 = tpu.matmul %314, %323, %cst_167 {dimension_numbers = #tpu.dot_dimension_numbers<[1], [0], [0], [1], [0, 0, 1, 1], [], []>} : vector<1x48xf32>, vector<48x48xf32>, vector<1x48xf32> -> vector<1x48xf32>
    %325 = arith.addf %321, %324 : vector<1x48xf32>
    %326 = arith.negf %325 : vector<1x48xf32>
    %327 = math.exp %326 : vector<1x48xf32>
    %cst_168 = arith.constant 1.000000e+00 : f32
    %328 = vector.broadcast %cst_168 : f32 to vector<1x48xf32>
    %329 = arith.addf %328, %327 : vector<1x48xf32>
    %330 = arith.divf %328, %329 : vector<1x48xf32>
    %331 = vector.extract_strided_slice %114 {offsets = [3, 0], sizes = [1, 48], strides = [1, 1]} : vector<8x48xf32> to vector<1x48xf32>
    %c1_169 = arith.constant 1 : index
    %c0_170 = arith.constant 0 : index
    %c0_171 = arith.constant 0 : index
    %332 = vector.load %arg12[%c1_169, %c0_170, %c0_171] : memref<4x48x48xf32, #tpu.memory_space<vmem>>, vector<1x48x48xf32>
    %333 = vector.shape_cast %332 : vector<1x48x48xf32> to vector<48x48xf32>
    %cst_172 = arith.constant dense<0.000000e+00> : vector<1x48xf32>
    %334 = tpu.matmul %314, %333, %cst_172 {dimension_numbers = #tpu.dot_dimension_numbers<[1], [0], [0], [1], [0, 0, 1, 1], [], []>} : vector<1x48xf32>, vector<48x48xf32>, vector<1x48xf32> -> vector<1x48xf32>
    %335 = arith.addf %331, %334 : vector<1x48xf32>
    %336 = arith.negf %335 : vector<1x48xf32>
    %337 = math.exp %336 : vector<1x48xf32>
    %cst_173 = arith.constant 1.000000e+00 : f32
    %338 = vector.broadcast %cst_173 : f32 to vector<1x48xf32>
    %339 = arith.addf %338, %337 : vector<1x48xf32>
    %340 = arith.divf %338, %339 : vector<1x48xf32>
    %341 = vector.extract_strided_slice %129 {offsets = [3, 0], sizes = [1, 48], strides = [1, 1]} : vector<8x48xf32> to vector<1x48xf32>
    %c2_174 = arith.constant 2 : index
    %c0_175 = arith.constant 0 : index
    %c0_176 = arith.constant 0 : index
    %342 = vector.load %arg12[%c2_174, %c0_175, %c0_176] : memref<4x48x48xf32, #tpu.memory_space<vmem>>, vector<1x48x48xf32>
    %343 = vector.shape_cast %342 : vector<1x48x48xf32> to vector<48x48xf32>
    %cst_177 = arith.constant dense<0.000000e+00> : vector<1x48xf32>
    %344 = tpu.matmul %314, %343, %cst_177 {dimension_numbers = #tpu.dot_dimension_numbers<[1], [0], [0], [1], [0, 0, 1, 1], [], []>} : vector<1x48xf32>, vector<48x48xf32>, vector<1x48xf32> -> vector<1x48xf32>
    %345 = arith.addf %341, %344 : vector<1x48xf32>
    %346 = math.tanh %345 : vector<1x48xf32>
    %347 = vector.extract_strided_slice %144 {offsets = [3, 0], sizes = [1, 48], strides = [1, 1]} : vector<8x48xf32> to vector<1x48xf32>
    %c3_178 = arith.constant 3 : index
    %c0_179 = arith.constant 0 : index
    %c0_180 = arith.constant 0 : index
    %348 = vector.load %arg12[%c3_178, %c0_179, %c0_180] : memref<4x48x48xf32, #tpu.memory_space<vmem>>, vector<1x48x48xf32>
    %349 = vector.shape_cast %348 : vector<1x48x48xf32> to vector<48x48xf32>
    %cst_181 = arith.constant dense<0.000000e+00> : vector<1x48xf32>
    %350 = tpu.matmul %314, %349, %cst_181 {dimension_numbers = #tpu.dot_dimension_numbers<[1], [0], [0], [1], [0, 0, 1, 1], [], []>} : vector<1x48xf32>, vector<48x48xf32>, vector<1x48xf32> -> vector<1x48xf32>
    %351 = arith.addf %347, %350 : vector<1x48xf32>
    %352 = arith.negf %351 : vector<1x48xf32>
    %353 = math.exp %352 : vector<1x48xf32>
    %cst_182 = arith.constant 1.000000e+00 : f32
    %354 = vector.broadcast %cst_182 : f32 to vector<1x48xf32>
    %355 = arith.addf %354, %353 : vector<1x48xf32>
    %356 = arith.divf %354, %355 : vector<1x48xf32>
    %357 = arith.mulf %340, %320 : vector<1x48xf32>
    %358 = arith.mulf %330, %346 : vector<1x48xf32>
    %359 = arith.addf %357, %358 : vector<1x48xf32>
    %360 = math.tanh %359 : vector<1x48xf32>
    %361 = arith.mulf %356, %360 : vector<1x48xf32>
    %c3_i32 = arith.constant 3 : i32
    %362 = arith.cmpi sgt, %1, %c3_i32 : i32
    %363 = arith.extui %362 : i1 to i32
    %364 = arith.sitofp %363 : i32 to f32
    %365 = vector.broadcast %364 : f32 to vector<1x48xf32>
    %366 = arith.mulf %365, %361 : vector<1x48xf32>
    %367 = vector.broadcast %364 : f32 to vector<1x48xf32>
    %368 = arith.mulf %367, %361 : vector<1x48xf32>
    %cst_183 = arith.constant 1.000000e+00 : f32
    %369 = arith.subf %cst_183, %364 : f32
    %370 = vector.broadcast %369 : f32 to vector<1x48xf32>
    %371 = arith.mulf %370, %314 : vector<1x48xf32>
    %372 = arith.addf %368, %371 : vector<1x48xf32>
    %373 = vector.broadcast %364 : f32 to vector<1x48xf32>
    %374 = arith.mulf %373, %359 : vector<1x48xf32>
    %cst_184 = arith.constant 1.000000e+00 : f32
    %375 = arith.subf %cst_184, %364 : f32
    %376 = vector.broadcast %375 : f32 to vector<1x48xf32>
    %377 = arith.mulf %376, %320 : vector<1x48xf32>
    %378 = arith.addf %374, %377 : vector<1x48xf32>
    %379 = vector.extract_strided_slice %99 {offsets = [4, 0], sizes = [1, 48], strides = [1, 1]} : vector<8x48xf32> to vector<1x48xf32>
    %c0_185 = arith.constant 0 : index
    %c0_186 = arith.constant 0 : index
    %c0_187 = arith.constant 0 : index
    %380 = vector.load %arg12[%c0_185, %c0_186, %c0_187] : memref<4x48x48xf32, #tpu.memory_space<vmem>>, vector<1x48x48xf32>
    %381 = vector.shape_cast %380 : vector<1x48x48xf32> to vector<48x48xf32>
    %cst_188 = arith.constant dense<0.000000e+00> : vector<1x48xf32>
    %382 = tpu.matmul %372, %381, %cst_188 {dimension_numbers = #tpu.dot_dimension_numbers<[1], [0], [0], [1], [0, 0, 1, 1], [], []>} : vector<1x48xf32>, vector<48x48xf32>, vector<1x48xf32> -> vector<1x48xf32>
    %383 = arith.addf %379, %382 : vector<1x48xf32>
    %384 = arith.negf %383 : vector<1x48xf32>
    %385 = math.exp %384 : vector<1x48xf32>
    %cst_189 = arith.constant 1.000000e+00 : f32
    %386 = vector.broadcast %cst_189 : f32 to vector<1x48xf32>
    %387 = arith.addf %386, %385 : vector<1x48xf32>
    %388 = arith.divf %386, %387 : vector<1x48xf32>
    %389 = vector.extract_strided_slice %114 {offsets = [4, 0], sizes = [1, 48], strides = [1, 1]} : vector<8x48xf32> to vector<1x48xf32>
    %c1_190 = arith.constant 1 : index
    %c0_191 = arith.constant 0 : index
    %c0_192 = arith.constant 0 : index
    %390 = vector.load %arg12[%c1_190, %c0_191, %c0_192] : memref<4x48x48xf32, #tpu.memory_space<vmem>>, vector<1x48x48xf32>
    %391 = vector.shape_cast %390 : vector<1x48x48xf32> to vector<48x48xf32>
    %cst_193 = arith.constant dense<0.000000e+00> : vector<1x48xf32>
    %392 = tpu.matmul %372, %391, %cst_193 {dimension_numbers = #tpu.dot_dimension_numbers<[1], [0], [0], [1], [0, 0, 1, 1], [], []>} : vector<1x48xf32>, vector<48x48xf32>, vector<1x48xf32> -> vector<1x48xf32>
    %393 = arith.addf %389, %392 : vector<1x48xf32>
    %394 = arith.negf %393 : vector<1x48xf32>
    %395 = math.exp %394 : vector<1x48xf32>
    %cst_194 = arith.constant 1.000000e+00 : f32
    %396 = vector.broadcast %cst_194 : f32 to vector<1x48xf32>
    %397 = arith.addf %396, %395 : vector<1x48xf32>
    %398 = arith.divf %396, %397 : vector<1x48xf32>
    %399 = vector.extract_strided_slice %129 {offsets = [4, 0], sizes = [1, 48], strides = [1, 1]} : vector<8x48xf32> to vector<1x48xf32>
    %c2_195 = arith.constant 2 : index
    %c0_196 = arith.constant 0 : index
    %c0_197 = arith.constant 0 : index
    %400 = vector.load %arg12[%c2_195, %c0_196, %c0_197] : memref<4x48x48xf32, #tpu.memory_space<vmem>>, vector<1x48x48xf32>
    %401 = vector.shape_cast %400 : vector<1x48x48xf32> to vector<48x48xf32>
    %cst_198 = arith.constant dense<0.000000e+00> : vector<1x48xf32>
    %402 = tpu.matmul %372, %401, %cst_198 {dimension_numbers = #tpu.dot_dimension_numbers<[1], [0], [0], [1], [0, 0, 1, 1], [], []>} : vector<1x48xf32>, vector<48x48xf32>, vector<1x48xf32> -> vector<1x48xf32>
    %403 = arith.addf %399, %402 : vector<1x48xf32>
    %404 = math.tanh %403 : vector<1x48xf32>
    %405 = vector.extract_strided_slice %144 {offsets = [4, 0], sizes = [1, 48], strides = [1, 1]} : vector<8x48xf32> to vector<1x48xf32>
    %c3_199 = arith.constant 3 : index
    %c0_200 = arith.constant 0 : index
    %c0_201 = arith.constant 0 : index
    %406 = vector.load %arg12[%c3_199, %c0_200, %c0_201] : memref<4x48x48xf32, #tpu.memory_space<vmem>>, vector<1x48x48xf32>
    %407 = vector.shape_cast %406 : vector<1x48x48xf32> to vector<48x48xf32>
    %cst_202 = arith.constant dense<0.000000e+00> : vector<1x48xf32>
    %408 = tpu.matmul %372, %407, %cst_202 {dimension_numbers = #tpu.dot_dimension_numbers<[1], [0], [0], [1], [0, 0, 1, 1], [], []>} : vector<1x48xf32>, vector<48x48xf32>, vector<1x48xf32> -> vector<1x48xf32>
    %409 = arith.addf %405, %408 : vector<1x48xf32>
    %410 = arith.negf %409 : vector<1x48xf32>
    %411 = math.exp %410 : vector<1x48xf32>
    %cst_203 = arith.constant 1.000000e+00 : f32
    %412 = vector.broadcast %cst_203 : f32 to vector<1x48xf32>
    %413 = arith.addf %412, %411 : vector<1x48xf32>
    %414 = arith.divf %412, %413 : vector<1x48xf32>
    %415 = arith.mulf %398, %378 : vector<1x48xf32>
    %416 = arith.mulf %388, %404 : vector<1x48xf32>
    %417 = arith.addf %415, %416 : vector<1x48xf32>
    %418 = math.tanh %417 : vector<1x48xf32>
    %419 = arith.mulf %414, %418 : vector<1x48xf32>
    %c4_i32 = arith.constant 4 : i32
    %420 = arith.cmpi sgt, %1, %c4_i32 : i32
    %421 = arith.extui %420 : i1 to i32
    %422 = arith.sitofp %421 : i32 to f32
    %423 = vector.broadcast %422 : f32 to vector<1x48xf32>
    %424 = arith.mulf %423, %419 : vector<1x48xf32>
    %425 = vector.broadcast %422 : f32 to vector<1x48xf32>
    %426 = arith.mulf %425, %419 : vector<1x48xf32>
    %cst_204 = arith.constant 1.000000e+00 : f32
    %427 = arith.subf %cst_204, %422 : f32
    %428 = vector.broadcast %427 : f32 to vector<1x48xf32>
    %429 = arith.mulf %428, %372 : vector<1x48xf32>
    %430 = arith.addf %426, %429 : vector<1x48xf32>
    %431 = vector.broadcast %422 : f32 to vector<1x48xf32>
    %432 = arith.mulf %431, %417 : vector<1x48xf32>
    %cst_205 = arith.constant 1.000000e+00 : f32
    %433 = arith.subf %cst_205, %422 : f32
    %434 = vector.broadcast %433 : f32 to vector<1x48xf32>
    %435 = arith.mulf %434, %378 : vector<1x48xf32>
    %436 = arith.addf %432, %435 : vector<1x48xf32>
    %437 = vector.extract_strided_slice %99 {offsets = [5, 0], sizes = [1, 48], strides = [1, 1]} : vector<8x48xf32> to vector<1x48xf32>
    %c0_206 = arith.constant 0 : index
    %c0_207 = arith.constant 0 : index
    %c0_208 = arith.constant 0 : index
    %438 = vector.load %arg12[%c0_206, %c0_207, %c0_208] : memref<4x48x48xf32, #tpu.memory_space<vmem>>, vector<1x48x48xf32>
    %439 = vector.shape_cast %438 : vector<1x48x48xf32> to vector<48x48xf32>
    %cst_209 = arith.constant dense<0.000000e+00> : vector<1x48xf32>
    %440 = tpu.matmul %430, %439, %cst_209 {dimension_numbers = #tpu.dot_dimension_numbers<[1], [0], [0], [1], [0, 0, 1, 1], [], []>} : vector<1x48xf32>, vector<48x48xf32>, vector<1x48xf32> -> vector<1x48xf32>
    %441 = arith.addf %437, %440 : vector<1x48xf32>
    %442 = arith.negf %441 : vector<1x48xf32>
    %443 = math.exp %442 : vector<1x48xf32>
    %cst_210 = arith.constant 1.000000e+00 : f32
    %444 = vector.broadcast %cst_210 : f32 to vector<1x48xf32>
    %445 = arith.addf %444, %443 : vector<1x48xf32>
    %446 = arith.divf %444, %445 : vector<1x48xf32>
    %447 = vector.extract_strided_slice %114 {offsets = [5, 0], sizes = [1, 48], strides = [1, 1]} : vector<8x48xf32> to vector<1x48xf32>
    %c1_211 = arith.constant 1 : index
    %c0_212 = arith.constant 0 : index
    %c0_213 = arith.constant 0 : index
    %448 = vector.load %arg12[%c1_211, %c0_212, %c0_213] : memref<4x48x48xf32, #tpu.memory_space<vmem>>, vector<1x48x48xf32>
    %449 = vector.shape_cast %448 : vector<1x48x48xf32> to vector<48x48xf32>
    %cst_214 = arith.constant dense<0.000000e+00> : vector<1x48xf32>
    %450 = tpu.matmul %430, %449, %cst_214 {dimension_numbers = #tpu.dot_dimension_numbers<[1], [0], [0], [1], [0, 0, 1, 1], [], []>} : vector<1x48xf32>, vector<48x48xf32>, vector<1x48xf32> -> vector<1x48xf32>
    %451 = arith.addf %447, %450 : vector<1x48xf32>
    %452 = arith.negf %451 : vector<1x48xf32>
    %453 = math.exp %452 : vector<1x48xf32>
    %cst_215 = arith.constant 1.000000e+00 : f32
    %454 = vector.broadcast %cst_215 : f32 to vector<1x48xf32>
    %455 = arith.addf %454, %453 : vector<1x48xf32>
    %456 = arith.divf %454, %455 : vector<1x48xf32>
    %457 = vector.extract_strided_slice %129 {offsets = [5, 0], sizes = [1, 48], strides = [1, 1]} : vector<8x48xf32> to vector<1x48xf32>
    %c2_216 = arith.constant 2 : index
    %c0_217 = arith.constant 0 : index
    %c0_218 = arith.constant 0 : index
    %458 = vector.load %arg12[%c2_216, %c0_217, %c0_218] : memref<4x48x48xf32, #tpu.memory_space<vmem>>, vector<1x48x48xf32>
    %459 = vector.shape_cast %458 : vector<1x48x48xf32> to vector<48x48xf32>
    %cst_219 = arith.constant dense<0.000000e+00> : vector<1x48xf32>
    %460 = tpu.matmul %430, %459, %cst_219 {dimension_numbers = #tpu.dot_dimension_numbers<[1], [0], [0], [1], [0, 0, 1, 1], [], []>} : vector<1x48xf32>, vector<48x48xf32>, vector<1x48xf32> -> vector<1x48xf32>
    %461 = arith.addf %457, %460 : vector<1x48xf32>
    %462 = math.tanh %461 : vector<1x48xf32>
    %463 = vector.extract_strided_slice %144 {offsets = [5, 0], sizes = [1, 48], strides = [1, 1]} : vector<8x48xf32> to vector<1x48xf32>
    %c3_220 = arith.constant 3 : index
    %c0_221 = arith.constant 0 : index
    %c0_222 = arith.constant 0 : index
    %464 = vector.load %arg12[%c3_220, %c0_221, %c0_222] : memref<4x48x48xf32, #tpu.memory_space<vmem>>, vector<1x48x48xf32>
    %465 = vector.shape_cast %464 : vector<1x48x48xf32> to vector<48x48xf32>
    %cst_223 = arith.constant dense<0.000000e+00> : vector<1x48xf32>
    %466 = tpu.matmul %430, %465, %cst_223 {dimension_numbers = #tpu.dot_dimension_numbers<[1], [0], [0], [1], [0, 0, 1, 1], [], []>} : vector<1x48xf32>, vector<48x48xf32>, vector<1x48xf32> -> vector<1x48xf32>
    %467 = arith.addf %463, %466 : vector<1x48xf32>
    %468 = arith.negf %467 : vector<1x48xf32>
    %469 = math.exp %468 : vector<1x48xf32>
    %cst_224 = arith.constant 1.000000e+00 : f32
    %470 = vector.broadcast %cst_224 : f32 to vector<1x48xf32>
    %471 = arith.addf %470, %469 : vector<1x48xf32>
    %472 = arith.divf %470, %471 : vector<1x48xf32>
    %473 = arith.mulf %456, %436 : vector<1x48xf32>
    %474 = arith.mulf %446, %462 : vector<1x48xf32>
    %475 = arith.addf %473, %474 : vector<1x48xf32>
    %476 = math.tanh %475 : vector<1x48xf32>
    %477 = arith.mulf %472, %476 : vector<1x48xf32>
    %c5_i32 = arith.constant 5 : i32
    %478 = arith.cmpi sgt, %1, %c5_i32 : i32
    %479 = arith.extui %478 : i1 to i32
    %480 = arith.sitofp %479 : i32 to f32
    %481 = vector.broadcast %480 : f32 to vector<1x48xf32>
    %482 = arith.mulf %481, %477 : vector<1x48xf32>
    %483 = vector.broadcast %480 : f32 to vector<1x48xf32>
    %484 = arith.mulf %483, %477 : vector<1x48xf32>
    %cst_225 = arith.constant 1.000000e+00 : f32
    %485 = arith.subf %cst_225, %480 : f32
    %486 = vector.broadcast %485 : f32 to vector<1x48xf32>
    %487 = arith.mulf %486, %430 : vector<1x48xf32>
    %488 = arith.addf %484, %487 : vector<1x48xf32>
    %489 = vector.broadcast %480 : f32 to vector<1x48xf32>
    %490 = arith.mulf %489, %475 : vector<1x48xf32>
    %cst_226 = arith.constant 1.000000e+00 : f32
    %491 = arith.subf %cst_226, %480 : f32
    %492 = vector.broadcast %491 : f32 to vector<1x48xf32>
    %493 = arith.mulf %492, %436 : vector<1x48xf32>
    %494 = arith.addf %490, %493 : vector<1x48xf32>
    %495 = vector.extract_strided_slice %99 {offsets = [6, 0], sizes = [1, 48], strides = [1, 1]} : vector<8x48xf32> to vector<1x48xf32>
    %c0_227 = arith.constant 0 : index
    %c0_228 = arith.constant 0 : index
    %c0_229 = arith.constant 0 : index
    %496 = vector.load %arg12[%c0_227, %c0_228, %c0_229] : memref<4x48x48xf32, #tpu.memory_space<vmem>>, vector<1x48x48xf32>
    %497 = vector.shape_cast %496 : vector<1x48x48xf32> to vector<48x48xf32>
    %cst_230 = arith.constant dense<0.000000e+00> : vector<1x48xf32>
    %498 = tpu.matmul %488, %497, %cst_230 {dimension_numbers = #tpu.dot_dimension_numbers<[1], [0], [0], [1], [0, 0, 1, 1], [], []>} : vector<1x48xf32>, vector<48x48xf32>, vector<1x48xf32> -> vector<1x48xf32>
    %499 = arith.addf %495, %498 : vector<1x48xf32>
    %500 = arith.negf %499 : vector<1x48xf32>
    %501 = math.exp %500 : vector<1x48xf32>
    %cst_231 = arith.constant 1.000000e+00 : f32
    %502 = vector.broadcast %cst_231 : f32 to vector<1x48xf32>
    %503 = arith.addf %502, %501 : vector<1x48xf32>
    %504 = arith.divf %502, %503 : vector<1x48xf32>
    %505 = vector.extract_strided_slice %114 {offsets = [6, 0], sizes = [1, 48], strides = [1, 1]} : vector<8x48xf32> to vector<1x48xf32>
    %c1_232 = arith.constant 1 : index
    %c0_233 = arith.constant 0 : index
    %c0_234 = arith.constant 0 : index
    %506 = vector.load %arg12[%c1_232, %c0_233, %c0_234] : memref<4x48x48xf32, #tpu.memory_space<vmem>>, vector<1x48x48xf32>
    %507 = vector.shape_cast %506 : vector<1x48x48xf32> to vector<48x48xf32>
    %cst_235 = arith.constant dense<0.000000e+00> : vector<1x48xf32>
    %508 = tpu.matmul %488, %507, %cst_235 {dimension_numbers = #tpu.dot_dimension_numbers<[1], [0], [0], [1], [0, 0, 1, 1], [], []>} : vector<1x48xf32>, vector<48x48xf32>, vector<1x48xf32> -> vector<1x48xf32>
    %509 = arith.addf %505, %508 : vector<1x48xf32>
    %510 = arith.negf %509 : vector<1x48xf32>
    %511 = math.exp %510 : vector<1x48xf32>
    %cst_236 = arith.constant 1.000000e+00 : f32
    %512 = vector.broadcast %cst_236 : f32 to vector<1x48xf32>
    %513 = arith.addf %512, %511 : vector<1x48xf32>
    %514 = arith.divf %512, %513 : vector<1x48xf32>
    %515 = vector.extract_strided_slice %129 {offsets = [6, 0], sizes = [1, 48], strides = [1, 1]} : vector<8x48xf32> to vector<1x48xf32>
    %c2_237 = arith.constant 2 : index
    %c0_238 = arith.constant 0 : index
    %c0_239 = arith.constant 0 : index
    %516 = vector.load %arg12[%c2_237, %c0_238, %c0_239] : memref<4x48x48xf32, #tpu.memory_space<vmem>>, vector<1x48x48xf32>
    %517 = vector.shape_cast %516 : vector<1x48x48xf32> to vector<48x48xf32>
    %cst_240 = arith.constant dense<0.000000e+00> : vector<1x48xf32>
    %518 = tpu.matmul %488, %517, %cst_240 {dimension_numbers = #tpu.dot_dimension_numbers<[1], [0], [0], [1], [0, 0, 1, 1], [], []>} : vector<1x48xf32>, vector<48x48xf32>, vector<1x48xf32> -> vector<1x48xf32>
    %519 = arith.addf %515, %518 : vector<1x48xf32>
    %520 = math.tanh %519 : vector<1x48xf32>
    %521 = vector.extract_strided_slice %144 {offsets = [6, 0], sizes = [1, 48], strides = [1, 1]} : vector<8x48xf32> to vector<1x48xf32>
    %c3_241 = arith.constant 3 : index
    %c0_242 = arith.constant 0 : index
    %c0_243 = arith.constant 0 : index
    %522 = vector.load %arg12[%c3_241, %c0_242, %c0_243] : memref<4x48x48xf32, #tpu.memory_space<vmem>>, vector<1x48x48xf32>
    %523 = vector.shape_cast %522 : vector<1x48x48xf32> to vector<48x48xf32>
    %cst_244 = arith.constant dense<0.000000e+00> : vector<1x48xf32>
    %524 = tpu.matmul %488, %523, %cst_244 {dimension_numbers = #tpu.dot_dimension_numbers<[1], [0], [0], [1], [0, 0, 1, 1], [], []>} : vector<1x48xf32>, vector<48x48xf32>, vector<1x48xf32> -> vector<1x48xf32>
    %525 = arith.addf %521, %524 : vector<1x48xf32>
    %526 = arith.negf %525 : vector<1x48xf32>
    %527 = math.exp %526 : vector<1x48xf32>
    %cst_245 = arith.constant 1.000000e+00 : f32
    %528 = vector.broadcast %cst_245 : f32 to vector<1x48xf32>
    %529 = arith.addf %528, %527 : vector<1x48xf32>
    %530 = arith.divf %528, %529 : vector<1x48xf32>
    %531 = arith.mulf %514, %494 : vector<1x48xf32>
    %532 = arith.mulf %504, %520 : vector<1x48xf32>
    %533 = arith.addf %531, %532 : vector<1x48xf32>
    %534 = math.tanh %533 : vector<1x48xf32>
    %535 = arith.mulf %530, %534 : vector<1x48xf32>
    %c6_i32 = arith.constant 6 : i32
    %536 = arith.cmpi sgt, %1, %c6_i32 : i32
    %537 = arith.extui %536 : i1 to i32
    %538 = arith.sitofp %537 : i32 to f32
    %539 = vector.broadcast %538 : f32 to vector<1x48xf32>
    %540 = arith.mulf %539, %535 : vector<1x48xf32>
    %541 = vector.broadcast %538 : f32 to vector<1x48xf32>
    %542 = arith.mulf %541, %535 : vector<1x48xf32>
    %cst_246 = arith.constant 1.000000e+00 : f32
    %543 = arith.subf %cst_246, %538 : f32
    %544 = vector.broadcast %543 : f32 to vector<1x48xf32>
    %545 = arith.mulf %544, %488 : vector<1x48xf32>
    %546 = arith.addf %542, %545 : vector<1x48xf32>
    %547 = vector.broadcast %538 : f32 to vector<1x48xf32>
    %548 = arith.mulf %547, %533 : vector<1x48xf32>
    %cst_247 = arith.constant 1.000000e+00 : f32
    %549 = arith.subf %cst_247, %538 : f32
    %550 = vector.broadcast %549 : f32 to vector<1x48xf32>
    %551 = arith.mulf %550, %494 : vector<1x48xf32>
    %552 = arith.addf %548, %551 : vector<1x48xf32>
    %553 = vector.extract_strided_slice %99 {offsets = [7, 0], sizes = [1, 48], strides = [1, 1]} : vector<8x48xf32> to vector<1x48xf32>
    %c0_248 = arith.constant 0 : index
    %c0_249 = arith.constant 0 : index
    %c0_250 = arith.constant 0 : index
    %554 = vector.load %arg12[%c0_248, %c0_249, %c0_250] : memref<4x48x48xf32, #tpu.memory_space<vmem>>, vector<1x48x48xf32>
    %555 = vector.shape_cast %554 : vector<1x48x48xf32> to vector<48x48xf32>
    %cst_251 = arith.constant dense<0.000000e+00> : vector<1x48xf32>
    %556 = tpu.matmul %546, %555, %cst_251 {dimension_numbers = #tpu.dot_dimension_numbers<[1], [0], [0], [1], [0, 0, 1, 1], [], []>} : vector<1x48xf32>, vector<48x48xf32>, vector<1x48xf32> -> vector<1x48xf32>
    %557 = arith.addf %553, %556 : vector<1x48xf32>
    %558 = arith.negf %557 : vector<1x48xf32>
    %559 = math.exp %558 : vector<1x48xf32>
    %cst_252 = arith.constant 1.000000e+00 : f32
    %560 = vector.broadcast %cst_252 : f32 to vector<1x48xf32>
    %561 = arith.addf %560, %559 : vector<1x48xf32>
    %562 = arith.divf %560, %561 : vector<1x48xf32>
    %563 = vector.extract_strided_slice %114 {offsets = [7, 0], sizes = [1, 48], strides = [1, 1]} : vector<8x48xf32> to vector<1x48xf32>
    %c1_253 = arith.constant 1 : index
    %c0_254 = arith.constant 0 : index
    %c0_255 = arith.constant 0 : index
    %564 = vector.load %arg12[%c1_253, %c0_254, %c0_255] : memref<4x48x48xf32, #tpu.memory_space<vmem>>, vector<1x48x48xf32>
    %565 = vector.shape_cast %564 : vector<1x48x48xf32> to vector<48x48xf32>
    %cst_256 = arith.constant dense<0.000000e+00> : vector<1x48xf32>
    %566 = tpu.matmul %546, %565, %cst_256 {dimension_numbers = #tpu.dot_dimension_numbers<[1], [0], [0], [1], [0, 0, 1, 1], [], []>} : vector<1x48xf32>, vector<48x48xf32>, vector<1x48xf32> -> vector<1x48xf32>
    %567 = arith.addf %563, %566 : vector<1x48xf32>
    %568 = arith.negf %567 : vector<1x48xf32>
    %569 = math.exp %568 : vector<1x48xf32>
    %cst_257 = arith.constant 1.000000e+00 : f32
    %570 = vector.broadcast %cst_257 : f32 to vector<1x48xf32>
    %571 = arith.addf %570, %569 : vector<1x48xf32>
    %572 = arith.divf %570, %571 : vector<1x48xf32>
    %573 = vector.extract_strided_slice %129 {offsets = [7, 0], sizes = [1, 48], strides = [1, 1]} : vector<8x48xf32> to vector<1x48xf32>
    %c2_258 = arith.constant 2 : index
    %c0_259 = arith.constant 0 : index
    %c0_260 = arith.constant 0 : index
    %574 = vector.load %arg12[%c2_258, %c0_259, %c0_260] : memref<4x48x48xf32, #tpu.memory_space<vmem>>, vector<1x48x48xf32>
    %575 = vector.shape_cast %574 : vector<1x48x48xf32> to vector<48x48xf32>
    %cst_261 = arith.constant dense<0.000000e+00> : vector<1x48xf32>
    %576 = tpu.matmul %546, %575, %cst_261 {dimension_numbers = #tpu.dot_dimension_numbers<[1], [0], [0], [1], [0, 0, 1, 1], [], []>} : vector<1x48xf32>, vector<48x48xf32>, vector<1x48xf32> -> vector<1x48xf32>
    %577 = arith.addf %573, %576 : vector<1x48xf32>
    %578 = math.tanh %577 : vector<1x48xf32>
    %579 = vector.extract_strided_slice %144 {offsets = [7, 0], sizes = [1, 48], strides = [1, 1]} : vector<8x48xf32> to vector<1x48xf32>
    %c3_262 = arith.constant 3 : index
    %c0_263 = arith.constant 0 : index
    %c0_264 = arith.constant 0 : index
    %580 = vector.load %arg12[%c3_262, %c0_263, %c0_264] : memref<4x48x48xf32, #tpu.memory_space<vmem>>, vector<1x48x48xf32>
    %581 = vector.shape_cast %580 : vector<1x48x48xf32> to vector<48x48xf32>
    %cst_265 = arith.constant dense<0.000000e+00> : vector<1x48xf32>
    %582 = tpu.matmul %546, %581, %cst_265 {dimension_numbers = #tpu.dot_dimension_numbers<[1], [0], [0], [1], [0, 0, 1, 1], [], []>} : vector<1x48xf32>, vector<48x48xf32>, vector<1x48xf32> -> vector<1x48xf32>
    %583 = arith.addf %579, %582 : vector<1x48xf32>
    %584 = arith.negf %583 : vector<1x48xf32>
    %585 = math.exp %584 : vector<1x48xf32>
    %cst_266 = arith.constant 1.000000e+00 : f32
    %586 = vector.broadcast %cst_266 : f32 to vector<1x48xf32>
    %587 = arith.addf %586, %585 : vector<1x48xf32>
    %588 = arith.divf %586, %587 : vector<1x48xf32>
    %589 = arith.mulf %572, %552 : vector<1x48xf32>
    %590 = arith.mulf %562, %578 : vector<1x48xf32>
    %591 = arith.addf %589, %590 : vector<1x48xf32>
    %592 = math.tanh %591 : vector<1x48xf32>
    %593 = arith.mulf %588, %592 : vector<1x48xf32>
    %c7_i32 = arith.constant 7 : i32
    %594 = arith.cmpi sgt, %1, %c7_i32 : i32
    %595 = arith.extui %594 : i1 to i32
    %596 = arith.sitofp %595 : i32 to f32
    %597 = vector.broadcast %596 : f32 to vector<1x48xf32>
    %598 = arith.mulf %597, %593 : vector<1x48xf32>
    %599 = tpu.concatenate %192, %250, %308, %366, %424, %482, %540, %598 in 0 : vector<1x48xf32>, vector<1x48xf32>, vector<1x48xf32>, vector<1x48xf32>, vector<1x48xf32>, vector<1x48xf32>, vector<1x48xf32>, vector<1x48xf32> -> vector<8x48xf32>
    %c0_267 = arith.constant 0 : index
    %c0_268 = arith.constant 0 : index
    %600 = vector.load %arg14[%c0_267, %c0_268] : memref<48x48xf32, #tpu.memory_space<vmem>>, vector<48x48xf32>
    %c0_269 = arith.constant 0 : index
    %c0_270 = arith.constant 0 : index
    %601 = vector.load %arg15[%c0_269, %c0_270] : memref<48x48xf32, #tpu.memory_space<vmem>>, vector<48x48xf32>
    %c0_271 = arith.constant 0 : index
    %c0_272 = arith.constant 0 : index
    %602 = vector.load %arg16[%c0_271, %c0_272] : memref<1x48xf32, #tpu.memory_space<vmem>>, vector<1x48xf32>
    %c0_273 = arith.constant 0 : index
    %c0_274 = arith.constant 0 : index
    %603 = vector.load %arg17[%c0_273, %c0_274] : memref<1x48xf32, #tpu.memory_space<vmem>>, vector<1x48xf32>
    %cst_275 = arith.constant dense<0.000000e+00> : vector<8x48xf32>
    %604 = tpu.matmul %599, %600, %cst_275 {dimension_numbers = #tpu.dot_dimension_numbers<[1], [0], [0], [1], [0, 0, 1, 1], [], []>} : vector<8x48xf32>, vector<48x48xf32>, vector<8x48xf32> -> vector<8x48xf32>
    %cst_276 = arith.constant dense<0.000000e+00> : vector<8x48xf32>
    %605 = tpu.matmul %599, %601, %cst_276 {dimension_numbers = #tpu.dot_dimension_numbers<[1], [0], [0], [1], [0, 0, 1, 1], [], []>} : vector<8x48xf32>, vector<48x48xf32>, vector<8x48xf32> -> vector<8x48xf32>
    %606 = vector.shape_cast %604 : vector<8x48xf32> to vector<1x8x48xf32>
    %607 = vector.shape_cast %605 : vector<8x48xf32> to vector<8x1x48xf32>
    %608 = vector.broadcast %606 : vector<1x8x48xf32> to vector<8x8x48xf32>
    %609 = vector.broadcast %607 : vector<8x1x48xf32> to vector<8x8x48xf32>
    %610 = arith.addf %608, %609 : vector<8x8x48xf32>
    %611 = vector.shape_cast %602 : vector<1x48xf32> to vector<1x1x48xf32>
    %612 = vector.broadcast %611 : vector<1x1x48xf32> to vector<8x8x48xf32>
    %613 = arith.addf %610, %612 : vector<8x8x48xf32>
    %614 = math.tanh %613 : vector<8x8x48xf32>
    %615 = vector.shape_cast %603 : vector<1x48xf32> to vector<1x1x48xf32>
    %616 = vector.broadcast %615 : vector<1x1x48xf32> to vector<8x8x48xf32>
    %617 = arith.mulf %614, %616 : vector<8x8x48xf32>
    %cst_277 = arith.constant dense<0.000000e+00> : vector<8x8xf32>
    %618 = vector.multi_reduction <add>, %617, %cst_277 [2] : vector<8x8x48xf32> to vector<8x8xf32>
    %619 = arith.mulf %16, %618 : vector<8x8xf32>
    %cst_278 = arith.constant dense<0xFF800000> : vector<8xf32>
    %620 = vector.multi_reduction <maximumf>, %619, %cst_278 [1] : vector<8x8xf32> to vector<8xf32>
    %621 = vector.shape_cast %620 : vector<8xf32> to vector<8x1xf32>
    %622 = vector.broadcast %621 : vector<8x1xf32> to vector<8x8xf32>
    %623 = arith.subf %619, %622 : vector<8x8xf32>
    %624 = math.exp %623 : vector<8x8xf32>
    %cst_279 = arith.constant dense<0.000000e+00> : vector<8xf32>
    %625 = vector.multi_reduction <add>, %624, %cst_279 [1] : vector<8x8xf32> to vector<8xf32>
    %626 = vector.shape_cast %625 : vector<8xf32> to vector<8x1xf32>
    %627 = vector.broadcast %626 : vector<8x1xf32> to vector<8x8xf32>
    %628 = arith.divf %624, %627 : vector<8x8xf32>
    %cst_280 = arith.constant dense<0.000000e+00> : vector<8x48xf32>
    %629 = tpu.matmul %628, %599, %cst_280 {dimension_numbers = #tpu.dot_dimension_numbers<[1], [0], [0], [1], [0, 0, 1, 1], [], []>} : vector<8x8xf32>, vector<8x48xf32>, vector<8x48xf32> -> vector<8x48xf32>
    %630 = tpu.iota {dimensions = array<i32: 1>} : vector<1x8xi32>
    %c1_i32_281 = arith.constant 1 : i32
    %631 = arith.subi %1, %c1_i32_281 : i32
    %632 = vector.broadcast %631 : i32 to vector<1x8xi32>
    %633 = arith.cmpi eq, %630, %632 : vector<1x8xi32>
    %634 = arith.extui %633 : vector<1x8xi1> to vector<1x8xi32>
    %635 = arith.sitofp %634 : vector<1x8xi32> to vector<1x8xf32>
    %cst_282 = arith.constant dense<0.000000e+00> : vector<1x48xf32>
    %636 = tpu.matmul %635, %629, %cst_282 {dimension_numbers = #tpu.dot_dimension_numbers<[1], [0], [0], [1], [0, 0, 1, 1], [], []>} : vector<1x8xf32>, vector<8x48xf32>, vector<1x48xf32> -> vector<1x48xf32>
    %c0_283 = arith.constant 0 : index
    %c0_284 = arith.constant 0 : index
    %637 = vector.load %arg18[%c0_283, %c0_284] : memref<16x1xf32, #tpu.memory_space<vmem>>, vector<16x1xf32>
    %cst_285 = arith.constant dense<0.000000e+00> : vector<8x1xf32>
    %638 = tpu.matmul %10, %637, %cst_285 {dimension_numbers = #tpu.dot_dimension_numbers<[1], [0], [0], [1], [0, 0, 1, 1], [], []>} : vector<8x16xf32>, vector<16x1xf32>, vector<8x1xf32> -> vector<8x1xf32>
    %c0_286 = arith.constant 0 : index
    %c0_287 = arith.constant 0 : index
    %639 = vector.load %arg19[%c0_286, %c0_287] : memref<1x1xf32, #tpu.memory_space<vmem>>, vector<1x1xf32>
    %640 = vector.broadcast %639 : vector<1x1xf32> to vector<8x1xf32>
    %641 = arith.addf %638, %640 : vector<8x1xf32>
    %cst_288 = arith.constant dense<0xFF800000> : vector<1xf32>
    %642 = vector.multi_reduction <maximumf>, %641, %cst_288 [0] : vector<8x1xf32> to vector<1xf32>
    %643 = vector.shape_cast %642 : vector<1xf32> to vector<1x1xf32>
    %644 = vector.broadcast %643 : vector<1x1xf32> to vector<8x1xf32>
    %645 = arith.subf %641, %644 : vector<8x1xf32>
    %646 = math.exp %645 : vector<8x1xf32>
    %cst_289 = arith.constant dense<0.000000e+00> : vector<1xf32>
    %647 = vector.multi_reduction <add>, %646, %cst_289 [0] : vector<8x1xf32> to vector<1xf32>
    %648 = vector.shape_cast %647 : vector<1xf32> to vector<1x1xf32>
    %649 = vector.broadcast %648 : vector<1x1xf32> to vector<8x1xf32>
    %650 = arith.divf %646, %649 : vector<8x1xf32>
    %651 = vector.broadcast %650 : vector<8x1xf32> to vector<8x16xf32>
    %652 = arith.mulf %10, %651 : vector<8x16xf32>
    %cst_290 = arith.constant dense<0.000000e+00> : vector<16xf32>
    %653 = vector.multi_reduction <add>, %652, %cst_290 [0] : vector<8x16xf32> to vector<16xf32>
    %654 = vector.shape_cast %653 : vector<16xf32> to vector<1x16xf32>
    %c0_291 = arith.constant 0 : index
    %c0_292 = arith.constant 0 : index
    %655 = vector.load %arg18[%c0_291, %c0_292] : memref<16x1xf32, #tpu.memory_space<vmem>>, vector<16x1xf32>
    %cst_293 = arith.constant dense<0.000000e+00> : vector<8x1xf32>
    %656 = tpu.matmul %11, %655, %cst_293 {dimension_numbers = #tpu.dot_dimension_numbers<[1], [0], [0], [1], [0, 0, 1, 1], [], []>} : vector<8x16xf32>, vector<16x1xf32>, vector<8x1xf32> -> vector<8x1xf32>
    %c0_294 = arith.constant 0 : index
    %c0_295 = arith.constant 0 : index
    %657 = vector.load %arg19[%c0_294, %c0_295] : memref<1x1xf32, #tpu.memory_space<vmem>>, vector<1x1xf32>
    %658 = vector.broadcast %657 : vector<1x1xf32> to vector<8x1xf32>
    %659 = arith.addf %656, %658 : vector<8x1xf32>
    %cst_296 = arith.constant dense<0xFF800000> : vector<1xf32>
    %660 = vector.multi_reduction <maximumf>, %659, %cst_296 [0] : vector<8x1xf32> to vector<1xf32>
    %661 = vector.shape_cast %660 : vector<1xf32> to vector<1x1xf32>
    %662 = vector.broadcast %661 : vector<1x1xf32> to vector<8x1xf32>
    %663 = arith.subf %659, %662 : vector<8x1xf32>
    %664 = math.exp %663 : vector<8x1xf32>
    %cst_297 = arith.constant dense<0.000000e+00> : vector<1xf32>
    %665 = vector.multi_reduction <add>, %664, %cst_297 [0] : vector<8x1xf32> to vector<1xf32>
    %666 = vector.shape_cast %665 : vector<1xf32> to vector<1x1xf32>
    %667 = vector.broadcast %666 : vector<1x1xf32> to vector<8x1xf32>
    %668 = arith.divf %664, %667 : vector<8x1xf32>
    %669 = vector.broadcast %668 : vector<8x1xf32> to vector<8x16xf32>
    %670 = arith.mulf %11, %669 : vector<8x16xf32>
    %cst_298 = arith.constant dense<0.000000e+00> : vector<16xf32>
    %671 = vector.multi_reduction <add>, %670, %cst_298 [0] : vector<8x16xf32> to vector<16xf32>
    %672 = vector.shape_cast %671 : vector<16xf32> to vector<1x16xf32>
    %c0_299 = arith.constant 0 : index
    %c0_300 = arith.constant 0 : index
    %673 = vector.load %arg20[%c0_299, %c0_300] : memref<80x16xf32, #tpu.memory_space<vmem>>, vector<48x16xf32>
    %cst_301 = arith.constant dense<0.000000e+00> : vector<1x16xf32>
    %674 = tpu.matmul %636, %673, %cst_301 {dimension_numbers = #tpu.dot_dimension_numbers<[1], [0], [0], [1], [0, 0, 1, 1], [], []>} : vector<1x48xf32>, vector<48x16xf32>, vector<1x16xf32> -> vector<1x16xf32>
    %c48 = arith.constant 48 : index
    %c0_302 = arith.constant 0 : index
    %675 = vector.load %arg20[%c48, %c0_302] : memref<80x16xf32, #tpu.memory_space<vmem>>, vector<16x16xf32>
    %cst_303 = arith.constant dense<0.000000e+00> : vector<1x16xf32>
    %676 = tpu.matmul %654, %675, %cst_303 {dimension_numbers = #tpu.dot_dimension_numbers<[1], [0], [0], [1], [0, 0, 1, 1], [], []>} : vector<1x16xf32>, vector<16x16xf32>, vector<1x16xf32> -> vector<1x16xf32>
    %677 = arith.addf %674, %676 : vector<1x16xf32>
    %c64 = arith.constant 64 : index
    %c0_304 = arith.constant 0 : index
    %678 = vector.load %arg20[%c64, %c0_304] : memref<80x16xf32, #tpu.memory_space<vmem>>, vector<16x16xf32>
    %cst_305 = arith.constant dense<0.000000e+00> : vector<1x16xf32>
    %679 = tpu.matmul %672, %678, %cst_305 {dimension_numbers = #tpu.dot_dimension_numbers<[1], [0], [0], [1], [0, 0, 1, 1], [], []>} : vector<1x16xf32>, vector<16x16xf32>, vector<1x16xf32> -> vector<1x16xf32>
    %680 = arith.addf %677, %679 : vector<1x16xf32>
    %c0_306 = arith.constant 0 : index
    %c0_307 = arith.constant 0 : index
    %681 = vector.load %arg21[%c0_306, %c0_307] : memref<1x16xf32, #tpu.memory_space<vmem>>, vector<1x16xf32>
    %682 = arith.addf %680, %681 : vector<1x16xf32>
    %cst_308 = arith.constant 0.000000e+00 : f32
    %683 = vector.broadcast %cst_308 : f32 to vector<1x16xf32>
    %684 = arith.maximumf %682, %683 : vector<1x16xf32>
    %c0_309 = arith.constant 0 : index
    %c0_310 = arith.constant 0 : index
    %685 = vector.load %arg22[%c0_309, %c0_310] : memref<16x1xf32, #tpu.memory_space<vmem>>, vector<16x1xf32>
    %cst_311 = arith.constant dense<0.000000e+00> : vector<1x1xf32>
    %686 = tpu.matmul %684, %685, %cst_311 {dimension_numbers = #tpu.dot_dimension_numbers<[1], [0], [0], [1], [0, 0, 1, 1], [], []>} : vector<1x16xf32>, vector<16x1xf32>, vector<1x1xf32> -> vector<1x1xf32>
    %c0_312 = arith.constant 0 : index
    %c0_313 = arith.constant 0 : index
    %687 = vector.load %arg23[%c0_312, %c0_313] : memref<1x1xf32, #tpu.memory_space<vmem>>, vector<1x1xf32>
    %688 = arith.addf %686, %687 : vector<1x1xf32>
    %cst_314 = arith.constant 0.000000e+00 : f32
    %689 = vector.broadcast %cst_314 : f32 to vector<8x128xf32>
    %c0_315 = arith.constant 0 : index
    %c0_316 = arith.constant 0 : index
    %c0_317 = arith.constant 0 : index
    %690 = vector.load %arg24[%c0_315, %c0_316, %c0_317] : memref<1x8x128xf32, #tpu.memory_space<vmem>>, vector<1x8x128xf32>
    %691 = vector.shape_cast %690 : vector<1x8x128xf32> to vector<8x128xf32>
    %692 = vector.shape_cast %689 : vector<8x128xf32> to vector<1x8x128xf32>
    tpu.vector_store %arg24[%c0_315, %c0_316, %c0_317], %692 {strides = array<i32>} : memref<1x8x128xf32, #tpu.memory_space<vmem>>, vector<1x8x128xf32>,
    %c0_318 = arith.constant 0 : index
    %c0_319 = arith.constant 0 : index
    %c0_320 = arith.constant 0 : index
    %693 = vector.load %arg24[%c0_318, %c0_319, %c0_320] : memref<1x8x128xf32, #tpu.memory_space<vmem>>, vector<1x8x8xf32>
    %694 = vector.shape_cast %693 : vector<1x8x8xf32> to vector<8x8xf32>
    %695 = vector.shape_cast %49 : vector<8x8xf32> to vector<1x8x8xf32>
    tpu.vector_store %arg24[%c0_318, %c0_319, %c0_320], %695 {strides = array<i32>} : memref<1x8x128xf32, #tpu.memory_space<vmem>>, vector<1x8x8xf32>,
    %c0_321 = arith.constant 0 : index
    %c0_322 = arith.constant 0 : index
    %c8 = arith.constant 8 : index
    %696 = vector.load %arg24[%c0_321, %c0_322, %c8] : memref<1x8x128xf32, #tpu.memory_space<vmem>>, vector<1x8x8xf32>
    %697 = vector.shape_cast %696 : vector<1x8x8xf32> to vector<8x8xf32>
    %698 = vector.shape_cast %83 : vector<8x8xf32> to vector<1x8x8xf32>
    tpu.vector_store %arg24[%c0_321, %c0_322, %c8], %698 {strides = array<i32>} : memref<1x8x128xf32, #tpu.memory_space<vmem>>, vector<1x8x8xf32>,
    %c0_323 = arith.constant 0 : index
    %c0_324 = arith.constant 0 : index
    %c16 = arith.constant 16 : index
    %699 = vector.load %arg24[%c0_323, %c0_324, %c16] : memref<1x8x128xf32, #tpu.memory_space<vmem>>, vector<1x8x1xf32>
    %700 = vector.shape_cast %699 : vector<1x8x1xf32> to vector<8x1xf32>
    %701 = vector.shape_cast %650 : vector<8x1xf32> to vector<1x8x1xf32>
    tpu.vector_store %arg24[%c0_323, %c0_324, %c16], %701 {strides = array<i32>} : memref<1x8x128xf32, #tpu.memory_space<vmem>>, vector<1x8x1xf32>,
    %c0_325 = arith.constant 0 : index
    %c0_326 = arith.constant 0 : index
    %c17 = arith.constant 17 : index
    %702 = vector.load %arg24[%c0_325, %c0_326, %c17] : memref<1x8x128xf32, #tpu.memory_space<vmem>>, vector<1x8x1xf32>
    %703 = vector.shape_cast %702 : vector<1x8x1xf32> to vector<8x1xf32>
    %704 = vector.shape_cast %668 : vector<8x1xf32> to vector<1x8x1xf32>
    tpu.vector_store %arg24[%c0_325, %c0_326, %c17], %704 {strides = array<i32>} : memref<1x8x128xf32, #tpu.memory_space<vmem>>, vector<1x8x1xf32>,
    %c0_327 = arith.constant 0 : index
    %c0_328 = arith.constant 0 : index
    %c18 = arith.constant 18 : index
    %705 = vector.load %arg24[%c0_327, %c0_328, %c18] : memref<1x8x128xf32, #tpu.memory_space<vmem>>, vector<1x1x1xf32>
    %706 = vector.shape_cast %705 : vector<1x1x1xf32> to vector<1x1xf32>
    %707 = vector.shape_cast %688 : vector<1x1xf32> to vector<1x1x1xf32>
    tpu.vector_store %arg24[%c0_327, %c0_328, %c18], %707 {strides = array<i32>} : memref<1x8x128xf32, #tpu.memory_space<vmem>>, vector<1x1x1xf32>,
    return
  }
  func.func @transform_0(%arg0: i32, %arg1: memref<2xi32, #tpu.memory_space<smem>>) -> (i32, i32, i32) {
    %c0_i32 = arith.constant 0 : i32
    %c0_i32_0 = arith.constant 0 : i32
    %c0_i32_1 = arith.constant 0 : i32
    return %arg0, %c0_i32, %c0_i32_0 : i32, i32, i32
  }
  func.func @transform_1(%arg0: i32, %arg1: memref<2xi32, #tpu.memory_space<smem>>) -> (i32, i32) {
    %c0_i32 = arith.constant 0 : i32
    %c0_i32_0 = arith.constant 0 : i32
    %c0_i32_1 = arith.constant 0 : i32
    return %c0_i32, %c0_i32_0 : i32, i32
  }
  func.func @transform_2(%arg0: i32, %arg1: memref<2xi32, #tpu.memory_space<smem>>) -> (i32, i32) {
    %c0_i32 = arith.constant 0 : i32
    %c0_i32_0 = arith.constant 0 : i32
    %c0_i32_1 = arith.constant 0 : i32
    return %c0_i32, %c0_i32_0 : i32, i32
  }
  func.func @transform_3(%arg0: i32, %arg1: memref<2xi32, #tpu.memory_space<smem>>) -> (i32, i32, i32) {
    %c0_i32 = arith.constant 0 : i32
    %c0_i32_0 = arith.constant 0 : i32
    %c0_i32_1 = arith.constant 0 : i32
    %c0_i32_2 = arith.constant 0 : i32
    return %c0_i32, %c0_i32_0, %c0_i32_1 : i32, i32, i32
  }
  func.func @transform_4(%arg0: i32, %arg1: memref<2xi32, #tpu.memory_space<smem>>) -> (i32, i32, i32) {
    %c0_i32 = arith.constant 0 : i32
    %c0_i32_0 = arith.constant 0 : i32
    %c0_i32_1 = arith.constant 0 : i32
    %c0_i32_2 = arith.constant 0 : i32
    return %c0_i32, %c0_i32_0, %c0_i32_1 : i32, i32, i32
  }
  func.func @transform_5(%arg0: i32, %arg1: memref<2xi32, #tpu.memory_space<smem>>) -> (i32, i32, i32) {
    %c0_i32 = arith.constant 0 : i32
    %c0_i32_0 = arith.constant 0 : i32
    %c0_i32_1 = arith.constant 0 : i32
    %c0_i32_2 = arith.constant 0 : i32
    return %c0_i32, %c0_i32_0, %c0_i32_1 : i32, i32, i32
  }
  func.func @transform_6(%arg0: i32, %arg1: memref<2xi32, #tpu.memory_space<smem>>) -> (i32, i32, i32) {
    %c0_i32 = arith.constant 0 : i32
    %c0_i32_0 = arith.constant 0 : i32
    %c0_i32_1 = arith.constant 0 : i32
    %c0_i32_2 = arith.constant 0 : i32
    return %c0_i32, %c0_i32_0, %c0_i32_1 : i32, i32, i32
  }
  func.func @transform_7(%arg0: i32, %arg1: memref<2xi32, #tpu.memory_space<smem>>) -> (i32, i32, i32) {
    %c0_i32 = arith.constant 0 : i32
    %c0_i32_0 = arith.constant 0 : i32
    %c0_i32_1 = arith.constant 0 : i32
    %c0_i32_2 = arith.constant 0 : i32
    return %c0_i32, %c0_i32_0, %c0_i32_1 : i32, i32, i32
  }
  func.func @transform_8(%arg0: i32, %arg1: memref<2xi32, #tpu.memory_space<smem>>) -> (i32, i32, i32) {
    %c0_i32 = arith.constant 0 : i32
    %c0_i32_0 = arith.constant 0 : i32
    %c0_i32_1 = arith.constant 0 : i32
    %c0_i32_2 = arith.constant 0 : i32
    return %c0_i32, %c0_i32_0, %c0_i32_1 : i32, i32, i32
  }
  func.func @transform_9(%arg0: i32, %arg1: memref<2xi32, #tpu.memory_space<smem>>) -> (i32, i32, i32) {
    %c0_i32 = arith.constant 0 : i32
    %c0_i32_0 = arith.constant 0 : i32
    %c0_i32_1 = arith.constant 0 : i32
    %c0_i32_2 = arith.constant 0 : i32
    return %c0_i32, %c0_i32_0, %c0_i32_1 : i32, i32, i32
  }
  func.func @transform_10(%arg0: i32, %arg1: memref<2xi32, #tpu.memory_space<smem>>) -> (i32, i32, i32) {
    %c0_i32 = arith.constant 0 : i32
    %c0_i32_0 = arith.constant 0 : i32
    %c0_i32_1 = arith.constant 0 : i32
    %c0_i32_2 = arith.constant 0 : i32
    return %c0_i32, %c0_i32_0, %c0_i32_1 : i32, i32, i32
  }
  func.func @transform_11(%arg0: i32, %arg1: memref<2xi32, #tpu.memory_space<smem>>) -> (i32, i32, i32) {
    %c0_i32 = arith.constant 0 : i32
    %c0_i32_0 = arith.constant 0 : i32
    %c0_i32_1 = arith.constant 0 : i32
    %c0_i32_2 = arith.constant 0 : i32
    return %c0_i32, %c0_i32_0, %c0_i32_1 : i32, i32, i32
  }
  func.func @transform_12(%arg0: i32, %arg1: memref<2xi32, #tpu.memory_space<smem>>) -> (i32, i32) {
    %c0_i32 = arith.constant 0 : i32
    %c0_i32_0 = arith.constant 0 : i32
    %c0_i32_1 = arith.constant 0 : i32
    return %c0_i32, %c0_i32_0 : i32, i32
  }
  func.func @transform_13(%arg0: i32, %arg1: memref<2xi32, #tpu.memory_space<smem>>) -> (i32, i32) {
    %c0_i32 = arith.constant 0 : i32
    %c0_i32_0 = arith.constant 0 : i32
    %c0_i32_1 = arith.constant 0 : i32
    return %c0_i32, %c0_i32_0 : i32, i32
  }
  func.func @transform_14(%arg0: i32, %arg1: memref<2xi32, #tpu.memory_space<smem>>) -> (i32, i32) {
    %c0_i32 = arith.constant 0 : i32
    %c0_i32_0 = arith.constant 0 : i32
    %c0_i32_1 = arith.constant 0 : i32
    return %c0_i32, %c0_i32_0 : i32, i32
  }
  func.func @transform_15(%arg0: i32, %arg1: memref<2xi32, #tpu.memory_space<smem>>) -> (i32, i32) {
    %c0_i32 = arith.constant 0 : i32
    %c0_i32_0 = arith.constant 0 : i32
    %c0_i32_1 = arith.constant 0 : i32
    return %c0_i32, %c0_i32_0 : i32, i32
  }
  func.func @transform_16(%arg0: i32, %arg1: memref<2xi32, #tpu.memory_space<smem>>) -> (i32, i32) {
    %c0_i32 = arith.constant 0 : i32
    %c0_i32_0 = arith.constant 0 : i32
    %c0_i32_1 = arith.constant 0 : i32
    return %c0_i32, %c0_i32_0 : i32, i32
  }
  func.func @transform_17(%arg0: i32, %arg1: memref<2xi32, #tpu.memory_space<smem>>) -> (i32, i32) {
    %c0_i32 = arith.constant 0 : i32
    %c0_i32_0 = arith.constant 0 : i32
    %c0_i32_1 = arith.constant 0 : i32
    return %c0_i32, %c0_i32_0 : i32, i32
  }
  func.func @transform_18(%arg0: i32, %arg1: memref<2xi32, #tpu.memory_space<smem>>) -> (i32, i32) {
    %c0_i32 = arith.constant 0 : i32
    %c0_i32_0 = arith.constant 0 : i32
    %c0_i32_1 = arith.constant 0 : i32
    return %c0_i32, %c0_i32_0 : i32, i32
  }
  func.func @transform_19(%arg0: i32, %arg1: memref<2xi32, #tpu.memory_space<smem>>) -> (i32, i32) {
    %c0_i32 = arith.constant 0 : i32
    %c0_i32_0 = arith.constant 0 : i32
    %c0_i32_1 = arith.constant 0 : i32
    return %c0_i32, %c0_i32_0 : i32, i32
  }
  func.func @transform_20(%arg0: i32, %arg1: memref<2xi32, #tpu.memory_space<smem>>) -> (i32, i32) {
    %c0_i32 = arith.constant 0 : i32
    %c0_i32_0 = arith.constant 0 : i32
    %c0_i32_1 = arith.constant 0 : i32
    return %c0_i32, %c0_i32_0 : i32, i32
  }
  func.func @transform_21(%arg0: i32, %arg1: memref<2xi32, #tpu.memory_space<smem>>) -> (i32, i32) {
    %c0_i32 = arith.constant 0 : i32
    %c0_i32_0 = arith.constant 0 : i32
    %c0_i32_1 = arith.constant 0 : i32
    return %c0_i32, %c0_i32_0 : i32, i32
  }
  func.func @transform_22(%arg0: i32, %arg1: memref<2xi32, #tpu.memory_space<smem>>) -> (i32, i32, i32) {
    %c0_i32 = arith.constant 0 : i32
    %c0_i32_0 = arith.constant 0 : i32
    %c0_i32_1 = arith.constant 0 : i32
    return %arg0, %c0_i32, %c0_i32_0 : i32, i32, i32
  }
}

</mosaic_0001>

<bundles_post_ra>
// kernel: regression_forward.1
= control target key start
LH: loop header
LB: loop body
LE: loop exit
PB: predicated region body
PF: predicated region fallthrough
CT: control target
= control target key end

     0   :  { %s9645_s0 = inlined_call_operand.vmem [shape: s32[2], index: 0, kind: input, shape index: {}]   ;;  %s9646_s1 = inlined_call_operand.vmem [shape: f32[2,24,32], index: 1, kind: input, shape index: {}]   ;;  %s9647_s2 = inlined_call_operand.vmem [shape: f32[32,16], index: 2, kind: input, shape index: {}]   ;;  %s9648_s3 = inlined_call_operand.vmem [shape: f32[1,16], index: 3, kind: input, shape index: {}]   ;;  %s9649_s4 = inlined_call_operand.vmem [shape: f32[2,16,16], index: 4, kind: input, shape index: {}]   ;;  %s9650_s5 = inlined_call_operand.vmem [shape: f32[2,16,16], index: 5, kind: input, shape index: {}]   ;;  %s9651_s6 = inlined_call_operand.vmem [shape: f32[2,1,16], index: 6, kind: input, shape index: {}]   ;;  %s9652_s7 = inlined_call_operand.vmem [shape: f32[2,1,16], index: 7, kind: input, shape index: {}]   ;;  %s9653_s8 = inlined_call_operand.vmem [shape: f32[4,16,48], index: 8, kind: input, shape index: {}]   ;;  %s9654_s9 = inlined_call_operand.vmem [shape: f32[4,16,48], index: 9, kind: input, shape index: {}]   ;;  %s9655_s10 = inlined_call_operand.vmem [shape: f32[4,16,48], index: 10, kind: input, shape index: {}]   ;;  %s9656_s11 = inlined_call_operand.vmem [shape: f32[4,48,48], index: 11, kind: input, shape index: {}]   ;;  %s9657_s12 = inlined_call_operand.vmem [shape: f32[4,1,48], index: 12, kind: input, shape index: {}]   ;;  %s9658_s13 = inlined_call_operand.vmem [shape: f32[48,48], index: 13, kind: input, shape index: {}]   ;;  %s9659_s14 = inlined_call_operand.vmem [shape: f32[48,48], index: 14, kind: input, shape index: {}]   ;;  %s9660_s15 = inlined_call_operand.vmem [shape: f32[1,48], index: 15, kind: input, shape index: {}]   ;;  %s9661_s16 = inlined_call_operand.vmem [shape: f32[1,48], index: 16, kind: input, shape index: {}]   ;;  %s9662_s17 = inlined_call_operand.vmem [shape: f32[16,1], index: 17, kind: input, shape index: {}]   ;;  %s9663_s19 = inlined_call_operand.vmem [shape: f32[80,16], index: 19, kind: input, shape index: {}]   ;;  %s9664_s20 = inlined_call_operand.vmem [shape: f32[1,16], index: 20, kind: input, shape index: {}]   ;;  %s9665_s21 = inlined_call_operand.vmem [shape: f32[16,1], index: 21, kind: input, shape index: {}]   ;;  %s9666_s23 = inlined_call_operand.vmem [shape: f32[2,8,128], index: 23, kind: output, shape index: {}]   ;;  %s9667_s18 = inlined_call_operand.<no memory space> [shape: f32[1,1], index: 18, kind: input, shape index: {}]   ;;  %s9668_s22 = inlined_call_operand.<no memory space> [shape: f32[1,1], index: 22, kind: input, shape index: {}]  }
   0x1   :  { %9676 = sst [smem:[#allocation7_spill]] %s9645_s0  ;;  %v32_v0 = vstv %s9667_s18  ;;  %v34_v1 = vstv %s9668_s22 }
   0x2   :  { %9677 = sst [smem:[#allocation8_spill]] %s9646_s1  ;;  %s9685_s24 = sld [smem:[#allocation7_spill]]  ;;  %33 = vst [vmem:[#allocation4] sm:$0x1] %v32_v0  ;;  %35 = vst [vmem:[#allocation5] sm:$0x1] %v34_v1 }
   0x3   :  { %9678 = sst [smem:[#allocation9_spill]] %s9647_s2 }
   0x4   :  { %9679 = sst [smem:[#allocation10_spill]] %s9648_s3 }
   0x5   :  { %9680 = sst [smem:[#allocation11_spill]] %s9649_s4 }
   0x6   :  { %9681 = sst [smem:[#allocation12_spill]] %s9650_s5 }
   0x7   :  { %9682 = sst [smem:[#allocation13_spill]] %s9651_s6 }
   0x8   :  { %9683 = sst [smem:[#allocation14_spill]] %s9652_s7 }
   0x9   :  { %9684 = sst [smem:[#allocation15_spill]] %s9662_s17  ;;  %s28_s17 = sshll.u32 %s9685_s24, 4  ;;  %s29_s17 = int_to_ptr.vmem [resolvable:$true] %s28_s17 }
   0xa   :  { %s8293_s2 = scalar_lea.vmem %s29_s17, 16  ;;  %p8298_p1 = scmp.lt.s32.totalorder %s29_s17, %s29_s17 }
   0xb   :  { %p8294_p0 = scmp.ne.s32.totalorder %s29_s17, %s8293_s2  ;;  %p8299_p2 = scmp.lt.s32.totalorder %s8293_s2, %s8293_s2 }
   0xd   :  { %p8300_p3 = por %p8299_p2, %p8298_p1 }
   0xf   :  { %p8301_p4 = pnand %p8300_p3, %p8294_p0 }
  0x11   :  { %8304 = shalt.err (!%p8301_p4)  }
  0x12   :  { %s8315_s6 = smov [#allocation3]  }
  0x13   :  { %31 = dma.vmem_to_smem %s29_s17, 16, %s8315_s6, [#allocation2] }
  0x14   :  { %8309 = dma.done.wait [#allocation2], 16 }
  0x15   :  { %8310 = vsyncadd [#allocation2], 4294967280 }
  0x16   :  { %37 = sfence }
  0x17   :  { %s8454_s18 = smov 0  }
  0x18 LB: > { %s8460_s22 = sadd.s32 4294967295, %s8313_s18   ;;  %p6512_p5 = scmp.ge.s32.totalorder %s8313_s18, 1  ;;  %s8313_s18 = sphi %s8454_s18, %s43_s18  }
  0x19   : > { %p623_p6 = scmp.lt.s32.totalorder %s8313_s18, 3 }
  0x1b   : > { %p624_p7 = pnand %p6512_p5, %p623_p6 }
  0x1c   : > { %s9686_s7 = sld [smem:[#allocation9_spill]] (!%p624_p7)  ;;  %v8316_v5 = vmov (!%p624_p7), 0.0|0.0   ;;  %vm8317_vm0 = vmmov (!%p624_p7), 0   ;;  %v8318_v8 = vmov (!%p624_p7), 0.0   ;;  %p684_p8 = scmp.lt.s32.totalorder (!%p624_p7), %s8460_s22, 1  ;;  %vm708_vm1 = vcmask (!%p624_p7), 261120  }
  0x1d   : > { %627 = sbr.rel (%p624_p7) target bundleno = 5935 (0x172f), region = 108  ;;  %7692 = vmatprep.subr.bf16.mxu0 (!%p624_p7), %v8316_v5  ;;  %6991 = vmatprep.mubr.msk.f32.mxu0 (!%p624_p7), %vm8317_vm0, %v8318_v8  ;;  %s9687_s27 = sld [smem:[#allocation8_spill]] (!%p624_p7)  ;;  %vm810_vm2 = vcmask (!%p624_p7), 130048   ;;  %v798_v32 = vlaneseq (!%p624_p7)  ;;  %v8319_v33 = vmov (!%p624_p7), 1966171168   ;;  %vm1155_vm3 = vcmask (!%p624_p7), 1041409  }
  0x1e   : > { %7698 = vmatprep.subr.bf16.mxu1 (!%p624_p7), %v8316_v5  ;;  %7004 = vmatprep.mubr.msk.f32.mxu1 (!%p624_p7), %vm8317_vm0, %v8318_v8  ;;  %s9688_s0 = sld [smem:[#allocation12_spill]] (!%p624_p7)  ;;  %v960_v34 = vunpack.c.l.s4 (!%p624_p7), %v8319_v33  ;;  %s9692_s6 = sld [smem:[#allocation14_spill]] (!%p624_p7)  ;;  %vm1157_vm4 = vcmask (!%p624_p7), 1042434   ;;  %vm1159_vm5 = vcmask (!%p624_p7), 1043459   ;;  %vm1161_vm6 = vcmask (!%p624_p7), 1044484  }
  0x1f   : > { %v8549_v38 = vshrl.u32 (!%p624_p7), %v798_v32, 7  ;;  %s8593_s17 = sld [smem:[#allocation3 + %s8460_s22]] (!%p624_p7)  ;;  %vm1163_vm7 = vcmask (!%p624_p7), 1045509   ;;  %vm1165_vm8 = vcmask (!%p624_p7), 1046534   ;;  %vm1167_vm10 = vcmask (!%p624_p7), 1047559  }
  0x20   : > { %v961_v37 = vunpack.c.0.s8 (!%p624_p7), %v960_v34  ;;  %vm1171_vm11 = vcmask (!%p624_p7), 64512   ;;  %vm2624_vm12 = vcmask (!%p624_p7), 392192   ;;  %vm5369_vm13 = vcmask (!%p624_p7), 1040384  }
  0x21   : > { %v8558_v49 = vsub.s32 (!%p624_p7), 0, %v8549_v38  ;;  %vm5371_vm14 = vcmask (!%p624_p7), 1041408   ;;  %vm5373_vm15 = vcmask (!%p624_p7), 1042432  }
  0x22   : > { %v697_v2 = vld [vmem:[%s9686_s7] sm:$0xff] (!%p624_p7)  ;;  %v698_v3 = vld [vmem:[%s9686_s7 + $0x8] sm:$0xff] (!%p624_p7)  ;;  %v699_v4 = vld [vmem:[%s9686_s7 + $0x10] sm:$0xff] (!%p624_p7)  ;;  %v8552_v41 = vsub.s32 (!%p624_p7), %v961_v37, %v8549_v38 }
  0x23   : > { %v7693_v6 = vpack.c.bf16 (!%p624_p7), %v698_v3, %v697_v2  ;;  %v700_v7 = vld [vmem:[%s9686_s7 + $0x18] sm:$0xff] (!%p624_p7) }
  0x24   : > { %v7696_v9 = vpack.c.bf16 %v700_v7, %v699_v4  ;;  %s685_s24 = scalar_select %p684_p8, %s8460_s22, 1  ;;  %v6527_v13 = vld [vmem:[%s9688_s0 + $0x10] sm:$0xff]  ;;  %v6528_v14 = vld [vmem:[%s9688_s0 + $0x18] sm:$0xff]  ;;  %v806_v23 = vld [vmem:[%s9688_s0] sm:$0xff] }
  0x25   : > { %7694 = vmatpush3.bf16.msra.mxu0 %v7693_v6  ;;  %v7708_v15 = vpack.c.bf16 %v6528_v14, %v6527_v13  ;;  %v807_v24 = vld [vmem:[%s9688_s0 + $0x8] sm:$0xff]  ;;  %p2957_p9 = scmp.gt.s32.totalorder %s8593_s17, 0  ;;  %p3294_p10 = scmp.gt.s32.totalorder %s8593_s17, 1 }
  0x26   : > { %7695 = vmatprep.subr.bf16.mxu0 %v8316_v5  ;;  %s8076_s25 = smul.u32 24, %s685_s24  ;;  %s6514_s5 = sshll.u32 %s685_s24, 3  ;;  %v7702_v26 = vpack.c.bf16 %v807_v24, %v806_v23 }
  0x27   : > { %s8488_s2 = scalar_lea.vmem %s9666_s23, %s6514_s5  ;;  %s9689_s5 = sld [smem:[#allocation11_spill]] }
  0x28   : > { %s688_s28 = scalar_lea.vmem %s9687_s27, %s8076_s25  ;;  %6432 = vst [vmem:[%s8488_s2] sm:$0xff] %v8318_v8  ;;  %s9690_s27 = sld [smem:[#allocation10_spill]] }
  0x29   : > { %7697 = vmatpush3.bf16.msra.mxu0 %v7696_v9  ;;  %v694_v10 = vld [vmem:[%s688_s28] sm:$0xff]  ;;  %v695_v11 = vld [vmem:[%s688_s28 + $0x8] sm:$0xff]  ;;  %v696_v12 = vld [vmem:[%s688_s28 + $0x10] sm:$0xff]  ;;  %s9691_s25 = sld [smem:[#allocation13_spill]]  ;;  %p3639_p11 = scmp.gt.s32.totalorder %s8593_s17, 2 }
  0x2a   : > { %7707 = vmatprep.subr.bf16.mxu0 %v8316_v5  ;;  %s2958_s28 = scalar_select %p2957_p9, 1, 0 }
  0x2b   : > { %s9000_s3 = scalar_select %p3294_p10, 1, 0 }
  0x2c   : > { %6992 = vmatmul.mubr.msk.f32.vlgmr.msra.gmra.mrb[0].mxu0 %vm708_vm1, %v694_v10  ;;  %s2959_s29 = scvt.s32.f32 %s2958_s28  ;;  %p3984_p12 = scmp.gt.s32.totalorder %s8593_s17, 3 }
  0x2d   : > { %6994 = vmatprep.mubr.msk.f32.mxu0 %vm8317_vm0, %v8318_v8  ;;  %7709 = vmatpush3.bf16.msra.mxu0 %v7708_v15  ;;  %v804_v16 = vld [vmem:[%s9689_s5] sm:$0xff]  ;;  %v805_v17 = vld [vmem:[%s9689_s5 + $0x8] sm:$0xff]  ;;  %s3296_s30 = scvt.s32.f32 %s9000_s3  ;;  %p4329_p13 = scmp.gt.s32.totalorder %s8593_s17, 4 }
  0x2e   : > { %v7699_v18 = vpack.c.bf16 %v805_v17, %v804_v16  ;;  %7710 = vmatprep.subr.bf16.mxu0 %v8316_v5  ;;  %v6515_v19 = vld [vmem:[%s9690_s27] ss:$0 sm:$0xff]  ;;  %s2962_s4 = ssub.f32 1.0, %s2959_s29  ;;  %p4674_p0 = scmp.gt.s32.totalorder %s8593_s17, 5 }
  0x2f   : > { %v6522_v55 = vld [vmem:[%s9691_s25] ss:$0 sm:$0xff]  ;;  %s9005_s24 = ssub.f32 1.0, %s3296_s30  ;;  %p5019_p1 = scmp.gt.s32.totalorder %s8593_s17, 6 }
  0x30   : > { %6995 = vmatmul.mubr.msk.f32.gmra.mrb[2].mxu0 %vm708_vm1, %v695_v11  ;;  %7700 = vmatpush3.bf16.msra.mxu1 %v7699_v18  ;;  %s9065_s1 = scalar_select %p3639_p11, 1, 0 }
  0x31   : > { %6997 = vmatprep.mubr.msk.f32.mxu0 %vm8317_vm0, %v8318_v8  ;;  %7701 = vmatprep.subr.bf16.mxu1 %v8316_v5  ;;  %s9134_s27 = scalar_select %p3984_p12, 1, 0 }
  0x32   : > { %s3641_s26 = scvt.s32.f32 %s9065_s1  ;;  %p5364_p2 = scmp.gt.s32.totalorder %s8593_s17, 7 }
  0x33   : > { %s3986_s28 = scvt.s32.f32 %s9134_s27  ;;  %s8321_s0 = smov 8  }
  0x34   : > { %6998 = vmatmul.mubr.msk.f32.gmra.mrb[4].mxu0 %vm708_vm1, %v696_v12  ;;  %s9073_s22 = ssub.f32 1.0, %s3641_s26  ;;  %vm5375_vm1 = vcmask 1043456  }
  0x35   : > { %7030 = vmatprep.mubr.msk.f32.mxu0 %vm8317_vm0, %v8318_v8  ;;  %s9204_s3 = scalar_select %p4329_p13, 1, 0 }
  0xff   : > { %v784_v20 = vpop.f32.mrb[0].mxu0 }
 0x100   : > { %v8519_v21 = vadd.f32 %v6515_v19, %v784_v20  ;;  %v6993_v22 = vpop.f32.mrb[1].mxu0 }
 0x101   : > { %v6523_v22 = vld [vmem:[%s9692_s6] ss:$0 sm:$0xff] }
 0x102   : > { %7031 = vmatmul.mubr.msk.f32.vlgmr.msra.gmra.mrb[6].mxu0 %vm810_vm2, %v8519_v21 }
 0x103   : > { %v789_v25 = vpop.f32.mrb[2].mxu0  ;;  %7042 = vmatprep.mubr.msk.f32.mxu0 %vm8317_vm0, %v8318_v8 }
 0x104   : > { %v8531_v27 = vadd.f32 %v6515_v19, %v789_v25  ;;  %v6996_v28 = vpop.f32.mrb[3].mxu0 }
 0x106   : > { %7005 = vmatmul.mubr.msk.f32.vlgmr.msra.gmra.mrb[0].mxu1 %vm810_vm2, %v8531_v27 }
 0x107   : > { %7703 = vmatpush3.bf16.msra.mxu1 %v7702_v26  ;;  %7011 = vmatprep.mubr.msk.f32.mxu1 %vm8317_vm0, %v8318_v8  ;;  %v794_v29 = vpop.f32.mrb[4].mxu0 }
 0x108   : > { %7014 = vmatprep.subr.mxu1 %v8318_v8  ;;  %v8538_v30 = vadd.f32 %v6515_v19, %v794_v29  ;;  %v6999_v31 = vpop.f32.mrb[5].mxu0 }
 0x10a   : > { %7012 = vmatmul.mubr.msk.f32.vlgmr.msra.gmra.mrb[2].mxu1 %vm810_vm2, %v8519_v21 }
 0x10b   : > { %7015 = vmatpush3.msra.mxu1 %v8531_v27  ;;  %7016 = vmatprep.mubr.msk.f32.mxu1 %vm8317_vm0, %v8318_v8 }
 0x10c   : > { %7704 = vmatprep.subr.bf16.mxu1 %v8316_v5 }
 0x1d5   : > { %v8546_v35 = vpop.f32.mrb[6].mxu0 }
 0x1d6   : > { %v7032_v36 = vpop.f32.mrb[7].mxu0 }
 0x1d9   : > { %v880_v39 = vpop.f32.mrb[0].mxu1 }
 0x1da   : > { %v7006_v40 = vpop.f32.mrb[1].mxu1 }
 0x1dd   : > { %v953_v42 = vpop.f32.mrb[2].mxu1 }
 0x1de   : > { %v7013_v43 = vpop.f32.mrb[3].mxu1  ;;  %v958_v44 = vcombine.high %v953_v42, %v953_v42  ;;  %v965_v45 = vrot.slane %v953_v42, %v8552_v41 }
 0x1e0   : > { %v972_v46 = vrot.slane %v958_v44, %v8552_v41  ;;  %v973_v47 = vcombine.high %v965_v45, %v965_v45  ;;  %v981_v48 = vrot.slane %v965_v45, %v8552_v41 }
 0x1e2   : > { %v974_v50 = vcombine.high %v972_v46, %v972_v46  ;;  %v988_v51 = vrot.slane %v972_v46, %v8552_v41  ;;  %v995_v52 = vrot.slane %v973_v47, %v8552_v41  ;;  %v1003_v53 = vcombine.high %v981_v48, %v981_v48 }
 0x1e3   : > { %v1010_v54 = vrot.slane %v981_v48, %v8558_v49 }
 0x1e4   : > { %v1002_v56 = vrot.slane %v974_v50, %v8552_v41  ;;  %v1004_v57 = vcombine.high %v988_v51, %v988_v51  ;;  %v1005_v58 = vcombine.high %v995_v52, %v995_v52  ;;  %v1014_v59 = vrot.slane %v995_v52, %v8558_v49 }
 0x1e5   : > { %v1018_v60 = vrot.slane %v1003_v53, %v8558_v49  ;;  %v1026_v61 = vrot.slane %v988_v51, %v8558_v49  ;;  %v1047_v62 = vadd.f32 %v1010_v54, %v880_v39  ;;  %v8586_v54 = vand.u32 127, %v798_v32 }
 0x1e6   : > { %v1006_v63 = vcombine.high %v1002_v56, %v1002_v56  ;;  %v1022_v0 = vrot.slane %v1005_v58, %v8558_v49  ;;  %v1030_v1 = vrot.slane %v1002_v56, %v8558_v49  ;;  %v1034_v2 = vrot.slane %v1004_v57, %v8558_v49 }
 0x1e7   : > { %v1048_v3 = vadd.f32 %v1014_v59, %v880_v39  ;;  %v1049_v4 = vadd.f32 %v1018_v60, %v880_v39  ;;  %v1051_v6 = vadd.f32 %v1026_v61, %v880_v39  ;;  %v1061_v7 = vadd.f32 %v6522_v55, %v1047_v62 }
 0x1e8   : > { %v1038_v9 = vrot.slane %v1006_v63, %v8558_v49  ;;  %v1050_v10 = vadd.f32 %v1022_v0, %v880_v39  ;;  %v1052_v11 = vadd.f32 %v1030_v1, %v880_v39  ;;  %v1053_v12 = vadd.f32 %v1034_v2, %v880_v39 }
 0x1e9   : > { %v1062_v13 = vadd.f32 %v6522_v55, %v1048_v3  ;;  %v1063_v14 = vadd.f32 %v6522_v55, %v1049_v4  ;;  %v1065_v15 = vadd.f32 %v6522_v55, %v1051_v6  ;;  %8097 = vtanh.f32 %v1061_v7 }
 0x1ea   : > { %v1054_v16 = vadd.f32 %v1038_v9, %v880_v39  ;;  %v1064_v17 = vadd.f32 %v6522_v55, %v1050_v10  ;;  %v1066_v18 = vadd.f32 %v6522_v55, %v1052_v11  ;;  %v1067_v19 = vadd.f32 %v6522_v55, %v1053_v12 }
 0x1eb   : > { %8099 = vtanh.f32 %v1062_v13  ;;  %v8590_v56 = vsub.s32 %v8586_v54, %v8549_v38  ;;  %v800_v3 = vstv %s8593_s17 }
 0x1ec   : > { %8101 = vtanh.f32 %v1063_v14  ;;  %v1068_v20 = vadd.f32 %v6522_v55, %v1054_v16  ;;  %vm801_vm9 = vcmp.lt.s32.totalorder %v8586_v54, %v800_v3 }
 0x1ed   : > { %8103 = vtanh.f32 %v1065_v15  ;;  %v8612_v15 = vsel %vm801_vm9, 1.0, %v8318_v8  ;;  %vm5377_vm9 = vcmask 1044480  }
 0x1ee   : > { %8105 = vtanh.f32 %v1064_v17 }
 0x1ef   : > { %8107 = vtanh.f32 %v1066_v18 }
 0x1f0   : > { %8109 = vtanh.f32 %v1067_v19 }
 0x1f1   : > { %8111 = vtanh.f32 %v1068_v20 }
 0x1f3   : > { %v8098_v23 = vpop.eup %8097 }
 0x1f4   : > { %v1083_v24 = vmul.f32 %v8098_v23, %v6523_v22 }
 0x1f5   : > { %v8100_v25 = vpop.eup %8099 }
 0x1f6   : > { %v8102_v26 = vpop.eup %8101  ;;  %v1091_v28 = vsel %vm810_vm2, %v1083_v24, 0.0  ;;  %v1084_v29 = vmul.f32 %v8100_v25, %v6523_v22  ;;  %v1702_v25 = vld [vmem:[%s9654_s9] sm:$0xff] }
 0x1f7   : > { %v8104_v31 = vpop.eup %8103  ;;  %1092 = vadd.xlane.f32.xlu0 %v1091_v28  ;;  %v1085_v33 = vmul.f32 %v8102_v26, %v6523_v22  ;;  %v1703_v26 = vld [vmem:[%s9654_s9 + $0x8] sm:$0xff] }
 0x1f8   : > { %v8106_v34 = vpop.eup %8105  ;;  %v1094_v40 = vsel %vm810_vm2, %v1084_v29, 0.0  ;;  %v1087_v42 = vmul.f32 %v8104_v31, %v6523_v22  ;;  %v7711_v28 = vpack.c.bf16 %v1703_v26, %v1702_v25  ;;  %v6525_v31 = vld [vmem:[%s9689_s5 + $0x10] sm:$0xff] }
 0x1f9   : > { %v1097_v36 = vsel %vm810_vm2, %v1085_v33, 0.0  ;;  %v1086_v37 = vmul.f32 %v8106_v34, %v6523_v22  ;;  %v8108_v39 = vpop.eup %8107  ;;  %v6526_v33 = vld [vmem:[%s9689_s5 + $0x18] sm:$0xff] }
 0x1fa   : > { %1098 = vadd.xlane.f32.xlu1 %v1097_v36  ;;  %v8110_v43 = vpop.eup %8109  ;;  %v1088_v45 = vmul.f32 %v8108_v39, %v6523_v22  ;;  %v1103_v47 = vsel %vm810_vm2, %v1087_v42, 0.0  ;;  %7712 = vmatpush3.bf16.msra.mxu0 %v7711_v28  ;;  %v7705_v36 = vpack.c.bf16 %v6526_v33, %v6525_v31  ;;  %v1410_v39 = vcombine.high %v8546_v35, %v8546_v35 }
 0x1fb   : > { %1095 = vadd.xlane.f32.xlu0 %v1094_v40  ;;  %v1100_v44 = vsel %vm810_vm2, %v1086_v37, 0.0  ;;  %v8112_v46 = vpop.eup %8111  ;;  %v1089_v48 = vmul.f32 %v8110_v43, %v6523_v22  ;;  %7716 = vmatprep.subr.bf16.mxu0 %v8316_v5  ;;  %v1417_v40 = vrot.slane %v8546_v35, %v8552_v41 }
 0x1fc   : > { %v1106_v50 = vsel %vm810_vm2, %v1088_v45, 0.0  ;;  %v1090_v51 = vmul.f32 %v8112_v46, %v6523_v22  ;;  %v1424_v42 = vrot.slane %v1410_v39, %v8552_v41 }
 0x1fd   : > { %v1109_v52 = vsel %vm810_vm2, %v1089_v48, 0.0  ;;  %v1425_v43 = vcombine.high %v1417_v40, %v1417_v40  ;;  %v1433_v45 = vrot.slane %v1417_v40, %v8552_v41 }
 0x1fe   : > { %1101 = vadd.xlane.f32.xlu1 %v1100_v44  ;;  %v1112_v53 = vsel %vm810_vm2, %v1090_v51, 0.0  ;;  %v1426_v44 = vcombine.high %v1424_v42, %v1424_v42 }
 0x1ff   : > { %1104 = vadd.xlane.f32.xlu0 %v1103_v47  ;;  %v1447_v46 = vrot.slane %v1425_v43, %v8552_v41  ;;  %v1440_v47 = vrot.slane %v1424_v42, %v8552_v41  ;;  %v1462_v35 = vrot.slane %v1433_v45, %v8558_v49 }
 0x200   : > { %v1454_v48 = vrot.slane %v1426_v44, %v8552_v41 }
 0x201   : > { %v1457_v51 = vcombine.high %v1447_v46, %v1447_v46 }
 0x202   : > { %1107 = vadd.xlane.f32.xlu1 %v1106_v50  ;;  %v1455_v50 = vcombine.high %v1433_v45, %v1433_v45 }
 0x203   : > { %1110 = vadd.xlane.f32.xlu0 %v1109_v52  ;;  %v1456_v52 = vcombine.high %v1440_v47, %v1440_v47 }
 0x206   : > { %1113 = vadd.xlane.f32.xlu1 %v1112_v53  ;;  %v1458_v53 = vcombine.high %v1454_v48, %v1454_v48 }
 0x284   : > { %v1093_v55 = vpop.xlane.xlu0 %1092 }
 0x285   : > { %v1126_v59 = vrot.slane %v1093_v55, %v8590_v56 }
 0x287   : > { %v1099_v57 = vpop.xlane.xlu1 %1098 }
 0x288   : > { %v1096_v58 = vpop.xlane.xlu0 %1095  ;;  %v1134_v61 = vrot.slane %v1099_v57, %v8590_v56 }
 0x289   : > { %v1130_v60 = vrot.slane %v1096_v58, %v8590_v56  ;;  %v1466_v58 = vrot.slane %v1447_v46, %v8558_v49 }
 0x28b   : > { %v1156_v32 = vsel %vm1155_vm3, %v1130_v60, %v1126_v59  ;;  %v1102_v62 = vpop.xlane.xlu1 %1101  ;;  %v1470_v59 = vrot.slane %v1455_v50, %v8558_v49  ;;  %v1474_v60 = vrot.slane %v1457_v51, %v8558_v49 }
 0x28c   : > { %v1158_v38 = vsel %vm1157_vm4, %v1134_v61, %v1156_v32  ;;  %v1138_v63 = vrot.slane %v1102_v62, %v8590_v56  ;;  %v1105_v0 = vpop.xlane.xlu0 %1104  ;;  %v1478_v61 = vrot.slane %v1440_v47, %v8558_v49  ;;  %v1482_v32 = vrot.slane %v1454_v48, %v8558_v49 }
 0x28d   : > { %v1142_v1 = vrot.slane %v1105_v0, %v8590_v56  ;;  %v1486_v62 = vrot.slane %v1456_v52, %v8558_v49  ;;  %v6533_v0 = vld [vmem:[%s9691_s25 + $0x1] ss:$0 sm:$0xff] }
 0x28e   : > { %v1160_v2 = vsel %vm1159_vm5, %v1138_v63, %v1158_v38  ;;  %v1490_v38 = vrot.slane %v1458_v53, %v8558_v49 }
 0x28f   : > { %v1162_v4 = vsel %vm1161_vm6, %v1142_v1, %v1160_v2  ;;  %v1108_v6 = vpop.xlane.xlu1 %1107 }
 0x290   : > { %v1146_v7 = vrot.slane %v1108_v6, %v8590_v56  ;;  %v1111_v9 = vpop.xlane.xlu0 %1110 }
 0x291   : > { %v1150_v10 = vrot.slane %v1111_v9, %v8590_v56 }
 0x292   : > { %v1164_v11 = vsel %vm1163_vm7, %v1146_v7, %v1162_v4 }
 0x293   : > { %v1166_v12 = vsel %vm1165_vm8, %v1150_v10, %v1164_v11  ;;  %v1114_v13 = vpop.xlane.xlu1 %1113 }
 0x294   : > { %v1154_v14 = vrot.slane %v1114_v13, %v8590_v56 }
 0x296   : > { %v1168_v16 = vsel %vm1167_vm10, %v1154_v14, %v1166_v12 }
 0x297   : > { %v1170_v17 = vmul.f32 %v8612_v15, %v1168_v16 }
 0x299   : > { %v1172_v18 = vsel %vm1171_vm11, %v1170_v17, -inf }
 0x29a   : > { %1173 = vmax.xlane.f32.xlu0 %v1172_v18 }
 0x327   : > { %v1174_v19 = vpop.xlane.xlu0 %1173 }
 0x328   : > { %v1175_v20 = vsub.f32 %v1170_v17, %v1174_v19 }
 0x32a   : > { %v1176_v22 = vmul.f32 1.442695, %v1175_v20 }
 0x32c   : > { %8113 = vpow2.f32 %v1176_v22  ;;  %v6534_v22 = vld [vmem:[%s9692_s6 + $0x1] ss:$0 sm:$0xff] }
 0x336   : > { %v8114_v23 = vpop.eup %8113 }
 0x337   : > { %v1178_v24 = vsel %vm1171_vm11, %v8114_v23, 0.0 }
 0x338   : > { %1179 = vadd.xlane.f32.xlu1 %v1178_v24 }
 0x3c5   : > { %v1180_v29 = vpop.xlane.xlu1 %1179 }
 0x3c6   : > { %8115 = vrcp.f32 %v1180_v29 }
 0x3d0   : > { %v8116_v34 = vpop.eup %8115 }
 0x3d1   : > { %v1182_v37 = vmul.f32 %v8116_v34, %v8114_v23 }
 0x3d3   : > { %6433 = vst.msk [vmem:[%s8488_s2] sm:$0xff] %vm1171_vm11, %v1182_v37  ;;  %7017 = vmatmul.mubr.msk.f32.vlgmr.msra.gmra.mrb[4].mxu1 %vm1171_vm11, %v1182_v37 }
 0x3d4   : > { %7706 = vmatpush3.bf16.msra.mxu1 %v7705_v36  ;;  %7023 = vmatprep.mubr.msk.f32.mxu1 %vm8317_vm0, %v8318_v8 }
 0x3d5   : > { %7033 = vmatprep.subr.mxu1 %v8318_v8 }
 0x3d7   : > { %7024 = vmatmul.mubr.msk.f32.vlgmr.msra.gmra.mrb[6].mxu1 %vm810_vm2, %v8538_v30 }
 0x3d8   : > { %7034 = vmatpush3.msra.mxu1 %v8538_v30  ;;  %7035 = vmatprep.mubr.msk.f32.mxu1 %vm8317_vm0, %v8318_v8 }
 0x3d9   : > { %7713 = vmatprep.subr.bf16.mxu1 %v8316_v5 }
 0x4a6   : > { %v8652_v55 = vpop.f32.mrb[4].mxu1 }
 0x4a7   : > { %v7018_v57 = vpop.f32.mrb[5].mxu1  ;;  %7043 = vmatmul.mubr.msk.f32.vlgmr.msra.gmra.mrb[8].mxu0 %vm810_vm2, %v8652_v55 }
 0x4a8   : > { %7056 = vmatprep.mubr.msk.f32.mxu0 %vm8317_vm0, %v8318_v8 }
 0x4aa   : > { %v1335_v63 = vpop.f32.mrb[6].mxu1 }
 0x4ab   : > { %v7025_v1 = vpop.f32.mrb[7].mxu1  ;;  %v1499_v2 = vadd.f32 %v1462_v35, %v1335_v63  ;;  %v1500_v3 = vadd.f32 %v1466_v58, %v1335_v63  ;;  %v1501_v4 = vadd.f32 %v1470_v59, %v1335_v63  ;;  %v1502_v6 = vadd.f32 %v1474_v60, %v1335_v63 }
 0x4ac   : > { %v1503_v7 = vadd.f32 %v1478_v61, %v1335_v63  ;;  %v1504_v9 = vadd.f32 %v1482_v32, %v1335_v63  ;;  %v1505_v10 = vadd.f32 %v1486_v62, %v1335_v63  ;;  %v1506_v11 = vadd.f32 %v1490_v38, %v1335_v63 }
 0x4ad   : > { %v1513_v12 = vadd.f32 %v6533_v0, %v1499_v2  ;;  %v1514_v13 = vadd.f32 %v6533_v0, %v1500_v3  ;;  %v1515_v14 = vadd.f32 %v6533_v0, %v1501_v4  ;;  %v1516_v16 = vadd.f32 %v6533_v0, %v1502_v6 }
 0x4ae   : > { %v1517_v17 = vadd.f32 %v6533_v0, %v1503_v7  ;;  %v1518_v18 = vadd.f32 %v6533_v0, %v1504_v9  ;;  %v1519_v19 = vadd.f32 %v6533_v0, %v1505_v10  ;;  %v1520_v20 = vadd.f32 %v6533_v0, %v1506_v11 }
 0x4af   : > { %8117 = vtanh.f32 %v1513_v12 }
 0x4b0   : > { %8119 = vtanh.f32 %v1514_v13 }
 0x4b1   : > { %8121 = vtanh.f32 %v1515_v14 }
 0x4b2   : > { %8123 = vtanh.f32 %v1516_v16 }
 0x4b3   : > { %8125 = vtanh.f32 %v1517_v17 }
 0x4b4   : > { %8127 = vtanh.f32 %v1518_v18 }
 0x4b5   : > { %8129 = vtanh.f32 %v1519_v19 }
 0x4b6   : > { %8131 = vtanh.f32 %v1520_v20 }
 0x4b9   : > { %v8118_v23 = vpop.eup %8117 }
 0x4ba   : > { %v8120_v24 = vpop.eup %8119  ;;  %v1535_v25 = vmul.f32 %v8118_v23, %v6534_v22 }
 0x4bb   : > { %v8122_v26 = vpop.eup %8121  ;;  %v1536_v28 = vmul.f32 %v8120_v24, %v6534_v22 }
 0x4bc   : > { %v8124_v29 = vpop.eup %8123  ;;  %v1543_v31 = vsel %vm810_vm2, %v1535_v25, 0.0  ;;  %v1537_v33 = vmul.f32 %v8122_v26, %v6534_v22  ;;  %v1847_v26 = vld [vmem:[%s9655_s10] sm:$0xff] }
 0x4bd   : > { %v8126_v34 = vpop.eup %8125  ;;  %1544 = vadd.xlane.f32.xlu0 %v1543_v31  ;;  %v1546_v36 = vsel %vm810_vm2, %v1536_v28, 0.0  ;;  %v1538_v37 = vmul.f32 %v8124_v29, %v6534_v22  ;;  %v1848_v28 = vld [vmem:[%s9655_s10 + $0x8] sm:$0xff] }
 0x4be   : > { %v8128_v39 = vpop.eup %8127  ;;  %1547 = vadd.xlane.f32.xlu1 %v1546_v36  ;;  %v1549_v40 = vsel %vm810_vm2, %v1537_v33, 0.0  ;;  %v1539_v42 = vmul.f32 %v8126_v34, %v6534_v22  ;;  %v7717_v29 = vpack.c.bf16 %v1848_v28, %v1847_v26  ;;  %v1700_v33 = vld [vmem:[%s9653_s8] sm:$0xff]  ;;  %v1701_v34 = vld [vmem:[%s9653_s8 + $0x8] sm:$0xff]  ;;  %v6578_v26 = vld [vmem:[%s9656_s11 + $0x50] sm:$0xff] }
 0x4bf   : > { %v8130_v43 = vpop.eup %8129  ;;  %v1552_v44 = vsel %vm810_vm2, %v1538_v37, 0.0  ;;  %v1540_v45 = vmul.f32 %v8128_v39, %v6534_v22  ;;  %v7714_v37 = vpack.c.bf16 %v1701_v34, %v1700_v33  ;;  %v6579_v28 = vld [vmem:[%s9656_s11 + $0x58] sm:$0xff]  ;;  %v2622_v33 = vld [vmem:[%s9656_s11 + $0x20] sm:$0xff]  ;;  %v6587_v34 = vld [vmem:[%s9656_s11 + $0x90] sm:$0xff] }
 0x4c0   : > { %v8132_v46 = vpop.eup %8131  ;;  %v1555_v47 = vsel %vm810_vm2, %v1539_v42, 0.0  ;;  %v1541_v48 = vmul.f32 %v8130_v43, %v6534_v22  ;;  %7718 = vmatpush3.bf16.msra.mxu0 %v7717_v29  ;;  %v6543_v42 = vld [vmem:[%s9654_s9 + $0x18] sm:$0xff] }
 0x4c1   : > { %1550 = vadd.xlane.f32.xlu0 %v1549_v40  ;;  %v1558_v50 = vsel %vm810_vm2, %v1540_v45, 0.0  ;;  %v1542_v51 = vmul.f32 %v8132_v46, %v6534_v22  ;;  %7722 = vmatprep.subr.bf16.mxu0 %v8316_v5  ;;  %v6542_v40 = vld [vmem:[%s9654_s9 + $0x10] sm:$0xff]  ;;  %v6547_v45 = vld [vmem:[%s9655_s10 + $0x18] sm:$0xff] }
 0x4c2   : > { %1553 = vadd.xlane.f32.xlu1 %v1552_v44  ;;  %v1561_v52 = vsel %vm810_vm2, %v1541_v48, 0.0  ;;  %v7720_v43 = vpack.c.bf16 %v6543_v42, %v6542_v40  ;;  %v6546_v44 = vld [vmem:[%s9655_s10 + $0x10] sm:$0xff]  ;;  %v6541_v48 = vld [vmem:[%s9653_s8 + $0x18] sm:$0xff]  ;;  %v6581_v42 = vld [vmem:[%s9656_s11 + $0x60] sm:$0xff] }
 0x4c3   : > { %v1564_v53 = vsel %vm810_vm2, %v1542_v51, 0.0  ;;  %v7726_v46 = vpack.c.bf16 %v6547_v45, %v6546_v44  ;;  %v6552_v51 = vld [vmem:[%s9653_s8 + $0x28] sm:$0xff]  ;;  %v6589_v44 = vld [vmem:[%s9656_s11 + $0xa0] sm:$0xff] }
 0x4c4   : > { %v6590_v45 = vld [vmem:[%s9656_s11 + $0xa8] sm:$0xff] }
 0x4c5   : > { %1556 = vadd.xlane.f32.xlu0 %v1555_v47  ;;  %v6540_v47 = vld [vmem:[%s9653_s8 + $0x10] sm:$0xff] }
 0x4c6   : > { %1559 = vadd.xlane.f32.xlu1 %v1558_v50  ;;  %v6551_v50 = vld [vmem:[%s9653_s8 + $0x20] sm:$0xff] }
 0x4c9   : > { %1562 = vadd.xlane.f32.xlu0 %v1561_v52  ;;  %v7723_v52 = vpack.c.bf16 %v6541_v48, %v6540_v47  ;;  %v8911_v47 = vpack.c.bf16 %v6590_v45, %v6589_v44  ;;  %v6583_v48 = vld [vmem:[%s9656_s11 + $0x70] sm:$0xff] }
 0x4ca   : > { %1565 = vadd.xlane.f32.xlu1 %v1564_v53  ;;  %v7732_v53 = vpack.c.bf16 %v6552_v51, %v6551_v50  ;;  %v6584_v50 = vld [vmem:[%s9656_s11 + $0x78] sm:$0xff]  ;;  %v6591_v51 = vld [vmem:[%s9656_s11 + $0xb0] sm:$0xff] }
 0x54a   : > { %v1545_v57 = vpop.xlane.xlu0 %1544 }
 0x54b   : > { %v1548_v35 = vpop.xlane.xlu1 %1547  ;;  %v1578_v58 = vrot.slane %v1545_v57, %v8590_v56  ;;  %v6553_v57 = vld [vmem:[%s9654_s9 + $0x20] sm:$0xff] }
 0x54c   : > { %v1582_v59 = vrot.slane %v1548_v35, %v8590_v56  ;;  %v6554_v35 = vld [vmem:[%s9654_s9 + $0x28] sm:$0xff] }
 0x54e   : > { %v1551_v60 = vpop.xlane.xlu0 %1550  ;;  %v1607_v62 = vsel %vm1155_vm3, %v1582_v59, %v1578_v58  ;;  %v6564_v58 = vld [vmem:[%s9654_s9 + $0x30] sm:$0xff]  ;;  %v6565_v59 = vld [vmem:[%s9654_s9 + $0x38] sm:$0xff] }
 0x54f   : > { %v1586_v61 = vrot.slane %v1551_v60, %v8590_v56  ;;  %v1554_v32 = vpop.xlane.xlu1 %1553 }
 0x550   : > { %v1590_v38 = vrot.slane %v1554_v32, %v8590_v56  ;;  %v7729_v32 = vpack.c.bf16 %v6554_v35, %v6553_v57  ;;  %v6585_v35 = vld [vmem:[%s9656_s11 + $0x80] sm:$0xff] }
 0x551   : > { %v1608_v63 = vsel %vm1157_vm4, %v1586_v61, %v1607_v62  ;;  %v7738_v62 = vpack.c.bf16 %v6565_v59, %v6564_v58  ;;  %v6586_v58 = vld [vmem:[%s9656_s11 + $0x88] sm:$0xff] }
 0x552   : > { %v1557_v0 = vpop.xlane.xlu0 %1556  ;;  %v1609_v3 = vsel %vm1159_vm5, %v1590_v38, %v1608_v63  ;;  %v6557_v38 = vld [vmem:[%s9655_s10 + $0x20] sm:$0xff]  ;;  %v6558_v63 = vld [vmem:[%s9655_s10 + $0x28] sm:$0xff]  ;;  %v8948_v59 = vpack.c.bf16 %v6586_v58, %v6585_v35 }
 0x553   : > { %v1594_v1 = vrot.slane %v1557_v0, %v8590_v56  ;;  %v1560_v2 = vpop.xlane.xlu1 %1559  ;;  %v6568_v0 = vld [vmem:[%s9655_s10 + $0x30] sm:$0xff] }
 0x554   : > { %v1598_v4 = vrot.slane %v1560_v2, %v8590_v56 }
 0x555   : > { %v1610_v6 = vsel %vm1161_vm6, %v1594_v1, %v1609_v3  ;;  %v6569_v1 = vld [vmem:[%s9655_s10 + $0x38] sm:$0xff] }
 0x556   : > { %v1563_v7 = vpop.xlane.xlu0 %1562  ;;  %v1611_v11 = vsel %vm1163_vm7, %v1598_v4, %v1610_v6  ;;  %v7735_v6 = vpack.c.bf16 %v6558_v63, %v6557_v38 }
 0x557   : > { %v1602_v9 = vrot.slane %v1563_v7, %v8590_v56  ;;  %v1566_v10 = vpop.xlane.xlu1 %1565  ;;  %v7744_v7 = vpack.c.bf16 %v6569_v1, %v6568_v0 }
 0x558   : > { %v1606_v12 = vrot.slane %v1566_v10, %v8590_v56  ;;  %v6563_v10 = vld [vmem:[%s9653_s8 + $0x38] sm:$0xff] }
 0x559   : > { %v1612_v13 = vsel %vm1165_vm8, %v1602_v9, %v1611_v11  ;;  %v6562_v9 = vld [vmem:[%s9653_s8 + $0x30] sm:$0xff] }
 0x55a   : > { %v1613_v14 = vsel %vm1167_vm10, %v1606_v12, %v1612_v13  ;;  %v6574_v11 = vld [vmem:[%s9656_s11 + $0x30] sm:$0xff]  ;;  %v6575_v12 = vld [vmem:[%s9656_s11 + $0x38] sm:$0xff] }
 0x55b   : > { %v1615_v16 = vmul.f32 %v8612_v15, %v1613_v14 }
 0x55d   : > { %v1616_v17 = vsel %vm1171_vm11, %v1615_v16, -inf }
 0x55e   : > { %1617 = vmax.xlane.f32.xlu0 %v1616_v17  ;;  %v8817_v17 = vpack.c.bf16 %v6575_v12, %v6574_v11 }
 0x57a   : > { %v8697_v18 = vpop.f32.mrb[8].mxu0 }
 0x57b   : > { %v7044_v19 = vpop.f32.mrb[9].mxu0 }
 0x57c   : > { %v2619_v19 = vld [vmem:[%s9656_s11 + $0x8] sm:$0xff] }
 0x5eb   : > { %v1618_v20 = vpop.xlane.xlu0 %1617 }
 0x5ec   : > { %v1619_v22 = vsub.f32 %v1615_v16, %v1618_v20  ;;  %v7741_v16 = vpack.c.bf16 %v6563_v10, %v6562_v9  ;;  %v6577_v20 = vld [vmem:[%s9656_s11 + $0x48] sm:$0xff] }
 0x5ee   : > { %v1620_v23 = vmul.f32 1.442695, %v1619_v22 }
 0x5f0   : > { %8133 = vpow2.f32 %v1620_v23 }
 0x5fa   : > { %v8134_v24 = vpop.eup %8133 }
 0x5fb   : > { %v1622_v25 = vsel %vm1171_vm11, %v8134_v24, 0.0 }
 0x5fc   : > { %1623 = vadd.xlane.f32.xlu1 %v1622_v25  ;;  %v2621_v25 = vld [vmem:[%s9656_s11 + $0x18] sm:$0xff] }
 0x689   : > { %v1624_v31 = vpop.xlane.xlu1 %1623 }
 0x68a   : > { %8135 = vrcp.f32 %v1624_v31  ;;  %v8868_v31 = vpack.c.bf16 %v6579_v28, %v6578_v26  ;;  %v6539_v28 = vld [vmem:[%s9657_s12] ss:$0 sm:$0xff] }
 0x694   : > { %v8136_v36 = vpop.eup %8135 }
 0x695   : > { %v8713_v39 = vmul.f32 %v8136_v36, %v8134_v24  ;;  %v2620_v24 = vld [vmem:[%s9656_s11 + $0x10] sm:$0xff]  ;;  %v6588_v36 = vld [vmem:[%s9656_s11 + $0x98] sm:$0xff] }
 0x696   : > { %v8866_v29 = vpack.c.bf16 %v2621_v25, %v2620_v24  ;;  %v8890_v40 = vpack.c.bf16 %v6588_v36, %v6587_v34 }
 0x697   : > { %7036 = vmatmul.mubr.msk.f32.vlgmr.msra.gmra.mrb[8].mxu1 %vm1171_vm11, %v8713_v39 }
 0x698   : > { %7715 = vmatpush3.bf16.msra.mxu1 %v7714_v37  ;;  %7049 = vmatprep.mubr.msk.f32.mxu1 %vm8317_vm0, %v8318_v8 }
 0x699   : > { %7719 = vmatprep.subr.bf16.mxu1 %v8316_v5 }
 0x69b   : > { %7050 = vmatmul.mubr.msk.f32.vlgmr.msra.gmra.mrb[10].mxu1 %vm810_vm2, %v8519_v21 }
 0x69c   : > { %7721 = vmatpush3.bf16.msra.mxu1 %v7720_v43  ;;  %7063 = vmatprep.mubr.msk.f32.mxu1 %vm8317_vm0, %v8318_v8  ;;  %v6582_v43 = vld [vmem:[%s9656_s11 + $0x68] sm:$0xff] }
 0x69d   : > { %7725 = vmatprep.subr.bf16.mxu1 %v8316_v5 }
 0x69f   : > { %7064 = vmatmul.mubr.msk.f32.vlgmr.msra.gmra.mrb[12].mxu1 %vm810_vm2, %v8652_v55 }
 0x6a0   : > { %7727 = vmatpush3.bf16.msra.mxu1 %v7726_v46  ;;  %7077 = vmatprep.mubr.msk.f32.mxu1 %vm8317_vm0, %v8318_v8  ;;  %v8909_v46 = vpack.c.bf16 %v6582_v43, %v6581_v42 }
 0x6a1   : > { %7731 = vmatprep.subr.bf16.mxu1 %v8316_v5 }
 0x76a   : > { %v1696_v60 = vpop.f32.mrb[8].mxu1 }
 0x76b   : > { %v7037_v61 = vpop.f32.mrb[9].mxu1  ;;  %7057 = vmatmul.mubr.msk.f32.vlgmr.msra.gmra.mrb[10].mxu0 %vm810_vm2, %v1696_v60  ;;  %7078 = vmatmul.mubr.msk.f32.vlgmr.msra.gmra.mrb[14].mxu1 %vm810_vm2, %v1696_v60 }
 0x76c   : > { %7724 = vmatpush3.bf16.msra.mxu0 %v7723_v52  ;;  %7733 = vmatpush3.bf16.msra.mxu1 %v7732_v53  ;;  %v6592_v52 = vld [vmem:[%s9656_s11 + $0xb8] sm:$0xff]  ;;  %v8932_v53 = vpack.c.bf16 %v6584_v50, %v6583_v48  ;;  %v6572_v50 = vld [vmem:[%s9657_s12 + $0x3] ss:$0 sm:$0xff] }
 0x76d   : > { %7070 = vmatprep.mubr.msk.f32.mxu0 %vm8317_vm0, %v8318_v8  ;;  %7728 = vmatprep.subr.bf16.mxu0 %v8316_v5  ;;  %v8934_v57 = vpack.c.bf16 %v6592_v52, %v6591_v51  ;;  %v6561_v52 = vld [vmem:[%s9657_s12 + $0x2] ss:$0 sm:$0xff] }
 0x76e   : > { %v1843_v2 = vpop.f32.mrb[10].mxu1  ;;  %7091 = vmatprep.mubr.msk.f32.mxu1 %vm8317_vm0, %v8318_v8  ;;  %7737 = vmatprep.subr.bf16.mxu1 %v8316_v5 }
 0x76f   : > { %v8787_v3 = vadd.f32 %v1843_v2, %v8697_v18  ;;  %v7051_v4 = vpop.f32.mrb[11].mxu1  ;;  %7071 = vmatmul.mubr.msk.f32.vlgmr.msra.gmra.mrb[12].mxu0 %vm810_vm2, %v8519_v21  ;;  %7092 = vmatmul.mubr.msk.f32.vlgmr.msra.gmra.mrb[16].mxu1 %vm810_vm2, %v8519_v21  ;;  %v2618_v18 = vld [vmem:[%s9656_s11] sm:$0xff] }
 0x770   : > { %7730 = vmatpush3.bf16.msra.mxu0 %v7729_v32  ;;  %7739 = vmatpush3.bf16.msra.mxu1 %v7738_v62  ;;  %v8840_v22 = vpack.c.bf16 %v2619_v19, %v2618_v18 }
 0x771   : > { %7084 = vmatprep.mubr.msk.f32.mxu0 %vm8317_vm0, %v8318_v8  ;;  %7734 = vmatprep.subr.bf16.mxu0 %v8316_v5 }
 0x772   : > { %v8808_v13 = vpop.f32.mrb[12].mxu1  ;;  %7105 = vmatprep.mubr.msk.f32.mxu1 %vm8317_vm0, %v8318_v8  ;;  %7743 = vmatprep.subr.bf16.mxu1 %v8316_v5 }
 0x773   : > { %v7065_v14 = vpop.f32.mrb[13].mxu1  ;;  %7085 = vmatmul.mubr.msk.f32.vlgmr.msra.gmra.mrb[14].mxu0 %vm810_vm2, %v8652_v55  ;;  %7106 = vmatmul.mubr.msk.f32.vlgmr.msra.gmra.mrb[18].mxu1 %vm810_vm2, %v8652_v55  ;;  %v6576_v55 = vld [vmem:[%s9656_s11 + $0x40] sm:$0xff] }
 0x774   : > { %7736 = vmatpush3.bf16.msra.mxu0 %v7735_v6  ;;  %7745 = vmatpush3.bf16.msra.mxu1 %v7744_v7  ;;  %v8842_v23 = vpack.c.bf16 %v6577_v20, %v6576_v55 }
 0x775   : > { %7098 = vmatprep.mubr.msk.f32.mxu0 %vm8317_vm0, %v8318_v8  ;;  %7740 = vmatprep.subr.bf16.mxu0 %v8316_v5 }
 0x776   : > { %7119 = vmatprep.mubr.msk.f32.mxu1 %vm8317_vm0, %v8318_v8  ;;  %7755 = vmatprep.subr.bf16.mxu1 %v8316_v5 }
 0x777   : > { %7099 = vmatmul.mubr.msk.f32.vlgmr.msra.gmra.mrb[16].mxu0 %vm810_vm2, %v1696_v60  ;;  %7120 = vmatmul.mubr.msk.f32.vlgmr.msra.gmra.mrb[20].mxu1 %vm810_vm2, %v1696_v60 }
 0x778   : > { %7742 = vmatpush3.bf16.msra.mxu0 %v7741_v16  ;;  %7757 = vmatpush3.bf16.msra.mxu1 %v8817_v17 }
 0x779   : > { %7112 = vmatprep.mubr.msk.f32.mxu0 %vm8317_vm0, %v8318_v8  ;;  %7746 = vmatprep.subr.bf16.mxu0 %v8316_v5 }
 0x77a   : > { %7758 = vmatprep.subr.bf16.mxu1 %v8316_v5  ;;  %7149 = vmatprep.mubr.msk.f32.mxu1 %vm8317_vm0, %v8318_v8 }
 0x77b   : > { %7113 = vmatmul.mubr.msk.f32.vlgmr.msra.gmra.mrb[18].mxu0 %vm810_vm2, %v8519_v21  ;;  %v2623_v21 = vld [vmem:[%s9656_s11 + $0x28] sm:$0xff] }
 0x77c   : > { %7748 = vmatpush3.bf16.msra.mxu0 %v8840_v22  ;;  %7760 = vmatpush3.bf16.msra.mxu1 %v8842_v23  ;;  %v8888_v37 = vpack.c.bf16 %v2623_v21, %v2622_v33 }
 0x77d   : > { %7749 = vmatprep.subr.bf16.mxu0 %v8316_v5  ;;  %7761 = vmatprep.subr.bf16.mxu1 %v8316_v5 }
 0x77e   : > { %7134 = vmatprep.mubr.msk.f32.mxu0 %vm8317_vm0, %v8318_v8 }
 0x780   : > { %7751 = vmatpush3.bf16.msra.mxu0 %v8866_v29  ;;  %7763 = vmatpush3.bf16.msra.mxu1 %v8868_v31 }
 0x781   : > { %7752 = vmatprep.subr.bf16.mxu0 %v8316_v5  ;;  %7773 = vmatprep.subr.bf16.mxu1 %v8316_v5 }
 0x783   : > { %7150 = vmatmul.mubr.f32.vlgmr.msra.gmra.mrb[22].mxu1 %v8318_v8 }
 0x784   : > { %7754 = vmatpush3.bf16.msra.mxu0 %v8888_v37  ;;  %7775 = vmatpush3.bf16.msra.mxu1 %v8890_v40 }
 0x785   : > { %7764 = vmatprep.subr.bf16.mxu0 %v8316_v5  ;;  %7776 = vmatprep.subr.bf16.mxu1 %v8316_v5 }
 0x786   : > { %7179 = vmatprep.mubr.msk.f32.mxu1 %vm8317_vm0, %v8318_v8 }
 0x787   : > { %7135 = vmatmul.mubr.f32.vlgmr.msra.gmra.mrb[20].mxu0 %v8318_v8 }
 0x788   : > { %7766 = vmatpush3.bf16.msra.mxu0 %v8909_v46  ;;  %7778 = vmatpush3.bf16.msra.mxu1 %v8911_v47 }
 0x789   : > { %7767 = vmatprep.subr.bf16.mxu0 %v8316_v5  ;;  %7779 = vmatprep.subr.bf16.mxu1 %v8316_v5 }
 0x78a   : > { %7164 = vmatprep.mubr.msk.f32.mxu0 %vm8317_vm0, %v8318_v8 }
 0x78c   : > { %7769 = vmatpush3.bf16.msra.mxu0 %v8932_v53  ;;  %7781 = vmatpush3.bf16.msra.mxu1 %v8934_v57 }
 0x78d   : > { %7770 = vmatprep.subr.bf16.mxu0 %v8316_v5  ;;  %7791 = vmatprep.subr.bf16.mxu1 %v8316_v5 }
 0x78f   : > { %7180 = vmatmul.mubr.f32.vlgmr.msra.gmra.mrb[24].mxu1 %v8318_v8 }
 0x790   : > { %7772 = vmatpush3.bf16.msra.mxu0 %v8948_v59  ;;  %7793 = vmatpush3.bf16.msra.mxu1 %v8817_v17 }
 0x791   : > { %7782 = vmatprep.subr.bf16.mxu0 %v8316_v5  ;;  %7794 = vmatprep.subr.bf16.mxu1 %v8316_v5 }
 0x792   : > { %7209 = vmatprep.mubr.msk.f32.mxu1 %vm8317_vm0, %v8318_v8 }
 0x793   : > { %7165 = vmatmul.mubr.f32.vlgmr.msra.gmra.mrb[22].mxu0 %v8318_v8 }
 0x794   : > { %7784 = vmatpush3.bf16.msra.mxu0 %v8840_v22  ;;  %7796 = vmatpush3.bf16.msra.mxu1 %v8842_v23 }
 0x795   : > { %7785 = vmatprep.subr.bf16.mxu0 %v8316_v5  ;;  %7797 = vmatprep.subr.bf16.mxu1 %v8316_v5 }
 0x796   : > { %7194 = vmatprep.mubr.msk.f32.mxu0 %vm8317_vm0, %v8318_v8 }
 0x798   : > { %7787 = vmatpush3.bf16.msra.mxu0 %v8866_v29  ;;  %7799 = vmatpush3.bf16.msra.mxu1 %v8868_v31 }
 0x799   : > { %7788 = vmatprep.subr.bf16.mxu0 %v8316_v5  ;;  %7809 = vmatprep.subr.bf16.mxu1 %v8316_v5 }
 0x79c   : > { %7790 = vmatpush3.bf16.msra.mxu0 %v8888_v37 }
 0x79d   : > { %7800 = vmatprep.subr.bf16.mxu0 %v8316_v5 }
 0x83e   : > { %v1918_v60 = vpop.f32.mrb[10].mxu0  ;;  %v2146_v61 = vpop.f32.mrb[14].mxu1 }
 0x83f   : > { %v1922_v32 = vadd.f32 %v1918_v60, %v8787_v3  ;;  %v7058_v62 = vpop.f32.mrb[11].mxu0  ;;  %v7079_v38 = vpop.f32.mrb[15].mxu1 }
 0x841   : > { %v8983_v36 = vadd.f32 %v6539_v28, %v1922_v32 }
 0x842   : > { %v2073_v63 = vpop.f32.mrb[12].mxu0  ;;  %v2302_v0 = vpop.f32.mrb[16].mxu1 }
 0x843   : > { %v2074_v1 = vadd.f32 %v2073_v63, %v8808_v13  ;;  %v7072_v2 = vpop.f32.mrb[13].mxu0  ;;  %v7093_v4 = vpop.f32.mrb[17].mxu1  ;;  %v6550_v13 = vld [vmem:[%s9657_s12 + $0x1] ss:$0 sm:$0xff] }
 0x845   : > { %v2150_v6 = vadd.f32 %v2146_v61, %v2074_v1 }
 0x846   : > { %v2232_v7 = vpop.f32.mrb[14].mxu0  ;;  %v2461_v9 = vpop.f32.mrb[18].mxu1 }
 0x847   : > { %v2303_v10 = vadd.f32 %v2302_v0, %v2232_v7  ;;  %v7086_v11 = vpop.f32.mrb[15].mxu0  ;;  %v7107_v12 = vpop.f32.mrb[19].mxu1  ;;  %v8977_v26 = vadd.f32 %v6550_v13, %v2150_v6 }
 0x848   : > { %v2963_v12 = vstv %s2962_s4  ;;  %s4331_s4 = scvt.s32.f32 %s9204_s3 }
 0x84a   : > { %v2375_v14 = vpop.f32.mrb[16].mxu0  ;;  %v2604_v16 = vpop.f32.mrb[20].mxu1 }
 0x84b   : > { %v2379_v18 = vadd.f32 %v2375_v14, %v2303_v10  ;;  %v7100_v19 = vpop.f32.mrb[17].mxu0  ;;  %v7121_v55 = vpop.f32.mrb[21].mxu1 }
 0x84c   : > { %v2964_v55 = vmul.f32 0.0, %v2963_v12 }
 0x84d   : > { %v8995_v32 = vadd.f32 %v6561_v52, %v2379_v18  ;;  %v2960_v18 = vstv %s2959_s29  ;;  %s9142_s29 = ssub.f32 1.0, %s3986_s28 }
 0x84e   : > { %v2531_v3 = vpop.f32.mrb[18].mxu0 }
 0x84f   : > { %v2532_v20 = vadd.f32 %v2531_v3, %v2461_v9  ;;  %v7114_v24 = vpop.f32.mrb[19].mxu0 }
 0x851   : > { %v2608_v25 = vadd.f32 %v2604_v16, %v2532_v20  ;;  %v3300_v20 = vstv %s9005_s24  ;;  %s9273_s24 = scalar_select %p4674_p0, 1, 0 }
 0x853   : > { %v8989_v51 = vadd.f32 %v6572_v50, %v2608_v25  ;;  %s4676_s1 = scvt.s32.f32 %s9273_s24 }
 0x856   : > { %v2778_v33 = vpop.f32.mrb[22].mxu1 }
 0x857   : > { %v2782_v21 = vadd.f32 %v2778_v33, %v8977_v26  ;;  %v7151_v34 = vpop.f32.mrb[23].mxu1 }
 0x859   : > { %v6580_v42 = vmul.f32 -1.442695, %v2782_v21 }
 0x85a   : > { %v2694_v43 = vpop.f32.mrb[20].mxu0 }
 0x85b   : > { %8137 = vpow2.f32 %v6580_v42  ;;  %v2698_v44 = vadd.f32 %v2694_v43, %v8983_v36  ;;  %v7136_v45 = vpop.f32.mrb[21].mxu0 }
 0x85d   : > { %v6573_v48 = vmul.f32 -1.442695, %v2698_v44 }
 0x85f   : > { %8139 = vpow2.f32 %v6573_v48 }
 0x862   : > { %v2941_v35 = vpop.f32.mrb[24].mxu1 }
 0x863   : > { %v2945_v58 = vadd.f32 %v2941_v35, %v8989_v51  ;;  %v7181_v60 = vpop.f32.mrb[25].mxu1 }
 0x865   : > { %v8138_v61 = vpop.eup %8137  ;;  %v6593_v62 = vmul.f32 -1.442695, %v2945_v58 }
 0x866   : > { %v2786_v38 = vadd.f32 1.0, %v8138_v61  ;;  %v2862_v63 = vpop.f32.mrb[22].mxu0 }
 0x867   : > { %v2866_v0 = vadd.f32 %v2862_v63, %v8995_v32  ;;  %v7166_v1 = vpop.f32.mrb[23].mxu0  ;;  %8141 = vpow2.f32 %v6593_v62 }
 0x868   : > { %8143 = vrcp.f32 %v2786_v38 }
 0x869   : > { %v8140_v2 = vpop.eup %8139  ;;  %8145 = vtanh.f32 %v2866_v0 }
 0x86a   : > { %v2702_v4 = vadd.f32 1.0, %v8140_v2 }
 0x86c   : > { %8147 = vrcp.f32 %v2702_v4 }
 0x871   : > { %v8142_v6 = vpop.eup %8141 }
 0x872   : > { %v8144_v7 = vpop.eup %8143  ;;  %v2949_v11 = vadd.f32 1.0, %v8142_v6 }
 0x873   : > { %v8146_v9 = vpop.eup %8145  ;;  %v2952_v14 = vmul.f32 0.0, %v8144_v7 }
 0x874   : > { %8149 = vrcp.f32 %v2949_v11 }
 0x876   : > { %v8148_v10 = vpop.eup %8147 }
 0x877   : > { %v2953_v16 = vmul.f32 %v8148_v10, %v8146_v9 }
 0x879   : > { %v2954_v19 = vadd.f32 %v2953_v16, %v2952_v14 }
 0x87b   : > { %8151 = vtanh.f32 %v2954_v19  ;;  %v2966_v3 = vmul.f32 %v2960_v18, %v2954_v19 }
 0x87d   : > { %v9008_v24 = vadd.f32 %v2966_v3, %v2964_v55 }
 0x87e   : > { %v8150_v13 = vpop.eup %8149 }
 0x87f   : > { %v9013_v25 = vmul.f32 %v3300_v20, %v9008_v24 }
 0x885   : > { %v8152_v28 = vpop.eup %8151 }
 0x886   : > { %v2956_v33 = vmul.f32 %v8152_v28, %v8150_v13  ;;  %v3297_v28 = vstv %s3296_s30  ;;  %s9212_s30 = ssub.f32 1.0, %s4331_s4 }
 0x888   : > { %v9015_v21 = vmul.f32 %v2960_v18, %v2956_v33  ;;  %v3287_v18 = vrot.slane %v9008_v24, 7 }
 0x88a   : > { %v9018_v34 = vadd.f32 %v2964_v55, %v9015_v21 }
 0x88c   : > { %7195 = vmatmul.mubr.msk.f32.vlgmr.msra.gmra.mrb[24].mxu0 %vm2624_vm12, %v9018_v34  ;;  %7210 = vmatmul.mubr.msk.f32.vlgmr.msra.gmra.mrb[26].mxu1 %vm2624_vm12, %v9018_v34 }
 0x88d   : > { %7802 = vmatpush3.bf16.msra.mxu0 %v8909_v46  ;;  %7811 = vmatpush3.bf16.msra.mxu1 %v8890_v40 }
 0x88e   : > { %7803 = vmatprep.subr.bf16.mxu0 %v8316_v5  ;;  %7812 = vmatprep.subr.bf16.mxu1 %v8316_v5 }
 0x88f   : > { %7224 = vmatprep.mubr.msk.f32.mxu0 %vm8317_vm0, %v8318_v8  ;;  %7239 = vmatprep.mubr.msk.f32.mxu1 %vm8317_vm0, %v8318_v8 }
 0x891   : > { %7805 = vmatpush3.bf16.msra.mxu0 %v8932_v53  ;;  %7814 = vmatpush3.bf16.msra.mxu1 %v8911_v47 }
 0x892   : > { %7806 = vmatprep.subr.bf16.mxu0 %v8316_v5  ;;  %7815 = vmatprep.subr.bf16.mxu1 %v8316_v5 }
 0x895   : > { %7808 = vmatpush3.bf16.msra.mxu0 %v8948_v59  ;;  %7817 = vmatpush3.bf16.msra.mxu1 %v8934_v57 }
 0x896   : > { %7818 = vmatprep.subr.bf16.mxu0 %v8316_v5  ;;  %7827 = vmatprep.subr.bf16.mxu1 %v8316_v5 }
 0x898   : > { %7225 = vmatmul.mubr.msk.f32.vlgmr.msra.gmra.mrb[26].mxu0 %vm2624_vm12, %v9018_v34  ;;  %7240 = vmatmul.mubr.msk.f32.vlgmr.msra.gmra.mrb[28].mxu1 %vm2624_vm12, %v9018_v34 }
 0x899   : > { %7820 = vmatpush3.bf16.msra.mxu0 %v8840_v22  ;;  %7829 = vmatpush3.bf16.msra.mxu1 %v8817_v17 }
 0x89a   : > { %7821 = vmatprep.subr.bf16.mxu0 %v8316_v5  ;;  %7830 = vmatprep.subr.bf16.mxu1 %v8316_v5 }
 0x89b   : > { %7254 = vmatprep.mubr.msk.f32.mxu0 %vm8317_vm0, %v8318_v8  ;;  %7269 = vmatprep.mubr.msk.f32.mxu1 %vm8317_vm0, %v8318_v8 }
 0x89d   : > { %7823 = vmatpush3.bf16.msra.mxu0 %v8866_v29  ;;  %7832 = vmatpush3.bf16.msra.mxu1 %v8842_v23 }
 0x89e   : > { %7824 = vmatprep.subr.bf16.mxu0 %v8316_v5  ;;  %7833 = vmatprep.subr.bf16.mxu1 %v8316_v5 }
 0x8a1   : > { %7826 = vmatpush3.bf16.msra.mxu0 %v8888_v37  ;;  %7835 = vmatpush3.bf16.msra.mxu1 %v8868_v31 }
 0x8a2   : > { %7836 = vmatprep.subr.bf16.mxu0 %v8316_v5  ;;  %7845 = vmatprep.subr.bf16.mxu1 %v8316_v5 }
 0x95f   : > { %v3037_v42 = vpop.f32.mrb[24].mxu0  ;;  %v3117_v43 = vpop.f32.mrb[26].mxu1 }
 0x960   : > { %v3042_v44 = vrot.slane %v3037_v42, 7  ;;  %v3122_v45 = vrot.slane %v3117_v43, 7  ;;  %v7196_v48 = vpop.f32.mrb[25].mxu0  ;;  %v7211_v50 = vpop.f32.mrb[27].mxu1  ;;  %v3309_v43 = vrot.slane %v9013_v25, 7 }
 0x961   : > { %v3301_v50 = vmul.f32 %v3300_v20, %v9018_v34 }
 0x962   : > { %v3044_v52 = vadd.f32 %v3042_v44, %v8983_v36  ;;  %v3124_v35 = vadd.f32 %v3122_v45, %v8977_v26  ;;  %v3645_v44 = vstv %s9073_s22  ;;  %s9342_s22 = scalar_select %p5019_p1, 1, 0 }
 0x964   : > { %v6595_v58 = vmul.f32 -1.442695, %v3044_v52  ;;  %v6597_v60 = vmul.f32 -1.442695, %v3124_v35  ;;  %s5021_s27 = scvt.s32.f32 %s9342_s22  ;;  %s8322_s22 = smov 16  }
 0x966   : > { %8153 = vpow2.f32 %v6595_v58 }
 0x967   : > { %8155 = vpow2.f32 %v6597_v60  ;;  %v3303_v60 = vrot.slane %v3301_v50, 7 }
 0x96b   : > { %v3197_v61 = vpop.f32.mrb[26].mxu0  ;;  %v3272_v62 = vpop.f32.mrb[28].mxu1 }
 0x96c   : > { %v3202_v38 = vrot.slane %v3197_v61, 7  ;;  %v3277_v63 = vrot.slane %v3272_v62, 7  ;;  %v7226_v0 = vpop.f32.mrb[27].mxu0  ;;  %v7241_v1 = vpop.f32.mrb[29].mxu1 }
 0x96e   : > { %v3204_v2 = vadd.f32 %v3202_v38, %v8995_v32  ;;  %v3279_v4 = vadd.f32 %v3277_v63, %v8989_v51 }
 0x970   : > { %v8154_v6 = vpop.eup %8153  ;;  %v6600_v7 = vmul.f32 -1.442695, %v3279_v4  ;;  %8157 = vtanh.f32 %v3204_v2 }
 0x971   : > { %v8156_v9 = vpop.eup %8155  ;;  %v3048_v10 = vadd.f32 1.0, %v8154_v6 }
 0x972   : > { %v3128_v11 = vadd.f32 1.0, %v8156_v9  ;;  %8159 = vpow2.f32 %v6600_v7 }
 0x973   : > { %8161 = vrcp.f32 %v3048_v10 }
 0x974   : > { %8163 = vrcp.f32 %v3128_v11 }
 0x97a   : > { %v8158_v12 = vpop.eup %8157 }
 0x97c   : > { %v8160_v14 = vpop.eup %8159 }
 0x97d   : > { %v8162_v16 = vpop.eup %8161  ;;  %v3283_v3 = vadd.f32 1.0, %v8160_v14 }
 0x97e   : > { %v8164_v19 = vpop.eup %8163  ;;  %v3290_v55 = vmul.f32 %v8162_v16, %v8158_v12 }
 0x97f   : > { %v3289_v13 = vmul.f32 %v8164_v19, %v3287_v18  ;;  %8165 = vrcp.f32 %v3283_v3 }
 0x981   : > { %v3291_v33 = vadd.f32 %v3290_v55, %v3289_v13 }
 0x983   : > { %8167 = vtanh.f32 %v3291_v33  ;;  %v3306_v42 = vmul.f32 %v3297_v28, %v3291_v33 }
 0x985   : > { %v9077_v24 = vadd.f32 %v3309_v43, %v3306_v42 }
 0x987   : > { %v9082_v45 = vmul.f32 %v3645_v44, %v9077_v24 }
 0x989   : > { %v8166_v48 = vpop.eup %8165 }
 0x98d   : > { %v8168_v52 = vpop.eup %8167 }
 0x98e   : > { %v3293_v35 = vmul.f32 %v8168_v52, %v8166_v48  ;;  %v3632_v48 = vrot.slane %v9077_v24, 7 }
 0x990   : > { %v9087_v58 = vmul.f32 %v3297_v28, %v3293_v35 }
 0x992   : > { %v9090_v61 = vadd.f32 %v3303_v60, %v9087_v58 }
 0x994   : > { %v3313_v25 = vrot.slane %v9090_v61, 1 }
 0x996   : > { %7255 = vmatmul.mubr.msk.f32.vlgmr.msra.gmra.mrb[28].mxu0 %vm2624_vm12, %v3313_v25  ;;  %7270 = vmatmul.mubr.msk.f32.vlgmr.msra.gmra.mrb[30].mxu1 %vm2624_vm12, %v3313_v25 }
 0x997   : > { %7838 = vmatpush3.bf16.msra.mxu0 %v8909_v46  ;;  %7847 = vmatpush3.bf16.msra.mxu1 %v8890_v40 }
 0x998   : > { %7839 = vmatprep.subr.bf16.mxu0 %v8316_v5  ;;  %7848 = vmatprep.subr.bf16.mxu1 %v8316_v5 }
 0x999   : > { %7284 = vmatprep.mubr.msk.f32.mxu0 %vm8317_vm0, %v8318_v8  ;;  %7299 = vmatprep.mubr.msk.f32.mxu1 %vm8317_vm0, %v8318_v8 }
 0x99b   : > { %7841 = vmatpush3.bf16.msra.mxu0 %v8932_v53  ;;  %7850 = vmatpush3.bf16.msra.mxu1 %v8911_v47 }
 0x99c   : > { %7842 = vmatprep.subr.bf16.mxu0 %v8316_v5  ;;  %7851 = vmatprep.subr.bf16.mxu1 %v8316_v5 }
 0x99f   : > { %7844 = vmatpush3.bf16.msra.mxu0 %v8948_v59  ;;  %7853 = vmatpush3.bf16.msra.mxu1 %v8934_v57 }
 0x9a0   : > { %7854 = vmatprep.subr.bf16.mxu0 %v8316_v5  ;;  %7863 = vmatprep.subr.bf16.mxu1 %v8316_v5 }
 0x9a2   : > { %7285 = vmatmul.mubr.msk.f32.vlgmr.msra.gmra.mrb[30].mxu0 %vm2624_vm12, %v3313_v25  ;;  %7300 = vmatmul.mubr.msk.f32.vlgmr.msra.gmra.mrb[32].mxu1 %vm2624_vm12, %v3313_v25  ;;  %v3642_v25 = vstv %s3641_s26  ;;  %s9281_s26 = ssub.f32 1.0, %s4676_s1 }
 0x9a3   : > { %7856 = vmatpush3.bf16.msra.mxu0 %v8840_v22  ;;  %7865 = vmatpush3.bf16.msra.mxu1 %v8817_v17 }
 0x9a4   : > { %7857 = vmatprep.subr.bf16.mxu0 %v8316_v5  ;;  %7866 = vmatprep.subr.bf16.mxu1 %v8316_v5 }
 0x9a5   : > { %7314 = vmatprep.mubr.msk.f32.mxu0 %vm8317_vm0, %v8318_v8  ;;  %7329 = vmatprep.mubr.msk.f32.mxu1 %vm8317_vm0, %v8318_v8 }
 0x9a7   : > { %7859 = vmatpush3.bf16.msra.mxu0 %v8866_v29  ;;  %7868 = vmatpush3.bf16.msra.mxu1 %v8842_v23 }
 0x9a8   : > { %7860 = vmatprep.subr.bf16.mxu0 %v8316_v5  ;;  %7869 = vmatprep.subr.bf16.mxu1 %v8316_v5 }
 0x9ab   : > { %7862 = vmatpush3.bf16.msra.mxu0 %v8888_v37  ;;  %7871 = vmatpush3.bf16.msra.mxu1 %v8868_v31 }
 0x9ac   : > { %7872 = vmatprep.subr.bf16.mxu0 %v8316_v5  ;;  %7881 = vmatprep.subr.bf16.mxu1 %v8316_v5 }
 0xa69   : > { %v3382_v20 = vpop.f32.mrb[28].mxu0  ;;  %v3462_v34 = vpop.f32.mrb[30].mxu1 }
 0xa6a   : > { %v3387_v62 = vrot.slane %v3382_v20, 6  ;;  %v3467_v38 = vrot.slane %v3462_v34, 6  ;;  %v7256_v63 = vpop.f32.mrb[29].mxu0  ;;  %v7271_v0 = vpop.f32.mrb[31].mxu1  ;;  %v3654_v34 = vrot.slane %v9082_v45, 7  ;;  %v5370_v45 = vsel %vm5369_vm13, %v9015_v21, %v9087_v58 }
 0xa6b   : > { %vm5379_vm13 = vcmask 1045504  }
 0xa6c   : > { %v3389_v1 = vadd.f32 %v3387_v62, %v8983_v36  ;;  %v3469_v2 = vadd.f32 %v3467_v38, %v8977_v26  ;;  %v3990_v38 = vstv %s9142_s29 }
 0xa6e   : > { %v6602_v4 = vmul.f32 -1.442695, %v3389_v1  ;;  %v6604_v6 = vmul.f32 -1.442695, %v3469_v2  ;;  %v3646_v1 = vmul.f32 %v3645_v44, %v9090_v61 }
 0xa70   : > { %8169 = vpow2.f32 %v6602_v4 }
 0xa71   : > { %8171 = vpow2.f32 %v6604_v6 }
 0xa75   : > { %v3542_v7 = vpop.f32.mrb[30].mxu0  ;;  %v3617_v9 = vpop.f32.mrb[32].mxu1 }
 0xa76   : > { %v3547_v10 = vrot.slane %v3542_v7, 6  ;;  %v3622_v11 = vrot.slane %v3617_v9, 6  ;;  %v7286_v12 = vpop.f32.mrb[31].mxu0  ;;  %v7301_v14 = vpop.f32.mrb[33].mxu1  ;;  %v3648_v7 = vrot.slane %v3646_v1, 7 }
 0xa78   : > { %v3549_v16 = vadd.f32 %v3547_v10, %v8995_v32  ;;  %v3624_v18 = vadd.f32 %v3622_v11, %v8989_v51 }
 0xa7a   : > { %v8170_v19 = vpop.eup %8169  ;;  %v6607_v55 = vmul.f32 -1.442695, %v3624_v18  ;;  %8173 = vtanh.f32 %v3549_v16 }
 0xa7b   : > { %v8172_v3 = vpop.eup %8171  ;;  %v3393_v13 = vadd.f32 1.0, %v8170_v19 }
 0xa7c   : > { %v3473_v28 = vadd.f32 1.0, %v8172_v3  ;;  %8175 = vpow2.f32 %v6607_v55 }
 0xa7d   : > { %8177 = vrcp.f32 %v3393_v13 }
 0xa7e   : > { %8179 = vrcp.f32 %v3473_v28 }
 0xa84   : > { %v8174_v33 = vpop.eup %8173 }
 0xa86   : > { %v8176_v42 = vpop.eup %8175 }
 0xa87   : > { %v8178_v43 = vpop.eup %8177  ;;  %v3628_v35 = vadd.f32 1.0, %v8176_v42 }
 0xa88   : > { %v8180_v50 = vpop.eup %8179  ;;  %v3635_v52 = vmul.f32 %v8178_v43, %v8174_v33 }
 0xa89   : > { %v3634_v60 = vmul.f32 %v8180_v50, %v3632_v48  ;;  %8181 = vrcp.f32 %v3628_v35 }
 0xa8b   : > { %v3636_v20 = vadd.f32 %v3635_v52, %v3634_v60 }
 0xa8d   : > { %8183 = vtanh.f32 %v3636_v20  ;;  %v3651_v62 = vmul.f32 %v3642_v25, %v3636_v20 }
 0xa8f   : > { %v9146_v24 = vadd.f32 %v3654_v34, %v3651_v62 }
 0xa91   : > { %v9151_v63 = vmul.f32 %v3990_v38, %v9146_v24  ;;  %v3977_v1 = vrot.slane %v9146_v24, 7 }
 0xa93   : > { %v8182_v0 = vpop.eup %8181 }
 0xa97   : > { %v8184_v2 = vpop.eup %8183 }
 0xa98   : > { %v3638_v4 = vmul.f32 %v8184_v2, %v8182_v0 }
 0xa9a   : > { %v3643_v6 = vmul.f32 %v3642_v25, %v3638_v4 }
 0xa9c   : > { %v9158_v9 = vadd.f32 %v3648_v7, %v3643_v6  ;;  %v9160_v10 = vsel %vm5371_vm14, %v5370_v45, %v3643_v6  ;;  %v3987_v45 = vstv %s3986_s28  ;;  %s9350_s28 = ssub.f32 1.0, %s5021_s27  ;;  %vm5381_vm14 = vcmask 1046528  }
 0xa9e   : > { %v3658_v11 = vrot.slane %v9158_v9, 2 }
 0xaa0   : > { %7315 = vmatmul.mubr.msk.f32.vlgmr.msra.gmra.mrb[32].mxu0 %vm2624_vm12, %v3658_v11  ;;  %7330 = vmatmul.mubr.msk.f32.vlgmr.msra.gmra.mrb[34].mxu1 %vm2624_vm12, %v3658_v11 }
 0xaa1   : > { %7874 = vmatpush3.bf16.msra.mxu0 %v8909_v46  ;;  %7883 = vmatpush3.bf16.msra.mxu1 %v8890_v40 }
 0xaa2   : > { %7875 = vmatprep.subr.bf16.mxu0 %v8316_v5  ;;  %7884 = vmatprep.subr.bf16.mxu1 %v8316_v5 }
 0xaa3   : > { %7344 = vmatprep.mubr.msk.f32.mxu0 %vm8317_vm0, %v8318_v8  ;;  %7359 = vmatprep.mubr.msk.f32.mxu1 %vm8317_vm0, %v8318_v8 }
 0xaa5   : > { %7877 = vmatpush3.bf16.msra.mxu0 %v8932_v53  ;;  %7886 = vmatpush3.bf16.msra.mxu1 %v8911_v47 }
 0xaa6   : > { %7878 = vmatprep.subr.bf16.mxu0 %v8316_v5  ;;  %7887 = vmatprep.subr.bf16.mxu1 %v8316_v5 }
 0xaa9   : > { %7880 = vmatpush3.bf16.msra.mxu0 %v8948_v59  ;;  %7889 = vmatpush3.bf16.msra.mxu1 %v8934_v57 }
 0xaaa   : > { %7890 = vmatprep.subr.bf16.mxu0 %v8316_v5  ;;  %7899 = vmatprep.subr.bf16.mxu1 %v8316_v5 }
 0xaac   : > { %7345 = vmatmul.mubr.msk.f32.vlgmr.msra.gmra.mrb[34].mxu0 %vm2624_vm12, %v3658_v11  ;;  %7360 = vmatmul.mubr.msk.f32.vlgmr.msra.gmra.mrb[36].mxu1 %vm2624_vm12, %v3658_v11 }
 0xaad   : > { %7892 = vmatpush3.bf16.msra.mxu0 %v8840_v22  ;;  %7901 = vmatpush3.bf16.msra.mxu1 %v8817_v17 }
 0xaae   : > { %7893 = vmatprep.subr.bf16.mxu0 %v8316_v5  ;;  %7902 = vmatprep.subr.bf16.mxu1 %v8316_v5 }
 0xaaf   : > { %7374 = vmatprep.mubr.msk.f32.mxu0 %vm8317_vm0, %v8318_v8  ;;  %7389 = vmatprep.mubr.msk.f32.mxu1 %vm8317_vm0, %v8318_v8 }
 0xab1   : > { %7895 = vmatpush3.bf16.msra.mxu0 %v8866_v29  ;;  %7904 = vmatpush3.bf16.msra.mxu1 %v8842_v23 }
 0xab2   : > { %7896 = vmatprep.subr.bf16.mxu0 %v8316_v5  ;;  %7905 = vmatprep.subr.bf16.mxu1 %v8316_v5 }
 0xab5   : > { %7898 = vmatpush3.bf16.msra.mxu0 %v8888_v37  ;;  %7907 = vmatpush3.bf16.msra.mxu1 %v8868_v31 }
 0xab6   : > { %7908 = vmatprep.subr.bf16.mxu0 %v8316_v5  ;;  %7917 = vmatprep.subr.bf16.mxu1 %v8316_v5 }
 0xb73   : > { %v3727_v21 = vpop.f32.mrb[32].mxu0  ;;  %v3807_v44 = vpop.f32.mrb[34].mxu1 }
 0xb74   : > { %v3732_v58 = vrot.slane %v3727_v21, 5  ;;  %v3812_v61 = vrot.slane %v3807_v44, 5  ;;  %v7316_v12 = vpop.f32.mrb[33].mxu0  ;;  %v7331_v14 = vpop.f32.mrb[35].mxu1  ;;  %v3999_v21 = vrot.slane %v9151_v63, 7 }
 0xb75   : > { %v3991_v14 = vmul.f32 %v3990_v38, %v9158_v9 }
 0xb76   : > { %v3734_v16 = vadd.f32 %v3732_v58, %v8983_v36  ;;  %v3814_v18 = vadd.f32 %v3812_v61, %v8977_v26  ;;  %v4335_v58 = vstv %s9212_s30 }
 0xb78   : > { %v6609_v19 = vmul.f32 -1.442695, %v3734_v16  ;;  %v6611_v55 = vmul.f32 -1.442695, %v3814_v18 }
 0xb7a   : > { %8185 = vpow2.f32 %v6609_v19 }
 0xb7b   : > { %8187 = vpow2.f32 %v6611_v55  ;;  %v3993_v55 = vrot.slane %v3991_v14, 7 }
 0xb7f   : > { %v3887_v3 = vpop.f32.mrb[34].mxu0  ;;  %v3962_v13 = vpop.f32.mrb[36].mxu1 }
 0xb80   : > { %v3892_v28 = vrot.slane %v3887_v3, 5  ;;  %v3967_v33 = vrot.slane %v3962_v13, 5  ;;  %v7346_v42 = vpop.f32.mrb[35].mxu0  ;;  %v7361_v43 = vpop.f32.mrb[37].mxu1 }
 0xb82   : > { %v3894_v48 = vadd.f32 %v3892_v28, %v8995_v32  ;;  %v3969_v50 = vadd.f32 %v3967_v33, %v8989_v51 }
 0xb84   : > { %v8186_v52 = vpop.eup %8185  ;;  %v6614_v35 = vmul.f32 -1.442695, %v3969_v50  ;;  %8189 = vtanh.f32 %v3894_v48 }
 0xb85   : > { %v8188_v60 = vpop.eup %8187  ;;  %v3738_v25 = vadd.f32 1.0, %v8186_v52 }
 0xb86   : > { %v3818_v20 = vadd.f32 1.0, %v8188_v60  ;;  %8191 = vpow2.f32 %v6614_v35 }
 0xb87   : > { %8193 = vrcp.f32 %v3738_v25 }
 0xb88   : > { %8195 = vrcp.f32 %v3818_v20 }
 0xb8e   : > { %v8190_v34 = vpop.eup %8189 }
 0xb90   : > { %v8192_v62 = vpop.eup %8191 }
 0xb91   : > { %v8194_v0 = vpop.eup %8193  ;;  %v3973_v6 = vadd.f32 1.0, %v8192_v62 }
 0xb92   : > { %v8196_v2 = vpop.eup %8195  ;;  %v3980_v4 = vmul.f32 %v8194_v0, %v8190_v34 }
 0xb93   : > { %v3979_v7 = vmul.f32 %v8196_v2, %v3977_v1  ;;  %8197 = vrcp.f32 %v3973_v6 }
 0xb95   : > { %v3981_v11 = vadd.f32 %v3980_v4, %v3979_v7 }
 0xb97   : > { %8199 = vtanh.f32 %v3981_v11  ;;  %v3996_v44 = vmul.f32 %v3987_v45, %v3981_v11 }
 0xb99   : > { %v9216_v24 = vadd.f32 %v3999_v21, %v3996_v44 }
 0xb9b   : > { %v9221_v61 = vmul.f32 %v4335_v58, %v9216_v24 }
 0xb9d   : > { %v8198_v12 = vpop.eup %8197 }
 0xba1   : > { %v8200_v16 = vpop.eup %8199 }
 0xba2   : > { %v3983_v18 = vmul.f32 %v8200_v16, %v8198_v12  ;;  %v4322_v12 = vrot.slane %v9216_v24, 7 }
 0xba4   : > { %v3988_v19 = vmul.f32 %v3987_v45, %v3983_v18 }
 0xba6   : > { %v9226_v3 = vadd.f32 %v3993_v55, %v3988_v19  ;;  %v9229_v63 = vsel %vm5373_vm15, %v9160_v10, %v3988_v19  ;;  %v4332_v55 = vstv %s4331_s4  ;;  %s5365_s4 = scalar_select %p5364_p2, 1, 0 }
 0xba8   : > { %v4003_v13 = vrot.slane %v9226_v3, 3  ;;  %s5366_s30 = scvt.s32.f32 %s5365_s4  ;;  %s6648_s4 = sadd.s32 4294967295, %s8593_s17 }
 0xbaa   : > { %7375 = vmatmul.mubr.msk.f32.vlgmr.msra.gmra.mrb[36].mxu0 %vm2624_vm12, %v4003_v13  ;;  %7390 = vmatmul.mubr.msk.f32.vlgmr.msra.gmra.mrb[38].mxu1 %vm2624_vm12, %v4003_v13 }
 0xbab   : > { %7910 = vmatpush3.bf16.msra.mxu0 %v8909_v46  ;;  %7919 = vmatpush3.bf16.msra.mxu1 %v8890_v40 }
 0xbac   : > { %7911 = vmatprep.subr.bf16.mxu0 %v8316_v5  ;;  %7920 = vmatprep.subr.bf16.mxu1 %v8316_v5 }
 0xbad   : > { %7404 = vmatprep.mubr.msk.f32.mxu0 %vm8317_vm0, %v8318_v8  ;;  %7419 = vmatprep.mubr.msk.f32.mxu1 %vm8317_vm0, %v8318_v8 }
 0xbaf   : > { %7913 = vmatpush3.bf16.msra.mxu0 %v8932_v53  ;;  %7922 = vmatpush3.bf16.msra.mxu1 %v8911_v47 }
 0xbb0   : > { %7914 = vmatprep.subr.bf16.mxu0 %v8316_v5  ;;  %7923 = vmatprep.subr.bf16.mxu1 %v8316_v5 }
 0xbb3   : > { %7916 = vmatpush3.bf16.msra.mxu0 %v8948_v59  ;;  %7925 = vmatpush3.bf16.msra.mxu1 %v8934_v57 }
 0xbb4   : > { %7926 = vmatprep.subr.bf16.mxu0 %v8316_v5  ;;  %7935 = vmatprep.subr.bf16.mxu1 %v8316_v5 }
 0xbb6   : > { %7405 = vmatmul.mubr.msk.f32.vlgmr.msra.gmra.mrb[38].mxu0 %vm2624_vm12, %v4003_v13  ;;  %7420 = vmatmul.mubr.msk.f32.vlgmr.msra.gmra.mrb[40].mxu1 %vm2624_vm12, %v4003_v13 }
 0xbb7   : > { %7928 = vmatpush3.bf16.msra.mxu0 %v8840_v22  ;;  %7937 = vmatpush3.bf16.msra.mxu1 %v8817_v17 }
 0xbb8   : > { %7929 = vmatprep.subr.bf16.mxu0 %v8316_v5  ;;  %7938 = vmatprep.subr.bf16.mxu1 %v8316_v5 }
 0xbb9   : > { %7434 = vmatprep.mubr.msk.f32.mxu0 %vm8317_vm0, %v8318_v8  ;;  %7449 = vmatprep.mubr.msk.f32.mxu1 %vm8317_vm0, %v8318_v8 }
 0xbbb   : > { %7931 = vmatpush3.bf16.msra.mxu0 %v8866_v29  ;;  %7940 = vmatpush3.bf16.msra.mxu1 %v8842_v23 }
 0xbbc   : > { %7932 = vmatprep.subr.bf16.mxu0 %v8316_v5  ;;  %7941 = vmatprep.subr.bf16.mxu1 %v8316_v5 }
 0xbbf   : > { %7934 = vmatpush3.bf16.msra.mxu0 %v8888_v37  ;;  %7943 = vmatpush3.bf16.msra.mxu1 %v8868_v31 }
 0xbc0   : > { %7944 = vmatprep.subr.bf16.mxu0 %v8316_v5  ;;  %7953 = vmatprep.subr.bf16.mxu1 %v8316_v5 }
 0xc7d   : > { %v4072_v38 = vpop.f32.mrb[36].mxu0  ;;  %v4152_v9 = vpop.f32.mrb[38].mxu1 }
 0xc7e   : > { %v4077_v10 = vrot.slane %v4072_v38, 4  ;;  %v4157_v28 = vrot.slane %v4152_v9, 4  ;;  %v7376_v33 = vpop.f32.mrb[37].mxu0  ;;  %v7391_v42 = vpop.f32.mrb[39].mxu1  ;;  %v4344_v38 = vrot.slane %v9221_v61, 7 }
 0xc7f   : > { %v4336_v42 = vmul.f32 %v4335_v58, %v9226_v3 }
 0xc80   : > { %v4079_v43 = vadd.f32 %v4077_v10, %v8983_v36  ;;  %v4159_v48 = vadd.f32 %v4157_v28, %v8977_v26  ;;  %v4680_v10 = vstv %s9281_s26 }
 0xc82   : > { %v6616_v50 = vmul.f32 -1.442695, %v4079_v43  ;;  %v6618_v52 = vmul.f32 -1.442695, %v4159_v48 }
 0xc84   : > { %8201 = vpow2.f32 %v6616_v50 }
 0xc85   : > { %8203 = vpow2.f32 %v6618_v52  ;;  %v4338_v52 = vrot.slane %v4336_v42, 7 }
 0xc89   : > { %v4232_v35 = vpop.f32.mrb[38].mxu0  ;;  %v4307_v60 = vpop.f32.mrb[40].mxu1 }
 0xc8a   : > { %v4237_v25 = vrot.slane %v4232_v35, 4  ;;  %v4312_v20 = vrot.slane %v4307_v60, 4  ;;  %v7406_v34 = vpop.f32.mrb[39].mxu0  ;;  %v7421_v62 = vpop.f32.mrb[41].mxu1 }
 0xc8c   : > { %v4239_v0 = vadd.f32 %v4237_v25, %v8995_v32  ;;  %v4314_v1 = vadd.f32 %v4312_v20, %v8989_v51 }
 0xc8e   : > { %v8202_v2 = vpop.eup %8201  ;;  %v6621_v4 = vmul.f32 -1.442695, %v4314_v1  ;;  %8205 = vtanh.f32 %v4239_v0 }
 0xc8f   : > { %v8204_v6 = vpop.eup %8203  ;;  %v4083_v7 = vadd.f32 1.0, %v8202_v2 }
 0xc90   : > { %v4163_v45 = vadd.f32 1.0, %v8204_v6  ;;  %8207 = vpow2.f32 %v6621_v4 }
 0xc91   : > { %8209 = vrcp.f32 %v4083_v7 }
 0xc92   : > { %8211 = vrcp.f32 %v4163_v45 }
 0xc98   : > { %v8206_v11 = vpop.eup %8205 }
 0xc9a   : > { %v8208_v21 = vpop.eup %8207 }
 0xc9b   : > { %v8210_v44 = vpop.eup %8209  ;;  %v4318_v18 = vadd.f32 1.0, %v8208_v21 }
 0xc9c   : > { %v8212_v14 = vpop.eup %8211  ;;  %v4325_v16 = vmul.f32 %v8210_v44, %v8206_v11 }
 0xc9d   : > { %v4324_v19 = vmul.f32 %v8212_v14, %v4322_v12  ;;  %8213 = vrcp.f32 %v4318_v18 }
 0xc9f   : > { %v4326_v13 = vadd.f32 %v4325_v16, %v4324_v19 }
 0xca1   : > { %8215 = vtanh.f32 %v4326_v13  ;;  %v4341_v9 = vmul.f32 %v4332_v55, %v4326_v13 }
 0xca3   : > { %v9285_v24 = vadd.f32 %v4344_v38, %v4341_v9 }
 0xca5   : > { %v9290_v28 = vmul.f32 %v4680_v10, %v9285_v24 }
 0xca7   : > { %v8214_v33 = vpop.eup %8213 }
 0xcab   : > { %v8216_v43 = vpop.eup %8215 }
 0xcac   : > { %v4328_v48 = vmul.f32 %v8216_v43, %v8214_v33  ;;  %v4667_v33 = vrot.slane %v9285_v24, 7 }
 0xcae   : > { %v4333_v50 = vmul.f32 %v4332_v55, %v4328_v48 }
 0xcb0   : > { %v9295_v35 = vadd.f32 %v4338_v52, %v4333_v50  ;;  %v9298_v61 = vsel %vm5375_vm1, %v9229_v63, %v4333_v50  ;;  %v4677_v52 = vstv %s4676_s1 }
 0xcb2   : > { %v4348_v60 = vrot.slane %v9295_v35, 4 }
 0xcb4   : > { %7435 = vmatmul.mubr.msk.f32.vlgmr.msra.gmra.mrb[40].mxu0 %vm2624_vm12, %v4348_v60  ;;  %7450 = vmatmul.mubr.msk.f32.vlgmr.msra.gmra.mrb[42].mxu1 %vm2624_vm12, %v4348_v60 }
 0xcb5   : > { %7946 = vmatpush3.bf16.msra.mxu0 %v8909_v46  ;;  %7955 = vmatpush3.bf16.msra.mxu1 %v8890_v40 }
 0xcb6   : > { %7947 = vmatprep.subr.bf16.mxu0 %v8316_v5  ;;  %7956 = vmatprep.subr.bf16.mxu1 %v8316_v5 }
 0xcb7   : > { %7464 = vmatprep.mubr.msk.f32.mxu0 %vm8317_vm0, %v8318_v8  ;;  %7479 = vmatprep.mubr.msk.f32.mxu1 %vm8317_vm0, %v8318_v8 }
 0xcb9   : > { %7949 = vmatpush3.bf16.msra.mxu0 %v8932_v53  ;;  %7958 = vmatpush3.bf16.msra.mxu1 %v8911_v47 }
 0xcba   : > { %7950 = vmatprep.subr.bf16.mxu0 %v8316_v5  ;;  %7959 = vmatprep.subr.bf16.mxu1 %v8316_v5 }
 0xcbd   : > { %7952 = vmatpush3.bf16.msra.mxu0 %v8948_v59  ;;  %7961 = vmatpush3.bf16.msra.mxu1 %v8934_v57 }
 0xcbe   : > { %7962 = vmatprep.subr.bf16.mxu0 %v8316_v5  ;;  %7971 = vmatprep.subr.bf16.mxu1 %v8316_v5 }
 0xcc0   : > { %7465 = vmatmul.mubr.msk.f32.vlgmr.msra.gmra.mrb[42].mxu0 %vm2624_vm12, %v4348_v60  ;;  %7480 = vmatmul.mubr.msk.f32.vlgmr.msra.gmra.mrb[44].mxu1 %vm2624_vm12, %v4348_v60 }
 0xcc1   : > { %7964 = vmatpush3.bf16.msra.mxu0 %v8840_v22  ;;  %7973 = vmatpush3.bf16.msra.mxu1 %v8817_v17 }
 0xcc2   : > { %7965 = vmatprep.subr.bf16.mxu0 %v8316_v5  ;;  %7974 = vmatprep.subr.bf16.mxu1 %v8316_v5 }
 0xcc3   : > { %7494 = vmatprep.mubr.msk.f32.mxu0 %vm8317_vm0, %v8318_v8  ;;  %7509 = vmatprep.mubr.msk.f32.mxu1 %vm8317_vm0, %v8318_v8 }
 0xcc5   : > { %7967 = vmatpush3.bf16.msra.mxu0 %v8866_v29  ;;  %7976 = vmatpush3.bf16.msra.mxu1 %v8842_v23 }
 0xcc6   : > { %7968 = vmatprep.subr.bf16.mxu0 %v8316_v5  ;;  %7977 = vmatprep.subr.bf16.mxu1 %v8316_v5 }
 0xcc9   : > { %7970 = vmatpush3.bf16.msra.mxu0 %v8888_v37  ;;  %7979 = vmatpush3.bf16.msra.mxu1 %v8868_v31 }
 0xcca   : > { %7980 = vmatprep.subr.bf16.mxu0 %v8316_v5  ;;  %7989 = vmatprep.subr.bf16.mxu1 %v8316_v5 }
 0xd87   : > { %v4417_v58 = vpop.f32.mrb[40].mxu0  ;;  %v4497_v3 = vpop.f32.mrb[42].mxu1 }
 0xd88   : > { %v4422_v63 = vrot.slane %v4417_v58, 3  ;;  %v4502_v25 = vrot.slane %v4497_v3, 3  ;;  %v7436_v20 = vpop.f32.mrb[41].mxu0  ;;  %v7451_v34 = vpop.f32.mrb[43].mxu1  ;;  %v4689_v58 = vrot.slane %v9290_v28, 7 }
 0xd89   : > { %v4681_v34 = vmul.f32 %v4680_v10, %v9295_v35 }
 0xd8a   : > { %v4424_v62 = vadd.f32 %v4422_v63, %v8983_v36  ;;  %v4504_v0 = vadd.f32 %v4502_v25, %v8977_v26  ;;  %v5025_v63 = vstv %s9350_s28  ;;  %s9693_s28 = sld [smem:[#allocation15_spill]] }
 0xd8c   : > { %v6623_v1 = vmul.f32 -1.442695, %v4424_v62  ;;  %v6625_v2 = vmul.f32 -1.442695, %v4504_v0 }
 0xd8e   : > { %8217 = vpow2.f32 %v6623_v1 }
 0xd8f   : > { %8219 = vpow2.f32 %v6625_v2  ;;  %v4683_v2 = vrot.slane %v4681_v34, 7 }
 0xd93   : > { %v4577_v4 = vpop.f32.mrb[42].mxu0  ;;  %v4652_v6 = vpop.f32.mrb[44].mxu1 }
 0xd94   : > { %v4582_v7 = vrot.slane %v4577_v4, 3  ;;  %v4657_v45 = vrot.slane %v4652_v6, 3  ;;  %v7466_v11 = vpop.f32.mrb[43].mxu0  ;;  %v7481_v21 = vpop.f32.mrb[45].mxu1 }
 0xd96   : > { %v4584_v44 = vadd.f32 %v4582_v7, %v8995_v32  ;;  %v4659_v12 = vadd.f32 %v4657_v45, %v8989_v51 }
 0xd98   : > { %v8218_v14 = vpop.eup %8217  ;;  %v6628_v16 = vmul.f32 -1.442695, %v4659_v12  ;;  %8221 = vtanh.f32 %v4584_v44 }
 0xd99   : > { %v8220_v18 = vpop.eup %8219  ;;  %v4428_v19 = vadd.f32 1.0, %v8218_v14 }
 0xd9a   : > { %v4508_v55 = vadd.f32 1.0, %v8220_v18  ;;  %8223 = vpow2.f32 %v6628_v16 }
 0xd9b   : > { %8225 = vrcp.f32 %v4428_v19 }
 0xd9c   : > { %8227 = vrcp.f32 %v4508_v55 }
 0xda2   : > { %v8222_v13 = vpop.eup %8221 }
 0xda4   : > { %v8224_v38 = vpop.eup %8223 }
 0xda5   : > { %v8226_v9 = vpop.eup %8225  ;;  %v4663_v48 = vadd.f32 1.0, %v8224_v38 }
 0xda6   : > { %v8228_v42 = vpop.eup %8227  ;;  %v4670_v43 = vmul.f32 %v8226_v9, %v8222_v13 }
 0xda7   : > { %v4669_v50 = vmul.f32 %v8228_v42, %v4667_v33  ;;  %8229 = vrcp.f32 %v4663_v48 }
 0xda9   : > { %v4671_v60 = vadd.f32 %v4670_v43, %v4669_v50 }
 0xdab   : > { %8231 = vtanh.f32 %v4671_v60  ;;  %v4686_v3 = vmul.f32 %v4677_v52, %v4671_v60 }
 0xdad   : > { %v9354_v24 = vadd.f32 %v4689_v58, %v4686_v3  ;;  %v5022_v3 = vstv %s5021_s27  ;;  %s8323_s27 = smov 17  }
 0xdaf   : > { %v9359_v25 = vmul.f32 %v5025_v63, %v9354_v24  ;;  %v5012_v48 = vrot.slane %v9354_v24, 7 }
 0xdb1   : > { %v8230_v20 = vpop.eup %8229 }
 0xdb5   : > { %v8232_v62 = vpop.eup %8231 }
 0xdb6   : > { %v4673_v0 = vmul.f32 %v8232_v62, %v8230_v20  ;;  %v5034_v62 = vrot.slane %v9359_v25, 7 }
 0xdb8   : > { %v4678_v1 = vmul.f32 %v4677_v52, %v4673_v0 }
 0xdba   : > { %v9364_v4 = vadd.f32 %v4683_v2, %v4678_v1  ;;  %v9367_v28 = vsel %vm5377_vm9, %v9298_v61, %v4678_v1 }
 0xdbc   : > { %v4693_v6 = vrot.slane %v9364_v4, 5  ;;  %v5026_v2 = vmul.f32 %v5025_v63, %v9364_v4  ;;  %v5386_v63 = vld [vmem:[%s9658_s13 + $0x18] sm:$0xff]  ;;  %v5391_v4 = vld [vmem:[%s9659_s14 + $0x10] sm:$0xff] }
 0xdbe   : > { %7495 = vmatmul.mubr.msk.f32.vlgmr.msra.gmra.mrb[44].mxu0 %vm2624_vm12, %v4693_v6  ;;  %7510 = vmatmul.mubr.msk.f32.vlgmr.msra.gmra.mrb[46].mxu1 %vm2624_vm12, %v4693_v6 }
 0xdbf   : > { %7982 = vmatpush3.bf16.msra.mxu0 %v8909_v46  ;;  %7991 = vmatpush3.bf16.msra.mxu1 %v8890_v40 }
 0xdc0   : > { %7983 = vmatprep.subr.bf16.mxu0 %v8316_v5  ;;  %7992 = vmatprep.subr.bf16.mxu1 %v8316_v5 }
 0xdc1   : > { %7524 = vmatprep.mubr.msk.f32.mxu0 %vm8317_vm0, %v8318_v8  ;;  %7539 = vmatprep.mubr.msk.f32.mxu1 %vm8317_vm0, %v8318_v8 }
 0xdc3   : > { %7985 = vmatpush3.bf16.msra.mxu0 %v8932_v53  ;;  %7994 = vmatpush3.bf16.msra.mxu1 %v8911_v47 }
 0xdc4   : > { %7986 = vmatprep.subr.bf16.mxu0 %v8316_v5  ;;  %7995 = vmatprep.subr.bf16.mxu1 %v8316_v5 }
 0xdc7   : > { %7988 = vmatpush3.bf16.msra.mxu0 %v8948_v59  ;;  %7997 = vmatpush3.bf16.msra.mxu1 %v8934_v57 }
 0xdc8   : > { %7998 = vmatprep.subr.bf16.mxu0 %v8316_v5  ;;  %8007 = vmatprep.subr.bf16.mxu1 %v8316_v5 }
 0xdca   : > { %7525 = vmatmul.mubr.msk.f32.vlgmr.msra.gmra.mrb[46].mxu0 %vm2624_vm12, %v4693_v6  ;;  %7540 = vmatmul.mubr.msk.f32.vlgmr.msra.gmra.mrb[48].mxu1 %vm2624_vm12, %v4693_v6 }
 0xdcb   : > { %8000 = vmatpush3.bf16.msra.mxu0 %v8840_v22  ;;  %8009 = vmatpush3.bf16.msra.mxu1 %v8817_v17 }
 0xdcc   : > { %8001 = vmatprep.subr.bf16.mxu0 %v8316_v5  ;;  %8010 = vmatprep.subr.bf16.mxu1 %v8316_v5 }
 0xdcd   : > { %7554 = vmatprep.mubr.msk.f32.mxu0 %vm8317_vm0, %v8318_v8  ;;  %7569 = vmatprep.mubr.msk.f32.mxu1 %vm8317_vm0, %v8318_v8 }
 0xdcf   : > { %8003 = vmatpush3.bf16.msra.mxu0 %v8866_v29  ;;  %8012 = vmatpush3.bf16.msra.mxu1 %v8842_v23 }
 0xdd0   : > { %8004 = vmatprep.subr.bf16.mxu0 %v8316_v5  ;;  %8013 = vmatprep.subr.bf16.mxu1 %v8316_v5 }
 0xdd3   : > { %8006 = vmatpush3.bf16.msra.mxu0 %v8888_v37  ;;  %8015 = vmatpush3.bf16.msra.mxu1 %v8868_v31 }
 0xdd4   : > { %8016 = vmatprep.subr.bf16.mxu0 %v8316_v5  ;;  %8025 = vmatprep.subr.bf16.mxu1 %v8316_v5 }
 0xe91   : > { %v4762_v17 = vpop.f32.mrb[44].mxu0  ;;  %v4842_v22 = vpop.f32.mrb[46].mxu1 }
 0xe92   : > { %v4767_v10 = vrot.slane %v4762_v17, 2  ;;  %v4847_v35 = vrot.slane %v4842_v22, 2  ;;  %v7496_v61 = vpop.f32.mrb[45].mxu0  ;;  %v7511_v29 = vpop.f32.mrb[47].mxu1  ;;  %v5028_v22 = vrot.slane %v5026_v2, 7 }
 0xe94   : > { %v4769_v23 = vadd.f32 %v4767_v10, %v8983_v36  ;;  %v4849_v7 = vadd.f32 %v4847_v35, %v8977_v26 }
 0xe96   : > { %v6630_v45 = vmul.f32 -1.442695, %v4769_v23  ;;  %v6632_v11 = vmul.f32 -1.442695, %v4849_v7  ;;  %v5387_v7 = vld [vmem:[%s9658_s13 + $0x20] sm:$0xff] }
 0xe98   : > { %8233 = vpow2.f32 %v6630_v45  ;;  %v5388_v45 = vld [vmem:[%s9658_s13 + $0x28] sm:$0xff] }
 0xe99   : > { %8235 = vpow2.f32 %v6632_v11  ;;  %v5393_v11 = vld [vmem:[%s9659_s14 + $0x20] sm:$0xff] }
 0xe9d   : > { %v4922_v37 = vpop.f32.mrb[46].mxu0  ;;  %v4997_v31 = vpop.f32.mrb[48].mxu1 }
 0xe9e   : > { %v4927_v21 = vrot.slane %v4922_v37, 2  ;;  %v5002_v44 = vrot.slane %v4997_v31, 2  ;;  %v7526_v12 = vpop.f32.mrb[47].mxu0  ;;  %v7541_v14 = vpop.f32.mrb[49].mxu1  ;;  %v5394_v37 = vld [vmem:[%s9659_s14 + $0x28] sm:$0xff]  ;;  %v8041_v31 = vpack.c.bf16 %v5388_v45, %v5387_v7 }
 0xea0   : > { %v4929_v16 = vadd.f32 %v4927_v21, %v8995_v32  ;;  %v5004_v18 = vadd.f32 %v5002_v44, %v8989_v51  ;;  %v8050_v21 = vpack.c.bf16 %v5394_v37, %v5393_v11 }
 0xea2   : > { %v8234_v19 = vpop.eup %8233  ;;  %v6635_v55 = vmul.f32 -1.442695, %v5004_v18  ;;  %8237 = vtanh.f32 %v4929_v16 }
 0xea3   : > { %v8236_v13 = vpop.eup %8235  ;;  %v4773_v38 = vadd.f32 1.0, %v8234_v19 }
 0xea4   : > { %v4853_v9 = vadd.f32 1.0, %v8236_v13  ;;  %8239 = vpow2.f32 %v6635_v55 }
 0xea5   : > { %8241 = vrcp.f32 %v4773_v38 }
 0xea6   : > { %8243 = vrcp.f32 %v4853_v9 }
 0xeac   : > { %v8238_v33 = vpop.eup %8237 }
 0xeae   : > { %v8240_v42 = vpop.eup %8239 }
 0xeaf   : > { %v8242_v43 = vpop.eup %8241  ;;  %v5008_v60 = vadd.f32 1.0, %v8240_v42 }
 0xeb0   : > { %v8244_v50 = vpop.eup %8243  ;;  %v5015_v52 = vmul.f32 %v8242_v43, %v8238_v33 }
 0xeb1   : > { %v5014_v58 = vmul.f32 %v8244_v50, %v5012_v48  ;;  %8245 = vrcp.f32 %v5008_v60 }
 0xeb3   : > { %v5016_v20 = vadd.f32 %v5015_v52, %v5014_v58 }
 0xeb5   : > { %8247 = vtanh.f32 %v5016_v20  ;;  %v5031_v34 = vmul.f32 %v5022_v3, %v5016_v20 }
 0xeb7   : > { %v9414_v0 = vadd.f32 %v5034_v62, %v5031_v34 }
 0xebb   : > { %v8246_v1 = vpop.eup %8245 }
 0xebf   : > { %v8248_v6 = vpop.eup %8247 }
 0xec0   : > { %v5018_v24 = vmul.f32 %v8248_v6, %v8246_v1  ;;  %v5357_v6 = vrot.slane %v9414_v0, 7 }
 0xec2   : > { %v5023_v17 = vmul.f32 %v5022_v3, %v5018_v24 }
 0xec4   : > { %v5030_v10 = vadd.f32 %v5028_v22, %v5023_v17  ;;  %v9420_v35 = vsel %vm5379_vm13, %v9367_v28, %v5023_v17  ;;  %v5392_v28 = vld [vmem:[%s9659_s14 + $0x18] sm:$0xff] }
 0xec5   : > { %v8047_v23 = vpack.c.bf16 %v5392_v28, %v5391_v4 }
 0xec6   : > { %v5038_v61 = vrot.slane %v5030_v10, 6 }
 0xec8   : > { %7555 = vmatmul.mubr.msk.f32.vlgmr.msra.gmra.mrb[48].mxu0 %vm2624_vm12, %v5038_v61  ;;  %7570 = vmatmul.mubr.msk.f32.vlgmr.msra.gmra.mrb[50].mxu1 %vm2624_vm12, %v5038_v61 }
 0xec9   : > { %8018 = vmatpush3.bf16.msra.mxu0 %v8909_v46  ;;  %8027 = vmatpush3.bf16.msra.mxu1 %v8890_v40  ;;  %v5383_v40 = vld [vmem:[%s9658_s13] sm:$0xff]  ;;  %v5384_v46 = vld [vmem:[%s9658_s13 + $0x8] sm:$0xff] }
 0xeca   : > { %8019 = vmatprep.subr.bf16.mxu0 %v8316_v5  ;;  %8028 = vmatprep.subr.bf16.mxu1 %v8316_v5 }
 0xecb   : > { %7584 = vmatprep.mubr.msk.f32.mxu0 %vm8317_vm0, %v8318_v8  ;;  %7599 = vmatprep.mubr.msk.f32.mxu1 %vm8317_vm0, %v8318_v8 }
 0xecd   : > { %8021 = vmatpush3.bf16.msra.mxu0 %v8932_v53  ;;  %8030 = vmatpush3.bf16.msra.mxu1 %v8911_v47  ;;  %v5389_v47 = vld [vmem:[%s9659_s14] sm:$0xff]  ;;  %v8035_v53 = vpack.c.bf16 %v5384_v46, %v5383_v40  ;;  %v5367_v40 = vstv %s5366_s30 }
 0xece   : > { %8022 = vmatprep.subr.bf16.mxu0 %v8316_v5  ;;  %8031 = vmatprep.subr.bf16.mxu1 %v8316_v5 }
 0xed1   : > { %8024 = vmatpush3.bf16.msra.mxu0 %v8948_v59  ;;  %8033 = vmatpush3.bf16.msra.mxu1 %v8934_v57  ;;  %v5390_v57 = vld [vmem:[%s9659_s14 + $0x8] sm:$0xff]  ;;  %v5385_v59 = vld [vmem:[%s9658_s13 + $0x10] sm:$0xff] }
 0xed2   : > { %8034 = vmatprep.subr.bf16.mxu0 %v8316_v5  ;;  %8043 = vmatprep.subr.bf16.mxu1 %v8316_v5  ;;  %v8044_v25 = vpack.c.bf16 %v5390_v57, %v5389_v47  ;;  %v8038_v29 = vpack.c.bf16 %v5386_v63, %v5385_v59 }
 0xed4   : > { %7585 = vmatmul.mubr.msk.f32.vlgmr.msra.gmra.mrb[50].mxu0 %vm2624_vm12, %v5038_v61  ;;  %7600 = vmatmul.mubr.msk.f32.vlgmr.msra.gmra.mrb[52].mxu1 %vm2624_vm12, %v5038_v61 }
 0xed5   : > { %7614 = vmatprep.mubr.msk.f32.mxu0 %vm8317_vm0, %v8318_v8  ;;  %7629 = vmatprep.mubr.msk.f32.mxu1 %vm8317_vm0, %v8318_v8 }
 0xed6   : > { %8036 = vmatpush3.bf16.msra.mxu0 %v8035_v53  ;;  %8045 = vmatpush3.bf16.msra.mxu1 %v8044_v25 }
 0xed7   : > { %8037 = vmatprep.subr.bf16.mxu0 %v8316_v5  ;;  %8046 = vmatprep.subr.bf16.mxu1 %v8316_v5 }
 0xeda   : > { %8039 = vmatpush3.bf16.msra.mxu0 %v8038_v29  ;;  %8048 = vmatpush3.bf16.msra.mxu1 %v8047_v23 }
 0xedb   : > { %8040 = vmatprep.subr.bf16.mxu0 %v8316_v5  ;;  %8049 = vmatprep.subr.bf16.mxu1 %v8316_v5 }
 0xede   : > { %8042 = vmatpush3.bf16.msra.mxu0 %v8041_v31  ;;  %8051 = vmatpush3.bf16.msra.mxu1 %v8050_v21  ;;  %v6645_v31 = vld [vmem:[%s9660_s15] ss:$0 sm:$0xff] }
 0xedf   : > { %7632 = vmatprep.subr.mxu0 %v8318_v8  ;;  %7637 = vmatprep.subr.mxu1 %v8318_v8 }
 0xf9b   : > { %v5107_v44 = vpop.f32.mrb[48].mxu0  ;;  %v5187_v12 = vpop.f32.mrb[50].mxu1 }
 0xf9c   : > { %v5112_v14 = vrot.slane %v5107_v44, 1  ;;  %v5192_v16 = vrot.slane %v5187_v12, 1  ;;  %v7556_v18 = vpop.f32.mrb[49].mxu0  ;;  %v7571_v19 = vpop.f32.mrb[51].mxu1 }
 0xf9e   : > { %v5114_v55 = vadd.f32 %v5112_v14, %v8983_v36  ;;  %v5194_v13 = vadd.f32 %v5192_v16, %v8977_v26 }
 0xfa0   : > { %v6637_v38 = vmul.f32 -1.442695, %v5114_v55  ;;  %v6639_v9 = vmul.f32 -1.442695, %v5194_v13 }
 0xfa2   : > { %8249 = vpow2.f32 %v6637_v38 }
 0xfa3   : > { %8251 = vpow2.f32 %v6639_v9 }
 0xfa7   : > { %v5267_v33 = vpop.f32.mrb[50].mxu0  ;;  %v5342_v42 = vpop.f32.mrb[52].mxu1 }
 0xfa8   : > { %v5272_v43 = vrot.slane %v5267_v33, 1  ;;  %v5347_v48 = vrot.slane %v5342_v42, 1  ;;  %v7586_v50 = vpop.f32.mrb[51].mxu0  ;;  %v7601_v52 = vpop.f32.mrb[53].mxu1 }
 0xfaa   : > { %v5274_v60 = vadd.f32 %v5272_v43, %v8995_v32  ;;  %v5349_v58 = vadd.f32 %v5347_v48, %v8989_v51 }
 0xfac   : > { %v8250_v3 = vpop.eup %8249  ;;  %v6642_v20 = vmul.f32 -1.442695, %v5349_v58  ;;  %8253 = vtanh.f32 %v5274_v60 }
 0xfad   : > { %v8252_v34 = vpop.eup %8251  ;;  %v5118_v36 = vadd.f32 1.0, %v8250_v3 }
 0xfae   : > { %v5198_v26 = vadd.f32 1.0, %v8252_v34  ;;  %8255 = vpow2.f32 %v6642_v20 }
 0xfaf   : > { %8257 = vrcp.f32 %v5118_v36 }
 0xfb0   : > { %8259 = vrcp.f32 %v5198_v26 }
 0xfb6   : > { %v8254_v62 = vpop.eup %8253 }
 0xfb8   : > { %v8256_v1 = vpop.eup %8255 }
 0xfb9   : > { %v8258_v2 = vpop.eup %8257  ;;  %v5353_v32 = vadd.f32 1.0, %v8256_v1 }
 0xfba   : > { %v8260_v24 = vpop.eup %8259  ;;  %v5360_v17 = vmul.f32 %v8258_v2, %v8254_v62 }
 0xfbb   : > { %v5359_v22 = vmul.f32 %v8260_v24, %v5357_v6  ;;  %8261 = vrcp.f32 %v5353_v32 }
 0xfbd   : > { %v5361_v51 = vadd.f32 %v5360_v17, %v5359_v22 }
 0xfbf   : > { %8263 = vtanh.f32 %v5361_v51 }
 0xfc5   : > { %v8262_v10 = vpop.eup %8261 }
 0xfc9   : > { %v8264_v61 = vpop.eup %8263 }
 0xfca   : > { %v5363_v46 = vmul.f32 %v8264_v61, %v8262_v10 }
 0xfcc   : > { %v5368_v47 = vmul.f32 %v5367_v40, %v5363_v46 }
 0xfce   : > { %v5382_v53 = vsel %vm5381_vm14, %v9420_v35, %v5368_v47 }
 0xfcf   : > { %7615 = vmatmul.mubr.msk.f32.vlgmr.msra.gmra.mrb[52].mxu0 %vm2624_vm12, %v5382_v53  ;;  %7630 = vmatmul.mubr.msk.f32.vlgmr.msra.gmra.mrb[54].mxu1 %vm2624_vm12, %v5382_v53 }
 0xfd0   : > { %7633 = vmatpush3.msra.mxu0 %v5382_v53  ;;  %7634 = vmatprep.mubr.msk.f32.mxu0 %vm8317_vm0, %v8318_v8 }
 0xfd1   : > { %8052 = vmatprep.subr.bf16.mxu0 %v8316_v5  ;;  %7639 = vmatprep.mubr.msk.f32.mxu1 %vm8317_vm0, %v8318_v8 }
0x10a2   : > { %v5466_v0 = vpop.f32.mrb[52].mxu0  ;;  %v5536_v57 = vpop.f32.mrb[54].mxu1 }
0x10a3   : > { %v5541_v59 = vcombine.high %v5536_v57, %v5536_v57  ;;  %v5548_v63 = vrot.slane %v5536_v57, %v8552_v41  ;;  %v7616_v25 = vpop.f32.mrb[53].mxu0  ;;  %v7631_v35 = vpop.f32.mrb[55].mxu1 }
0x10a5   : > { %v5555_v4 = vrot.slane %v5541_v59, %v8552_v41  ;;  %v5556_v28 = vcombine.high %v5548_v63, %v5548_v63  ;;  %v5564_v29 = vrot.slane %v5548_v63, %v8552_v41 }
0x10a7   : > { %v5557_v23 = vcombine.high %v5555_v4, %v5555_v4  ;;  %v5571_v7 = vrot.slane %v5555_v4, %v8552_v41  ;;  %v5578_v45 = vrot.slane %v5556_v28, %v8552_v41  ;;  %v5586_v11 = vcombine.high %v5564_v29, %v5564_v29 }
0x10a8   : > { %v5593_v37 = vrot.slane %v5564_v29, %v8558_v49 }
0x10a9   : > { %v5585_v21 = vrot.slane %v5557_v23, %v8552_v41  ;;  %v5587_v44 = vcombine.high %v5571_v7, %v5571_v7  ;;  %v5588_v12 = vcombine.high %v5578_v45, %v5578_v45  ;;  %v5597_v14 = vrot.slane %v5578_v45, %v8558_v49 }
0x10aa   : > { %v5601_v16 = vrot.slane %v5586_v11, %v8558_v49  ;;  %v5609_v18 = vrot.slane %v5571_v7, %v8558_v49  ;;  %v5630_v19 = vadd.f32 %v5593_v37, %v5466_v0 }
0x10ab   : > { %v5589_v55 = vcombine.high %v5585_v21, %v5585_v21  ;;  %v5605_v13 = vrot.slane %v5588_v12, %v8558_v49  ;;  %v5613_v38 = vrot.slane %v5585_v21, %v8558_v49  ;;  %v5617_v9 = vrot.slane %v5587_v44, %v8558_v49 }
0x10ac   : > { %v5631_v33 = vadd.f32 %v5597_v14, %v5466_v0  ;;  %v5632_v42 = vadd.f32 %v5601_v16, %v5466_v0  ;;  %v5634_v43 = vadd.f32 %v5609_v18, %v5466_v0  ;;  %v5644_v41 = vadd.f32 %v6645_v31, %v5630_v19 }
0x10ad   : > { %v5621_v48 = vrot.slane %v5589_v55, %v8558_v49  ;;  %v5633_v50 = vadd.f32 %v5605_v13, %v5466_v0  ;;  %v5635_v52 = vadd.f32 %v5613_v38, %v5466_v0  ;;  %v5636_v60 = vadd.f32 %v5617_v9, %v5466_v0  ;;  %v6646_v49 = vld [vmem:[%s9661_s16] ss:$0 sm:$0xff] }
0x10ae   : > { %v5645_v58 = vadd.f32 %v6645_v31, %v5631_v33  ;;  %v5646_v3 = vadd.f32 %v6645_v31, %v5632_v42  ;;  %v5648_v20 = vadd.f32 %v6645_v31, %v5634_v43  ;;  %8265 = vtanh.f32 %v5644_v41 }
0x10af   : > { %v5637_v34 = vadd.f32 %v5621_v48, %v5466_v0  ;;  %v5647_v36 = vadd.f32 %v6645_v31, %v5633_v50  ;;  %v5649_v26 = vadd.f32 %v6645_v31, %v5635_v52  ;;  %v5650_v62 = vadd.f32 %v6645_v31, %v5636_v60 }
0x10b0   : > { %8267 = vtanh.f32 %v5645_v58 }
0x10b1   : > { %8269 = vtanh.f32 %v5646_v3  ;;  %v5651_v1 = vadd.f32 %v6645_v31, %v5637_v34 }
0x10b2   : > { %8271 = vtanh.f32 %v5648_v20 }
0x10b3   : > { %8273 = vtanh.f32 %v5647_v36 }
0x10b4   : > { %8275 = vtanh.f32 %v5649_v26 }
0x10b5   : > { %8277 = vtanh.f32 %v5650_v62 }
0x10b6   : > { %8279 = vtanh.f32 %v5651_v1 }
0x10b8   : > { %v8266_v2 = vpop.eup %8265 }
0x10b9   : > { %v5666_v6 = vmul.f32 %v8266_v2, %v6646_v49 }
0x10ba   : > { %v8268_v24 = vpop.eup %8267 }
0x10bb   : > { %v8270_v17 = vpop.eup %8269  ;;  %v5674_v32 = vsel %vm2624_vm12, %v5666_v6, 0.0  ;;  %v5667_v22 = vmul.f32 %v8268_v24, %v6646_v49  ;;  %v8320_v24 = vmov 0  }
0x10bc   : > { %v8272_v51 = vpop.eup %8271  ;;  %5675 = vadd.xlane.f32.xlu0 %v5674_v32  ;;  %v5668_v10 = vmul.f32 %v8270_v17, %v6646_v49  ;;  %8096 = vset.pattern.permute.xlu1 %v8320_v24  ;;  %v5832_v17 = vstv %s6648_s4 }
0x10bd   : > { %v8274_v61 = vpop.eup %8273  ;;  %v5677_v40 = vsel %vm2624_vm12, %v5667_v22, 0.0  ;;  %v5670_v0 = vmul.f32 %v8272_v51, %v6646_v49  ;;  %8095 = vset.pattern.permute.xlu0 %v8320_v24 }
0x10be   : > { %v8276_v46 = vpop.eup %8275  ;;  %5678 = vadd.xlane.f32.xlu1 %v5677_v40  ;;  %v5669_v47 = vmul.f32 %v8274_v61, %v6646_v49  ;;  %v5680_v53 = vsel %vm2624_vm12, %v5668_v10, 0.0  ;;  %v9567_v10 = vld [vmem:[#allocation4] ss:$0 sm:$0xff] }
0x10bf   : > { %v8278_v57 = vpop.eup %8277  ;;  %v5671_v63 = vmul.f32 %v8276_v46, %v6646_v49  ;;  %v5686_v35 = vsel %vm2624_vm12, %v5670_v0, 0.0 }
0x10c0   : > { %5681 = vadd.xlane.f32.xlu0 %v5680_v53  ;;  %v5683_v59 = vsel %vm2624_vm12, %v5669_v47, 0.0  ;;  %v8280_v25 = vpop.eup %8279  ;;  %v5672_v4 = vmul.f32 %v8278_v57, %v6646_v49 }
0x10c1   : > { %v5689_v28 = vsel %vm2624_vm12, %v5671_v63, 0.0  ;;  %v5673_v29 = vmul.f32 %v8280_v25, %v6646_v49 }
0x10c2   : > { %5684 = vadd.xlane.f32.xlu1 %v5683_v59  ;;  %v5692_v23 = vsel %vm2624_vm12, %v5672_v4, 0.0 }
0x10c3   : > { %v5695_v7 = vsel %vm2624_vm12, %v5673_v29, 0.0 }
0x10c4   : > { %5687 = vadd.xlane.f32.xlu0 %v5686_v35 }
0x10c6   : > { %5690 = vadd.xlane.f32.xlu1 %v5689_v28 }
0x10c8   : > { %5693 = vadd.xlane.f32.xlu0 %v5692_v23 }
0x10ca   : > { %5696 = vadd.xlane.f32.xlu1 %v5695_v7 }
0x1149   : > { %v5676_v45 = vpop.xlane.xlu0 %5675 }
0x114a   : > { %v5709_v37 = vrot.slane %v5676_v45, %v8590_v56 }
0x114b   : > { %v5679_v11 = vpop.xlane.xlu1 %5678 }
0x114c   : > { %v5713_v31 = vrot.slane %v5679_v11, %v8590_v56 }
0x114d   : > { %v5682_v21 = vpop.xlane.xlu0 %5681 }
0x114e   : > { %v5738_v44 = vsel %vm1155_vm3, %v5713_v31, %v5709_v37  ;;  %v5717_v12 = vrot.slane %v5682_v21, %v8590_v56  ;;  %vm5833_vm3 = vcmp.eq.s32.totalorder %v8586_v54, %v5832_v17 }
0x114f   : > { %v5685_v14 = vpop.xlane.xlu1 %5684  ;;  %v6649_v32 = vsel %vm5833_vm3, 1.0, %v8318_v8 }
0x1150   : > { %v5739_v16 = vsel %vm1157_vm4, %v5717_v12, %v5738_v44  ;;  %v5721_v18 = vrot.slane %v5685_v14, %v8590_v56  ;;  %vm5988_vm4 = vcmask 7168   ;;  %v6129_v44 = vld [vmem:[%s9663_s19 + $0x30] sm:$0xff]  ;;  %v6130_v12 = vld [vmem:[%s9663_s19 + $0x38] sm:$0xff] }
0x1151   : > { %v5688_v19 = vpop.xlane.xlu0 %5687  ;;  %v8059_v14 = vpack.c.bf16 %v6130_v12, %v6129_v44 }
0x1152   : > { %v5740_v55 = vsel %vm1159_vm5, %v5721_v18, %v5739_v16  ;;  %v5725_v13 = vrot.slane %v5688_v19, %v8590_v56  ;;  %v6123_v16 = vld [vmem:[%s9663_s19] sm:$0xff]  ;;  %v6124_v18 = vld [vmem:[%s9663_s19 + $0x8] sm:$0xff]  ;;  %vm6437_vm5 = vcmask 130112  }
0x1153   : > { %v5691_v38 = vpop.xlane.xlu1 %5690  ;;  %v8062_v19 = vpack.c.bf16 %v6124_v18, %v6123_v16  ;;  %v6357_v16 = vld [vmem:[%s9665_s21 + $0x8] sm:$0xff] }
0x1154   : > { %v5741_v9 = vsel %vm1161_vm6, %v5725_v13, %v5740_v55  ;;  %v5729_v33 = vrot.slane %v5691_v38, %v8590_v56  ;;  %v6125_v55 = vld [vmem:[%s9663_s19 + $0x10] sm:$0xff]  ;;  %v6126_v13 = vld [vmem:[%s9663_s19 + $0x18] sm:$0xff]  ;;  %vm6442_vm6 = vcmask 138368  }
0x1155   : > { %v5694_v42 = vpop.xlane.xlu0 %5693  ;;  %v8065_v38 = vpack.c.bf16 %v6126_v13, %v6125_v55  ;;  %v6353_v55 = vld [vmem:[%s9664_s20] sm:$0x1] }
0x1156   : > { %v5742_v43 = vsel %vm1163_vm7, %v5729_v33, %v5741_v9  ;;  %v5733_v41 = vrot.slane %v5694_v42, %v8590_v56  ;;  %v6127_v9 = vld [vmem:[%s9663_s19 + $0x20] sm:$0xff]  ;;  %v6128_v33 = vld [vmem:[%s9663_s19 + $0x28] sm:$0xff]  ;;  %vm6447_vm7 = vcmask 146568  }
0x1157   : > { %v5697_v48 = vpop.xlane.xlu1 %5696  ;;  %v8068_v42 = vpack.c.bf16 %v6128_v33, %v6127_v9  ;;  %v6358_v33 = vld [vmem:[#allocation5] sm:$0x1] }
0x1158   : > { %v5743_v50 = vsel %vm1165_vm8, %v5733_v41, %v5742_v43  ;;  %v5737_v52 = vrot.slane %v5697_v48, %v8590_v56  ;;  %v5909_v56 = vld [vmem:[%s9693_s28] sm:$0xff] }
0x115a   : > { %v5744_v60 = vsel %vm1167_vm10, %v5737_v52, %v5743_v50 }
0x115b   : > { %v5746_v58 = vmul.f32 %v8612_v15, %v5744_v60  ;;  %v5910_v15 = vld [vmem:[%s9693_s28 + $0x8] sm:$0xff] }
0x115c   : > { %v8053_v2 = vpack.c.bf16 %v5910_v15, %v5909_v56 }
0x115d   : > { %v5747_v3 = vsel %vm1171_vm11, %v5746_v58, -inf }
0x115e   : > { %5748 = vmax.xlane.f32.xlu0 %v5747_v3 }
0x11eb   : > { %v5749_v20 = vpop.xlane.xlu0 %5748 }
0x11ec   : > { %v5750_v34 = vsub.f32 %v5746_v58, %v5749_v20 }
0x11ee   : > { %v5751_v36 = vmul.f32 1.442695, %v5750_v34 }
0x11f0   : > { %8281 = vpow2.f32 %v5751_v36 }
0x11fa   : > { %v8282_v26 = vpop.eup %8281 }
0x11fb   : > { %v5753_v62 = vsel %vm1171_vm11, %v8282_v26, 0.0 }
0x11fc   : > { %5754 = vadd.xlane.f32.xlu1 %v5753_v62 }
0x1289   : > { %v5755_v1 = vpop.xlane.xlu1 %5754 }
0x128a   : > { %8283 = vrcp.f32 %v5755_v1 }
0x1294   : > { %v8284_v49 = vpop.eup %8283 }
0x1295   : > { %v5757_v6 = vmul.f32 %v8284_v49, %v8282_v26 }
0x1297   : > { %7635 = vmatmul.mubr.msk.f32.vlgmr.msra.gmra.mrb[54].mxu0 %vm1171_vm11, %v5757_v6 }
0x1298   : > { %8054 = vmatpush3.bf16.msra.mxu0 %v8053_v2  ;;  %7646 = vmatprep.mubr.msk.f32.mxu0 %vm8317_vm0, %v8318_v8 }
0x1299   : > { %8058 = vmatprep.subr.bf16.mxu0 %v8316_v5 }
0x129b   : > { %7647 = vmatmul.mubr.msk.f32.vlgmr.msra.gmra.mrb[56].mxu0 %vm810_vm2, %v8531_v27 }
0x129c   : > { %7660 = vmatprep.mubr.msk.f32.mxu0 %vm8317_vm0, %v8318_v8  ;;  %8060 = vmatpush3.bf16.msra.mxu0 %v8059_v14  ;;  %v6356_v14 = vld [vmem:[%s9665_s21] sm:$0xff] }
0x129d   : > { %8070 = vmatprep.subr.bf16.mxu0 %v8316_v5  ;;  %v8074_v18 = vpack.c.bf16 %v6357_v16, %v6356_v14 }
0x136a   : > { %v5827_v22 = vpop.f32.mrb[54].mxu0 }
0x136b   : > { %v7636_v51 = vpop.f32.mrb[55].mxu0  ;;  %7638 = vmatpush3.msra.mxu1 %v5827_v22 }
0x136c   : > { %7640 = vmatmul.mubr.msk.f32.vlgmr.msra.gmra.mrb[56].mxu1 %vm1171_vm11, %v6649_v32  ;;  %8055 = vmatprep.subr.bf16.mxu1 %v8316_v5 }
0x136d   : > { %8057 = vmatpush3.bf16.msra.mxu1 %v8053_v2  ;;  %7653 = vmatprep.mubr.msk.f32.mxu1 %vm8317_vm0, %v8318_v8 }
0x136e   : > { %v5984_v61 = vpop.f32.mrb[56].mxu0  ;;  %8061 = vmatprep.subr.bf16.mxu1 %v8316_v5 }
0x136f   : > { %v5985_v54 = vadd.f32 %v9567_v10, %v5984_v61  ;;  %v7648_v40 = vpop.f32.mrb[57].mxu0 }
0x1370   : > { %7654 = vmatmul.mubr.msk.f32.vlgmr.msra.gmra.mrb[58].mxu1 %vm810_vm2, %v8538_v30 }
0x1371   : > { %v5989_v46 = vsel %vm5988_vm4, %v5985_v54, -inf  ;;  %7675 = vmatprep.mubr.msk.f32.mxu1 %vm8317_vm0, %v8318_v8  ;;  %8063 = vmatpush3.bf16.msra.mxu1 %v8062_v19 }
0x1372   : > { %v5990_v47 = vrot.slane %v5989_v46, 4  ;;  %8064 = vmatprep.subr.bf16.mxu1 %v8316_v5 }
0x1374   : > { %v5991_v53 = vmax.f32 %v5989_v46, %v5990_v47 }
0x1375   : > { %8066 = vmatpush3.bf16.msra.mxu1 %v8065_v38 }
0x1376   : > { %v5992_v0 = vrot.slane %v5991_v53, 2  ;;  %8067 = vmatprep.subr.bf16.mxu1 %v8316_v5 }
0x1378   : > { %v5993_v57 = vmax.f32 %v5991_v53, %v5992_v0 }
0x1379   : > { %8069 = vmatpush3.bf16.msra.mxu1 %v8068_v42 }
0x137a   : > { %v5994_v59 = vrot.slane %v5993_v57, 1 }
0x137c   : > { %v5995_v63 = vmax.f32 %v5993_v57, %v5994_v59  ;;  %v6277_v57 = vld [vmem:[%s9663_s19 + $0x40] sm:$0xff]  ;;  %v6278_v59 = vld [vmem:[%s9663_s19 + $0x48] sm:$0xff] }
0x137e   : > { %v5996_v25 = vsub.f32 %v5985_v54, %v5995_v63  ;;  %v8071_v63 = vpack.c.bf16 %v6278_v59, %v6277_v57 }
0x1380   : > { %v5997_v35 = vmul.f32 1.442695, %v5996_v25 }
0x1382   : > { %8285 = vpow2.f32 %v5997_v35 }
0x138c   : > { %v8286_v4 = vpop.eup %8285 }
0x138d   : > { %v5999_v28 = vsel %vm5988_vm4, %v8286_v4, 0.0 }
0x138e   : > { %v6000_v29 = vrot.slane %v5999_v28, 4 }
0x1390   : > { %v6001_v23 = vadd.f32 %v6000_v29, %v5999_v28 }
0x1392   : > { %v6002_v7 = vrot.slane %v6001_v23, 2 }
0x1394   : > { %v6003_v45 = vadd.f32 %v6002_v7, %v6001_v23 }
0x1396   : > { %v6004_v11 = vrot.slane %v6003_v45, 1 }
0x1398   : > { %v6005_v37 = vadd.f32 %v6004_v11, %v6003_v45 }
0x139a   : > { %8287 = vrcp.f32 %v6005_v37 }
0x13a4   : > { %v8288_v31 = vpop.eup %8287 }
0x13a5   : > { %v6007_v21 = vmul.f32 %v8288_v31, %v8286_v4 }
0x13a7   : > { %6010 = vperm.xlu0 %8095, %v6007_v21  }
0x1426   : > { %v6011_v43 = vpop.permute.xlu0 %6010 }
0x1427   : > { %v6013_v41 = vmul.f32 %v6011_v43, %v8531_v27 }
0x1429   : > { %v6014_v48 = vsel %vm810_vm2, %v6013_v41, 0.0 }
0x142a   : > { %v6015_v50 = vrot.slane %v6014_v48, 4 }
0x142c   : > { %v6016_v52 = vadd.f32 %v6015_v50, %v6014_v48 }
0x142e   : > { %v6017_v60 = vrot.slane %v6016_v52, 2 }
0x1430   : > { %v6018_v58 = vadd.f32 %v6017_v60, %v6016_v52 }
0x1432   : > { %v6019_v3 = vrot.slane %v6018_v58, 1 }
0x1434   : > { %v6020_v20 = vadd.f32 %v6019_v3, %v6018_v58 }
0x1436   : > { %7661 = vmatmul.mubr.msk.f32.vlgmr.msra.gmra.mrb[58].mxu0 %vm810_vm2, %v6020_v20 }
0x1437   : > { %7682 = vmatprep.mubr.msk.f32.mxu0 %vm8317_vm0, %v8318_v8  ;;  %8072 = vmatpush3.bf16.msra.mxu0 %v8071_v63 }
0x1438   : > { %8073 = vmatprep.subr.bf16.mxu0 %v8316_v5 }
0x143f   : > { %v5905_v34 = vpop.f32.mrb[56].mxu1 }
0x1440   : > { %7676 = vmatmul.mubr.msk.f32.vlgmr.msra.gmra.mrb[60].mxu1 %vm2624_vm12, %v5905_v34  ;;  %v7641_v36 = vpop.f32.mrb[57].mxu1 }
0x1443   : > { %v6087_v26 = vpop.f32.mrb[58].mxu1 }
0x1444   : > { %v6088_v27 = vadd.f32 %v9567_v10, %v6087_v26  ;;  %v7655_v62 = vpop.f32.mrb[59].mxu1 }
0x1446   : > { %v6091_v1 = vsel %vm5988_vm4, %v6088_v27, -inf }
0x1447   : > { %v6092_v56 = vrot.slane %v6091_v1, 4 }
0x1449   : > { %v6093_v15 = vmax.f32 %v6091_v1, %v6092_v56 }
0x144b   : > { %v6094_v49 = vrot.slane %v6093_v15, 2 }
0x144d   : > { %v6095_v2 = vmax.f32 %v6093_v15, %v6094_v49 }
0x144f   : > { %v6096_v6 = vrot.slane %v6095_v2, 1 }
0x1451   : > { %v6097_v24 = vmax.f32 %v6095_v2, %v6096_v6 }
0x1453   : > { %v6098_v17 = vsub.f32 %v6088_v27, %v6097_v24 }
0x1455   : > { %v6099_v32 = vmul.f32 1.442695, %v6098_v17 }
0x1457   : > { %8289 = vpow2.f32 %v6099_v32 }
0x1461   : > { %v8290_v22 = vpop.eup %8289 }
0x1462   : > { %v6101_v51 = vsel %vm5988_vm4, %v8290_v22, 0.0 }
0x1463   : > { %v6102_v61 = vrot.slane %v6101_v51, 4 }
0x1465   : > { %v6103_v54 = vadd.f32 %v6102_v61, %v6101_v51 }
0x1467   : > { %v6104_v40 = vrot.slane %v6103_v54, 2 }
0x1469   : > { %v6105_v46 = vadd.f32 %v6104_v40, %v6103_v54 }
0x146b   : > { %v6106_v10 = vrot.slane %v6105_v46, 1 }
0x146d   : > { %v6107_v47 = vadd.f32 %v6106_v10, %v6105_v46 }
0x146f   : > { %8291 = vrcp.f32 %v6107_v47 }
0x1479   : > { %v8292_v53 = vpop.eup %8291 }
0x147a   : > { %v6109_v0 = vmul.f32 %v8292_v53, %v8290_v22 }
0x147c   : > { %6112 = vperm.xlu1 %8096, %v6109_v0  }
0x1480   : > { %6434 = vrot.lane.b32.xlu1 %v8713_v39, %s8321_s0 }
0x1484   : > { %6439 = vrot.lane.b32.xlu1 %v6007_v21, %s8322_s22 }
0x1488   : > { %6444 = vrot.lane.b32.xlu1 %v6109_v0, %s8323_s27  ;;  %s8324_s27 = smov 18  }
0x14fb   : > { %v6113_v25 = vpop.permute.xlu1 %6112 }
0x14fc   : > { %v6115_v39 = vmul.f32 %v6113_v25, %v8538_v30 }
0x14fe   : > { %v6116_v35 = vsel %vm810_vm2, %v6115_v39, 0.0 }
0x14ff   : > { %v6117_v4 = vrot.slane %v6116_v35, 4  ;;  %v6435_v28 = vpop.permute.xlu1 %6434 }
0x1500   : > { %6438 = vst.msk [vmem:[%s8488_s2] sm:$0xff] %vm6437_vm5, %v6435_v28 }
0x1501   : > { %v6118_v29 = vadd.f32 %v6117_v4, %v6116_v35 }
0x1503   : > { %v6119_v23 = vrot.slane %v6118_v29, 2  ;;  %v6440_v7 = vpop.permute.xlu1 %6439 }
0x1504   : > { %6443 = vst.msk [vmem:[%s8488_s2] sm:$0xff] %vm6442_vm6, %v6440_v7 }
0x1505   : > { %v6120_v45 = vadd.f32 %v6119_v23, %v6118_v29 }
0x1507   : > { %v6121_v11 = vrot.slane %v6120_v45, 1  ;;  %v6445_v37 = vpop.permute.xlu1 %6444 }
0x1508   : > { %6448 = vst.msk [vmem:[%s8488_s2] sm:$0xff] %vm6447_vm7, %v6445_v37 }
0x1509   : > { %v6122_v5 = vadd.f32 %v6121_v11, %v6120_v45  ;;  %v6200_v31 = vpop.f32.mrb[58].mxu0 }
0x150a   : > { %v7662_v21 = vpop.f32.mrb[59].mxu0 }
0x150b   : > { %7683 = vmatmul.mubr.msk.f32.vlgmr.msra.gmra.mrb[60].mxu0 %vm810_vm2, %v6122_v5 }
0x150c   : > { %7689 = vmatprep.mubr.msk.f32.mxu0 %vm8317_vm0, %v8318_v8  ;;  %8075 = vmatpush3.bf16.msra.mxu0 %v8074_v18  ;;  %vm6453_vm0 = vcmask 147600  }
0x1513   : > { %v6273_v30 = vpop.f32.mrb[60].mxu1 }
0x1514   : > { %v6274_v44 = vadd.f32 %v6273_v30, %v6200_v31  ;;  %v7677_v12 = vpop.f32.mrb[61].mxu1 }
0x15de   : > { %v6348_v19 = vpop.f32.mrb[60].mxu0 }
0x15df   : > { %v6352_v8 = vadd.f32 %v6348_v19, %v6274_v44  ;;  %v7684_v13 = vpop.f32.mrb[61].mxu0 }
0x15e1   : > { %v6354_v38 = vadd.f32 %v6353_v55, %v6352_v8 }
0x15e3   : > { %v6355_v9 = vmax.f32 %v6354_v38, 0.0 }
0x15e5   : > { %7690 = vmatmul.mubr.msk.f32.vlgmr.msra.gmra.mrb[62].mxu0 %vm810_vm2, %v6355_v9 }
0x16b8   : > { %v6428_v42 = vpop.f32.mrb[62].mxu0 }
0x16b9   : > { %v6429_v43 = vadd.f32 %v6428_v42, %v6358_v33  ;;  %v7691_v41 = vpop.f32.mrb[63].mxu0 }
0x16bb   : > { %6450 = vrot.lane.b32.xlu1 %v6429_v43, %s8324_s27 }
0x172d   : > { %v6451_v48 = vpop.permute.xlu1 %6450 }
0x172e   : > { %6454 = vst.msk [vmem:[%s8488_s2] sm:$0x1] %vm6453_vm0, %v6451_v48 }
0x172f PF: > { %s43_s18 = sadd.s32 1, %s8313_s18  }
0x1730   : > { %p40_p3 = scmp.ge.s32.totalorder %s43_s18, 4  }
0x1732   :  { %42 = sbr.rel (!%p40_p3) target bundleno = 24 (0x18), region = 157 }

</bundles_post_ra>
